<compile_context>
chip_gen: v5e
topology: v5e:2x2
jax: 0.10.0
libtpu: 0.0.40
codegen_flags: <defaults>
</compile_context>

<pallas_src>
import jax
import jax.numpy as jnp
from jax import lax
from jax.experimental import pallas as pl
from jax.experimental.pallas import tpu as pltpu

# Model hyperparameters (shapes implied by Bilstm_crf.__init__)
VOCAB_SIZE = 32
EMBEDDING_DIM = 16
HIDDEN_SIZE = 32          # 8*H = 256 -> fused bidirectional gate width
TARGET_SIZE = 8

B_TILE = 8                # batch tile (multiple of 8 sublanes); raise for large B


# ----------------------------------------------------------------------------------
# Single fused kernel: embedding + BiLSTM + linear + CRF Viterbi decode
# ----------------------------------------------------------------------------------
def _bilstm_crf_kernel(idsf_ref, idsb_ref, len_ref, table_ref, bias_ref, whh_ref,
                       wlin_ref, blin_ref, start_ref, end_ref, trans_t_ref,
                       tags_ref, hbuf_ref):
    f32, bf16, i32 = jnp.float32, jnp.bfloat16, jnp.int32
    B = len_ref.shape[0]
    TB = idsf_ref.shape[0]
    T = TB // B
    V2, G8 = table_ref.shape            # (2V, 8H)
    H2 = whh_ref.shape[0]               # 2H
    H = H2 // 2
    K = trans_t_ref.shape[0]

    # ---- embedding + input projection (both directions, all timesteps, one matmul) ----
    # idsf holds ids[b, s] (0..V-1), idsb holds ids[b, T-1-s] + V; the table's top half
    # only populates forward gate columns, bottom half only backward gate columns, so a
    # single merged one-hot matmul yields the per-step x-gates for BOTH directions.
    iota_v = lax.broadcasted_iota(i32, (TB, V2), 1)
    onehot = jnp.logical_or(idsf_ref[...] == iota_v,
                            idsb_ref[...] == iota_v).astype(bf16)          # (T*B, 2V)
    gx_all = (jnp.dot(onehot, table_ref[...], preferred_element_type=f32)
              + bias_ref[...])                                              # (T*B, 8H) f32

    # ---- fused bidirectional LSTM recurrence (block-diagonal bf16 W_hh) ----
    # gate-column layout (built in the wrapper): [i_f i_b | f_f f_b | g_f g_b | o_f o_b]
    whh = whh_ref[...]                                                      # (2H, 8H) bf16
    h_cat = jnp.zeros((B, H2), f32)     # [h_fwd | h_bwd]
    c_cat = jnp.zeros((B, H2), f32)
    for s in range(T):                  # static unroll (T is small)
        gx = gx_all[s * B:(s + 1) * B, :]                                   # aligned slice
        gates = jnp.dot(h_cat.astype(bf16), whh,
                        preferred_element_type=f32) + gx                   # (B, 8H)
        i_g = jax.nn.sigmoid(gates[:, 0 * H2:1 * H2])
        f_g = jax.nn.sigmoid(gates[:, 1 * H2:2 * H2])
        g_g = jnp.tanh(gates[:, 2 * H2:3 * H2])
        o_g = jax.nn.sigmoid(gates[:, 3 * H2:4 * H2])
        c_cat = f_g * c_cat + i_g * g_g
        h_cat = o_g * jnp.tanh(c_cat)
        hb = h_cat.astype(bf16)
        # tile-aligned scratch stores: row t*B+b ends up as [h_fwd(t) | h_bwd(t)]
        hbuf_ref[s * B:(s + 1) * B, 0:H] = hb[:, 0:H]
        hbuf_ref[(T - 1 - s) * B:(T - s) * B, H:H2] = hb[:, H:H2]

    # ---- batched output projection -> emissions for all timesteps ----
    emis = (jnp.dot(hbuf_ref[...], wlin_ref[...], preferred_element_type=f32)
            + blin_ref[...])                                                # (T*B, K) f32

    # ---- CRF Viterbi DP (max-sum recursion, f32, K=8 -> slack) ----
    lengths = len_ref[...]                                                  # (B, 1) i32
    trans_t = trans_t_ref[...]                                              # (K_to, K_from)
    iota_bk = lax.broadcasted_iota(i32, (B, K), 1)
    from_idx = lax.broadcasted_iota(i32, (B, K, K), 2)                      # hoisted

    score = start_ref[...] + emis[0:B, :]                                   # (B, K)
    history = [None] * T
    for t in range(1, T):               # static unroll
        emis_t = emis[t * B:(t + 1) * B, :]
        # cand[b, to, from] = score[b, from] + transitions[from, to] + emis[t, b, to]
        cand = score[:, None, :] + trans_t[None, :, :] + emis_t[:, :, None]
        best = jnp.max(cand, axis=-1)                                       # (B, K)
        picked = jnp.where(cand >= best[:, :, None], from_idx, K)
        history[t] = jnp.min(picked, axis=-1).astype(i32)                   # (B, K)
        score = jnp.where(lengths > t, best, score)                         # mask[t] gate
    score = score + end_ref[...]

    # ---- backtracking (inside the kernel; pure vector selects) ----
    smax = jnp.max(score, axis=-1, keepdims=True)
    best_last = jnp.min(jnp.where(score >= smax, iota_bk, K),
                        axis=-1, keepdims=True).astype(i32)                 # (B, 1)

    tags = [None] * T
    cur = jnp.zeros((B, 1), i32)
    for t in range(T - 1, -1, -1):
        if t + 1 < T:
            sel = jnp.where(iota_bk == cur, history[t + 1], 0)
            prev = jnp.sum(sel, axis=-1, keepdims=True).astype(i32)         # (B, 1)
        else:
            prev = cur                  # never selected at t == T-1
        tag_t = jnp.where(lengths == t + 1, best_last, prev)
        tag_t = jnp.where(lengths > t, tag_t, jnp.zeros_like(tag_t))
        tags[t] = tag_t
        cur = tag_t

    # TODO(synk): for large B emit tags time-major / lane-dense instead of last-dim=T.
    tags_ref[...] = jnp.concatenate(tags, axis=-1)                          # (B, T)


# ----------------------------------------------------------------------------------
# Wrapper: pad batch to B_TILE, fold embedding into W_ih, block-diagonal W_hh,
# batch-tiled pallas_call
# ----------------------------------------------------------------------------------
@jax.jit
def bilstm_crf_forward(ids, mask, params):
    """ids: (B, T) int32 token ids, mask: (B, T) bool (mask[:, 0] must be True).

    Returns (tags, lengths): tags is (B, T) int32 (best tag path, padded with 0
    past each sequence length), lengths is (B,) int32.
    """
    B, T = ids.shape
    V, E, H, K = VOCAB_SIZE, EMBEDDING_DIM, HIDDEN_SIZE, TARGET_SIZE
    G4, G8 = 4 * H, 8 * H
    f32, bf16 = jnp.float32, jnp.bfloat16

    def interleave(m_f, m_b):
        # PyTorch gate order [i f g o] per direction -> [i_f i_b | f_f f_b | g_f g_b | o_f o_b]
        parts = []
        for g in range(4):
            parts.append(m_f[..., g * H:(g + 1) * H])
            parts.append(m_b[..., g * H:(g + 1) * H])
        return jnp.concatenate(parts, axis=-1)

    emb = params['embedding'].astype(f32)                                    # (V, E)
    proj_f = emb @ params['w_ih_f'].T                                        # (V, 4H)
    proj_b = emb @ params['w_ih_b'].T                                        # (V, 4H)
    zeros_v = jnp.zeros_like(proj_f)
    # merged embedding+input-projection table: rows 0..V-1 feed fwd gate columns only,
    # rows V..2V-1 feed bwd gate columns only.
    table2 = jnp.concatenate([interleave(proj_f, zeros_v),
                              interleave(zeros_v, proj_b)], axis=0).astype(bf16)  # (2V, 8H)
    bias = interleave((params['b_ih_f'] + params['b_hh_f'])[None, :],
                      (params['b_ih_b'] + params['b_hh_b'])[None, :]).astype(f32)  # (1, 8H)
    zeros_h = jnp.zeros((H, G4), f32)
    whh_block = interleave(
        jnp.concatenate([params['w_hh_f'].T, zeros_h], axis=0),
        jnp.concatenate([zeros_h, params['w_hh_b'].T], axis=0)).astype(bf16)  # (2H, 8H)
    wlin = params['w_lin'].T.astype(bf16)                                    # (2H, K)
    blin = params['b_lin'].reshape(1, K).astype(f32)
    start = params['crf_start'].reshape(1, K).astype(f32)
    end = params['crf_end'].reshape(1, K).astype(f32)
    trans_t = params['crf_trans'].T.astype(f32)                              # (K_to, K_from)

    # ---- pad batch to a multiple of B_TILE (8 sublanes) ----
    b_tile = B_TILE
    B_pad = ((B + b_tile - 1) // b_tile) * b_tile
    pad = B_pad - B
    ids_p = jnp.pad(ids.astype(jnp.int32), ((0, pad), (0, 0)))               # pad ids -> 0
    mask_p = jnp.pad(mask, ((0, pad), (0, 0)))                               # pad mask -> False
    lengths_p = mask_p.astype(jnp.int32).sum(axis=1)                         # (B_pad,)
    num_tiles = B_pad // b_tile

    def to_blocks(x):
        # (B_pad, T) -> rows ordered (tile, t, b_local): block i is rows i*T*b_tile..
        return (x.reshape(num_tiles, b_tile, T)
                 .transpose(0, 2, 1)
                 .reshape(num_tiles * T * b_tile, 1))

    ids_f = to_blocks(ids_p)                                                 # fwd ids
    ids_b = to_blocks(ids_p[:, ::-1]) + V                                    # bwd ids, offset V
    len_col = lengths_p.reshape(B_pad, 1)

    bcast = lambda i: (0, 0)   # weights broadcast to every batch tile
    tags = pl.pallas_call(
        _bilstm_crf_kernel,
        out_shape=jax.ShapeDtypeStruct((B_pad, T), jnp.int32),
        grid=(num_tiles,),
        in_specs=[
            pl.BlockSpec((T * b_tile, 1), lambda i: (i, 0)),   # fwd ids (tile time-major)
            pl.BlockSpec((T * b_tile, 1), lambda i: (i, 0)),   # bwd ids (+V offset)
            pl.BlockSpec((b_tile, 1), lambda i: (i, 0)),       # lengths
            pl.BlockSpec((2 * V, G8), bcast),                  # fused embedding+input proj (bf16)
            pl.BlockSpec((1, G8), bcast),                      # fused gate bias (f32)
            pl.BlockSpec((2 * H, G8), bcast),                  # block-diagonal W_hh (bf16)
            pl.BlockSpec((2 * H, K), bcast),                   # linear weight (bf16)
            pl.BlockSpec((1, K), bcast),                       # linear bias
            pl.BlockSpec((1, K), bcast),                       # crf start transitions
            pl.BlockSpec((1, K), bcast),                       # crf end transitions
            pl.BlockSpec((K, K), bcast),                       # crf transitions^T
        ],
        out_specs=pl.BlockSpec((b_tile, T), lambda i: (i, 0)),
        scratch_shapes=[pltpu.VMEM((T * b_tile, 2 * H), jnp.bfloat16)],       # h buffer
        compiler_params=pltpu.CompilerParams(dimension_semantics=("parallel",)),
    )(ids_f, ids_b, len_col, table2, bias, whh_block, wlin, blin, start, end, trans_t)

    # TODO(synk): PyTorch CRF.decode returns a Python list of variable-length lists;
    # here we return a padded (B, T) array + per-sequence lengths instead.
    return tags[:B], lengths_p[:B]


def init_params(key):
    keys = jax.random.split(key, 14)
    H, E, V, K = HIDDEN_SIZE, EMBEDDING_DIM, VOCAB_SIZE, TARGET_SIZE

    def n(k, shape, scale=0.1):
        return scale * jax.random.normal(k, shape, dtype=jnp.float32)

    return {
        'embedding': n(keys[0], (V, E), 1.0),
        'w_ih_f': n(keys[1], (4 * H, E)),
        'w_hh_f': n(keys[2], (4 * H, H)),
        'b_ih_f': n(keys[3], (4 * H,)),
        'b_hh_f': n(keys[4], (4 * H,)),
        'w_ih_b': n(keys[5], (4 * H, E)),
        'w_hh_b': n(keys[6], (4 * H, H)),
        'b_ih_b': n(keys[7], (4 * H,)),
        'b_hh_b': n(keys[8], (4 * H,)),
        'w_lin': n(keys[9], (K, 2 * H)),
        'b_lin': n(keys[10], (K,)),
        'crf_start': n(keys[11], (K,)),
        'crf_end': n(keys[12], (K,)),
        'crf_trans': n(keys[13], (K, K)),
    }


if __name__ == "__main__":
    key = jax.random.PRNGKey(0)
    kp, ki = jax.random.split(key)
    params = init_params(kp)

    B, T = 2, 8
    ids = jax.random.randint(ki, (B, T), 0, VOCAB_SIZE, dtype=jnp.int32)
    lengths = jnp.array([T, 5], dtype=jnp.int32)
    mask = jnp.arange(T)[None, :] < lengths[:, None]      # mask[:, 0] all True (CRF req)

    tags, lens = bilstm_crf_forward(ids, mask, params)
    jax.block_until_ready((tags, lens))
    print("KERNEL_OK")
</pallas_src>

<mosaic_0001>
module attributes {stable_mosaic.version = 11 : i64} {
  func.func @_bilstm_crf_kernel(%arg0: i32, %arg1: memref<64x1xi32, #tpu.memory_space<vmem>>, %arg2: memref<64x1xi32, #tpu.memory_space<vmem>>, %arg3: memref<8x1xi32, #tpu.memory_space<vmem>>, %arg4: memref<64x256xbf16, #tpu.memory_space<vmem>>, %arg5: memref<1x256xf32, #tpu.memory_space<vmem>>, %arg6: memref<64x256xbf16, #tpu.memory_space<vmem>>, %arg7: memref<64x8xbf16, #tpu.memory_space<vmem>>, %arg8: memref<1x8xf32, #tpu.memory_space<vmem>>, %arg9: memref<1x8xf32, #tpu.memory_space<vmem>>, %arg10: memref<1x8xf32, #tpu.memory_space<vmem>>, %arg11: memref<8x8xf32, #tpu.memory_space<vmem>>, %arg12: memref<8x8xi32, #tpu.memory_space<vmem>>, %arg13: memref<64x64xbf16, #tpu.memory_space<vmem>>) attributes {dimension_semantics = [#tpu.dimension_semantics<parallel>], iteration_bounds = array<i64: 1>, scalar_prefetch = 0 : i64, scratch_operands = 1 : i64, tpu.core_type = #tpu.core_type<tc>, window_params = [{transform_indices = @transform_0, window_bounds = array<i64: 64, 1>}, {transform_indices = @transform_1, window_bounds = array<i64: 64, 1>}, {transform_indices = @transform_2, window_bounds = array<i64: 8, 1>}, {pipeline_mode = #tpu.pipeline_mode<synchronous>, transform_indices = @transform_3, window_bounds = array<i64: 64, 256>}, {pipeline_mode = #tpu.pipeline_mode<synchronous>, transform_indices = @transform_4, window_bounds = array<i64: 1, 256>}, {pipeline_mode = #tpu.pipeline_mode<synchronous>, transform_indices = @transform_5, window_bounds = array<i64: 64, 256>}, {pipeline_mode = #tpu.pipeline_mode<synchronous>, transform_indices = @transform_6, window_bounds = array<i64: 64, 8>}, {pipeline_mode = #tpu.pipeline_mode<synchronous>, transform_indices = @transform_7, window_bounds = array<i64: 1, 8>}, {pipeline_mode = #tpu.pipeline_mode<synchronous>, transform_indices = @transform_8, window_bounds = array<i64: 1, 8>}, {pipeline_mode = #tpu.pipeline_mode<synchronous>, transform_indices = @transform_9, window_bounds = array<i64: 1, 8>}, {pipeline_mode = #tpu.pipeline_mode<synchronous>, transform_indices = @transform_10, window_bounds = array<i64: 8, 8>}, {transform_indices = @transform_11, window_bounds = array<i64: 8, 8>}]} {
    %0 = tpu.iota {dimensions = array<i32: 1>} : vector<64x64xi32>
    %c0 = arith.constant 0 : index
    %c0_0 = arith.constant 0 : index
    %1 = vector.load %arg1[%c0, %c0_0] : memref<64x1xi32, #tpu.memory_space<vmem>>, vector<64x1xi32>
    %2 = vector.broadcast %1 : vector<64x1xi32> to vector<64x64xi32>
    %3 = arith.cmpi eq, %2, %0 : vector<64x64xi32>
    %c0_1 = arith.constant 0 : index
    %c0_2 = arith.constant 0 : index
    %4 = vector.load %arg2[%c0_1, %c0_2] : memref<64x1xi32, #tpu.memory_space<vmem>>, vector<64x1xi32>
    %5 = vector.broadcast %4 : vector<64x1xi32> to vector<64x64xi32>
    %6 = arith.cmpi eq, %5, %0 : vector<64x64xi32>
    %7 = arith.ori %3, %6 : vector<64x64xi1>
    %8 = arith.extui %7 : vector<64x64xi1> to vector<64x64xi32>
    %9 = arith.sitofp %8 : vector<64x64xi32> to vector<64x64xf32>
    %10 = arith.truncf %9 : vector<64x64xf32> to vector<64x64xbf16>
    %c0_3 = arith.constant 0 : index
    %c0_4 = arith.constant 0 : index
    %11 = vector.load %arg4[%c0_3, %c0_4] : memref<64x256xbf16, #tpu.memory_space<vmem>>, vector<64x256xbf16>
    %cst = arith.constant dense<0.000000e+00> : vector<64x256xf32>
    %12 = tpu.matmul %10, %11, %cst {dimension_numbers = #tpu.dot_dimension_numbers<[1], [0], [0], [1], [0, 0, 1, 1], [], []>} : vector<64x64xbf16>, vector<64x256xbf16>, vector<64x256xf32> -> vector<64x256xf32>
    %c0_5 = arith.constant 0 : index
    %c0_6 = arith.constant 0 : index
    %13 = vector.load %arg5[%c0_5, %c0_6] : memref<1x256xf32, #tpu.memory_space<vmem>>, vector<1x256xf32>
    %14 = vector.broadcast %13 : vector<1x256xf32> to vector<64x256xf32>
    %15 = arith.addf %12, %14 : vector<64x256xf32>
    %c0_7 = arith.constant 0 : index
    %c0_8 = arith.constant 0 : index
    %16 = vector.load %arg6[%c0_7, %c0_8] : memref<64x256xbf16, #tpu.memory_space<vmem>>, vector<64x256xbf16>
    %cst_9 = arith.constant 0.000000e+00 : f32
    %17 = vector.broadcast %cst_9 : f32 to vector<8x64xf32>
    %cst_10 = arith.constant 0.000000e+00 : f32
    %18 = vector.broadcast %cst_10 : f32 to vector<8x64xf32>
    %19 = vector.extract_strided_slice %15 {offsets = [0, 0], sizes = [8, 256], strides = [1, 1]} : vector<64x256xf32> to vector<8x256xf32>
    %20 = arith.truncf %17 : vector<8x64xf32> to vector<8x64xbf16>
    %cst_11 = arith.constant dense<0.000000e+00> : vector<8x256xf32>
    %21 = tpu.matmul %20, %16, %cst_11 {dimension_numbers = #tpu.dot_dimension_numbers<[1], [0], [0], [1], [0, 0, 1, 1], [], []>} : vector<8x64xbf16>, vector<64x256xbf16>, vector<8x256xf32> -> vector<8x256xf32>
    %22 = arith.addf %21, %19 : vector<8x256xf32>
    %23 = vector.extract_strided_slice %22 {offsets = [0, 0], sizes = [8, 64], strides = [1, 1]} : vector<8x256xf32> to vector<8x64xf32>
    %24 = arith.negf %23 : vector<8x64xf32>
    %25 = math.exp %24 : vector<8x64xf32>
    %cst_12 = arith.constant 1.000000e+00 : f32
    %26 = vector.broadcast %cst_12 : f32 to vector<8x64xf32>
    %27 = arith.addf %26, %25 : vector<8x64xf32>
    %28 = arith.divf %26, %27 : vector<8x64xf32>
    %29 = vector.extract_strided_slice %22 {offsets = [0, 64], sizes = [8, 64], strides = [1, 1]} : vector<8x256xf32> to vector<8x64xf32>
    %30 = arith.negf %29 : vector<8x64xf32>
    %31 = math.exp %30 : vector<8x64xf32>
    %cst_13 = arith.constant 1.000000e+00 : f32
    %32 = vector.broadcast %cst_13 : f32 to vector<8x64xf32>
    %33 = arith.addf %32, %31 : vector<8x64xf32>
    %34 = arith.divf %32, %33 : vector<8x64xf32>
    %35 = vector.extract_strided_slice %22 {offsets = [0, 128], sizes = [8, 64], strides = [1, 1]} : vector<8x256xf32> to vector<8x64xf32>
    %36 = math.tanh %35 : vector<8x64xf32>
    %37 = vector.extract_strided_slice %22 {offsets = [0, 192], sizes = [8, 64], strides = [1, 1]} : vector<8x256xf32> to vector<8x64xf32>
    %38 = arith.negf %37 : vector<8x64xf32>
    %39 = math.exp %38 : vector<8x64xf32>
    %cst_14 = arith.constant 1.000000e+00 : f32
    %40 = vector.broadcast %cst_14 : f32 to vector<8x64xf32>
    %41 = arith.addf %40, %39 : vector<8x64xf32>
    %42 = arith.divf %40, %41 : vector<8x64xf32>
    %43 = arith.mulf %34, %18 : vector<8x64xf32>
    %44 = arith.mulf %28, %36 : vector<8x64xf32>
    %45 = arith.addf %43, %44 : vector<8x64xf32>
    %46 = math.tanh %45 : vector<8x64xf32>
    %47 = arith.mulf %42, %46 : vector<8x64xf32>
    %48 = arith.truncf %47 : vector<8x64xf32> to vector<8x64xbf16>
    %49 = vector.extract_strided_slice %48 {offsets = [0, 0], sizes = [8, 32], strides = [1, 1]} : vector<8x64xbf16> to vector<8x32xbf16>
    %c0_15 = arith.constant 0 : index
    %c0_16 = arith.constant 0 : index
    %50 = vector.load %arg13[%c0_15, %c0_16] : memref<64x64xbf16, #tpu.memory_space<vmem>>, vector<8x32xbf16>
    tpu.vector_store %arg13[%c0_15, %c0_16], %49 {strides = array<i32>} : memref<64x64xbf16, #tpu.memory_space<vmem>>, vector<8x32xbf16>,
    %51 = vector.extract_strided_slice %48 {offsets = [0, 32], sizes = [8, 32], strides = [1, 1]} : vector<8x64xbf16> to vector<8x32xbf16>
    %c56 = arith.constant 56 : index
    %c32 = arith.constant 32 : index
    %52 = vector.load %arg13[%c56, %c32] : memref<64x64xbf16, #tpu.memory_space<vmem>>, vector<8x32xbf16>
    tpu.vector_store %arg13[%c56, %c32], %51 {strides = array<i32>} : memref<64x64xbf16, #tpu.memory_space<vmem>>, vector<8x32xbf16>,
    %53 = vector.extract_strided_slice %15 {offsets = [8, 0], sizes = [8, 256], strides = [1, 1]} : vector<64x256xf32> to vector<8x256xf32>
    %54 = arith.truncf %47 : vector<8x64xf32> to vector<8x64xbf16>
    %cst_17 = arith.constant dense<0.000000e+00> : vector<8x256xf32>
    %55 = tpu.matmul %54, %16, %cst_17 {dimension_numbers = #tpu.dot_dimension_numbers<[1], [0], [0], [1], [0, 0, 1, 1], [], []>} : vector<8x64xbf16>, vector<64x256xbf16>, vector<8x256xf32> -> vector<8x256xf32>
    %56 = arith.addf %55, %53 : vector<8x256xf32>
    %57 = vector.extract_strided_slice %56 {offsets = [0, 0], sizes = [8, 64], strides = [1, 1]} : vector<8x256xf32> to vector<8x64xf32>
    %58 = arith.negf %57 : vector<8x64xf32>
    %59 = math.exp %58 : vector<8x64xf32>
    %cst_18 = arith.constant 1.000000e+00 : f32
    %60 = vector.broadcast %cst_18 : f32 to vector<8x64xf32>
    %61 = arith.addf %60, %59 : vector<8x64xf32>
    %62 = arith.divf %60, %61 : vector<8x64xf32>
    %63 = vector.extract_strided_slice %56 {offsets = [0, 64], sizes = [8, 64], strides = [1, 1]} : vector<8x256xf32> to vector<8x64xf32>
    %64 = arith.negf %63 : vector<8x64xf32>
    %65 = math.exp %64 : vector<8x64xf32>
    %cst_19 = arith.constant 1.000000e+00 : f32
    %66 = vector.broadcast %cst_19 : f32 to vector<8x64xf32>
    %67 = arith.addf %66, %65 : vector<8x64xf32>
    %68 = arith.divf %66, %67 : vector<8x64xf32>
    %69 = vector.extract_strided_slice %56 {offsets = [0, 128], sizes = [8, 64], strides = [1, 1]} : vector<8x256xf32> to vector<8x64xf32>
    %70 = math.tanh %69 : vector<8x64xf32>
    %71 = vector.extract_strided_slice %56 {offsets = [0, 192], sizes = [8, 64], strides = [1, 1]} : vector<8x256xf32> to vector<8x64xf32>
    %72 = arith.negf %71 : vector<8x64xf32>
    %73 = math.exp %72 : vector<8x64xf32>
    %cst_20 = arith.constant 1.000000e+00 : f32
    %74 = vector.broadcast %cst_20 : f32 to vector<8x64xf32>
    %75 = arith.addf %74, %73 : vector<8x64xf32>
    %76 = arith.divf %74, %75 : vector<8x64xf32>
    %77 = arith.mulf %68, %45 : vector<8x64xf32>
    %78 = arith.mulf %62, %70 : vector<8x64xf32>
    %79 = arith.addf %77, %78 : vector<8x64xf32>
    %80 = math.tanh %79 : vector<8x64xf32>
    %81 = arith.mulf %76, %80 : vector<8x64xf32>
    %82 = arith.truncf %81 : vector<8x64xf32> to vector<8x64xbf16>
    %83 = vector.extract_strided_slice %82 {offsets = [0, 0], sizes = [8, 32], strides = [1, 1]} : vector<8x64xbf16> to vector<8x32xbf16>
    %c8 = arith.constant 8 : index
    %c0_21 = arith.constant 0 : index
    %84 = vector.load %arg13[%c8, %c0_21] : memref<64x64xbf16, #tpu.memory_space<vmem>>, vector<8x32xbf16>
    tpu.vector_store %arg13[%c8, %c0_21], %83 {strides = array<i32>} : memref<64x64xbf16, #tpu.memory_space<vmem>>, vector<8x32xbf16>,
    %85 = vector.extract_strided_slice %82 {offsets = [0, 32], sizes = [8, 32], strides = [1, 1]} : vector<8x64xbf16> to vector<8x32xbf16>
    %c48 = arith.constant 48 : index
    %c32_22 = arith.constant 32 : index
    %86 = vector.load %arg13[%c48, %c32_22] : memref<64x64xbf16, #tpu.memory_space<vmem>>, vector<8x32xbf16>
    tpu.vector_store %arg13[%c48, %c32_22], %85 {strides = array<i32>} : memref<64x64xbf16, #tpu.memory_space<vmem>>, vector<8x32xbf16>,
    %87 = vector.extract_strided_slice %15 {offsets = [16, 0], sizes = [8, 256], strides = [1, 1]} : vector<64x256xf32> to vector<8x256xf32>
    %88 = arith.truncf %81 : vector<8x64xf32> to vector<8x64xbf16>
    %cst_23 = arith.constant dense<0.000000e+00> : vector<8x256xf32>
    %89 = tpu.matmul %88, %16, %cst_23 {dimension_numbers = #tpu.dot_dimension_numbers<[1], [0], [0], [1], [0, 0, 1, 1], [], []>} : vector<8x64xbf16>, vector<64x256xbf16>, vector<8x256xf32> -> vector<8x256xf32>
    %90 = arith.addf %89, %87 : vector<8x256xf32>
    %91 = vector.extract_strided_slice %90 {offsets = [0, 0], sizes = [8, 64], strides = [1, 1]} : vector<8x256xf32> to vector<8x64xf32>
    %92 = arith.negf %91 : vector<8x64xf32>
    %93 = math.exp %92 : vector<8x64xf32>
    %cst_24 = arith.constant 1.000000e+00 : f32
    %94 = vector.broadcast %cst_24 : f32 to vector<8x64xf32>
    %95 = arith.addf %94, %93 : vector<8x64xf32>
    %96 = arith.divf %94, %95 : vector<8x64xf32>
    %97 = vector.extract_strided_slice %90 {offsets = [0, 64], sizes = [8, 64], strides = [1, 1]} : vector<8x256xf32> to vector<8x64xf32>
    %98 = arith.negf %97 : vector<8x64xf32>
    %99 = math.exp %98 : vector<8x64xf32>
    %cst_25 = arith.constant 1.000000e+00 : f32
    %100 = vector.broadcast %cst_25 : f32 to vector<8x64xf32>
    %101 = arith.addf %100, %99 : vector<8x64xf32>
    %102 = arith.divf %100, %101 : vector<8x64xf32>
    %103 = vector.extract_strided_slice %90 {offsets = [0, 128], sizes = [8, 64], strides = [1, 1]} : vector<8x256xf32> to vector<8x64xf32>
    %104 = math.tanh %103 : vector<8x64xf32>
    %105 = vector.extract_strided_slice %90 {offsets = [0, 192], sizes = [8, 64], strides = [1, 1]} : vector<8x256xf32> to vector<8x64xf32>
    %106 = arith.negf %105 : vector<8x64xf32>
    %107 = math.exp %106 : vector<8x64xf32>
    %cst_26 = arith.constant 1.000000e+00 : f32
    %108 = vector.broadcast %cst_26 : f32 to vector<8x64xf32>
    %109 = arith.addf %108, %107 : vector<8x64xf32>
    %110 = arith.divf %108, %109 : vector<8x64xf32>
    %111 = arith.mulf %102, %79 : vector<8x64xf32>
    %112 = arith.mulf %96, %104 : vector<8x64xf32>
    %113 = arith.addf %111, %112 : vector<8x64xf32>
    %114 = math.tanh %113 : vector<8x64xf32>
    %115 = arith.mulf %110, %114 : vector<8x64xf32>
    %116 = arith.truncf %115 : vector<8x64xf32> to vector<8x64xbf16>
    %117 = vector.extract_strided_slice %116 {offsets = [0, 0], sizes = [8, 32], strides = [1, 1]} : vector<8x64xbf16> to vector<8x32xbf16>
    %c16 = arith.constant 16 : index
    %c0_27 = arith.constant 0 : index
    %118 = vector.load %arg13[%c16, %c0_27] : memref<64x64xbf16, #tpu.memory_space<vmem>>, vector<8x32xbf16>
    tpu.vector_store %arg13[%c16, %c0_27], %117 {strides = array<i32>} : memref<64x64xbf16, #tpu.memory_space<vmem>>, vector<8x32xbf16>,
    %119 = vector.extract_strided_slice %116 {offsets = [0, 32], sizes = [8, 32], strides = [1, 1]} : vector<8x64xbf16> to vector<8x32xbf16>
    %c40 = arith.constant 40 : index
    %c32_28 = arith.constant 32 : index
    %120 = vector.load %arg13[%c40, %c32_28] : memref<64x64xbf16, #tpu.memory_space<vmem>>, vector<8x32xbf16>
    tpu.vector_store %arg13[%c40, %c32_28], %119 {strides = array<i32>} : memref<64x64xbf16, #tpu.memory_space<vmem>>, vector<8x32xbf16>,
    %121 = vector.extract_strided_slice %15 {offsets = [24, 0], sizes = [8, 256], strides = [1, 1]} : vector<64x256xf32> to vector<8x256xf32>
    %122 = arith.truncf %115 : vector<8x64xf32> to vector<8x64xbf16>
    %cst_29 = arith.constant dense<0.000000e+00> : vector<8x256xf32>
    %123 = tpu.matmul %122, %16, %cst_29 {dimension_numbers = #tpu.dot_dimension_numbers<[1], [0], [0], [1], [0, 0, 1, 1], [], []>} : vector<8x64xbf16>, vector<64x256xbf16>, vector<8x256xf32> -> vector<8x256xf32>
    %124 = arith.addf %123, %121 : vector<8x256xf32>
    %125 = vector.extract_strided_slice %124 {offsets = [0, 0], sizes = [8, 64], strides = [1, 1]} : vector<8x256xf32> to vector<8x64xf32>
    %126 = arith.negf %125 : vector<8x64xf32>
    %127 = math.exp %126 : vector<8x64xf32>
    %cst_30 = arith.constant 1.000000e+00 : f32
    %128 = vector.broadcast %cst_30 : f32 to vector<8x64xf32>
    %129 = arith.addf %128, %127 : vector<8x64xf32>
    %130 = arith.divf %128, %129 : vector<8x64xf32>
    %131 = vector.extract_strided_slice %124 {offsets = [0, 64], sizes = [8, 64], strides = [1, 1]} : vector<8x256xf32> to vector<8x64xf32>
    %132 = arith.negf %131 : vector<8x64xf32>
    %133 = math.exp %132 : vector<8x64xf32>
    %cst_31 = arith.constant 1.000000e+00 : f32
    %134 = vector.broadcast %cst_31 : f32 to vector<8x64xf32>
    %135 = arith.addf %134, %133 : vector<8x64xf32>
    %136 = arith.divf %134, %135 : vector<8x64xf32>
    %137 = vector.extract_strided_slice %124 {offsets = [0, 128], sizes = [8, 64], strides = [1, 1]} : vector<8x256xf32> to vector<8x64xf32>
    %138 = math.tanh %137 : vector<8x64xf32>
    %139 = vector.extract_strided_slice %124 {offsets = [0, 192], sizes = [8, 64], strides = [1, 1]} : vector<8x256xf32> to vector<8x64xf32>
    %140 = arith.negf %139 : vector<8x64xf32>
    %141 = math.exp %140 : vector<8x64xf32>
    %cst_32 = arith.constant 1.000000e+00 : f32
    %142 = vector.broadcast %cst_32 : f32 to vector<8x64xf32>
    %143 = arith.addf %142, %141 : vector<8x64xf32>
    %144 = arith.divf %142, %143 : vector<8x64xf32>
    %145 = arith.mulf %136, %113 : vector<8x64xf32>
    %146 = arith.mulf %130, %138 : vector<8x64xf32>
    %147 = arith.addf %145, %146 : vector<8x64xf32>
    %148 = math.tanh %147 : vector<8x64xf32>
    %149 = arith.mulf %144, %148 : vector<8x64xf32>
    %150 = arith.truncf %149 : vector<8x64xf32> to vector<8x64xbf16>
    %151 = vector.extract_strided_slice %150 {offsets = [0, 0], sizes = [8, 32], strides = [1, 1]} : vector<8x64xbf16> to vector<8x32xbf16>
    %c24 = arith.constant 24 : index
    %c0_33 = arith.constant 0 : index
    %152 = vector.load %arg13[%c24, %c0_33] : memref<64x64xbf16, #tpu.memory_space<vmem>>, vector<8x32xbf16>
    tpu.vector_store %arg13[%c24, %c0_33], %151 {strides = array<i32>} : memref<64x64xbf16, #tpu.memory_space<vmem>>, vector<8x32xbf16>,
    %153 = vector.extract_strided_slice %150 {offsets = [0, 32], sizes = [8, 32], strides = [1, 1]} : vector<8x64xbf16> to vector<8x32xbf16>
    %c32_34 = arith.constant 32 : index
    %c32_35 = arith.constant 32 : index
    %154 = vector.load %arg13[%c32_34, %c32_35] : memref<64x64xbf16, #tpu.memory_space<vmem>>, vector<8x32xbf16>
    tpu.vector_store %arg13[%c32_34, %c32_35], %153 {strides = array<i32>} : memref<64x64xbf16, #tpu.memory_space<vmem>>, vector<8x32xbf16>,
    %155 = vector.extract_strided_slice %15 {offsets = [32, 0], sizes = [8, 256], strides = [1, 1]} : vector<64x256xf32> to vector<8x256xf32>
    %156 = arith.truncf %149 : vector<8x64xf32> to vector<8x64xbf16>
    %cst_36 = arith.constant dense<0.000000e+00> : vector<8x256xf32>
    %157 = tpu.matmul %156, %16, %cst_36 {dimension_numbers = #tpu.dot_dimension_numbers<[1], [0], [0], [1], [0, 0, 1, 1], [], []>} : vector<8x64xbf16>, vector<64x256xbf16>, vector<8x256xf32> -> vector<8x256xf32>
    %158 = arith.addf %157, %155 : vector<8x256xf32>
    %159 = vector.extract_strided_slice %158 {offsets = [0, 0], sizes = [8, 64], strides = [1, 1]} : vector<8x256xf32> to vector<8x64xf32>
    %160 = arith.negf %159 : vector<8x64xf32>
    %161 = math.exp %160 : vector<8x64xf32>
    %cst_37 = arith.constant 1.000000e+00 : f32
    %162 = vector.broadcast %cst_37 : f32 to vector<8x64xf32>
    %163 = arith.addf %162, %161 : vector<8x64xf32>
    %164 = arith.divf %162, %163 : vector<8x64xf32>
    %165 = vector.extract_strided_slice %158 {offsets = [0, 64], sizes = [8, 64], strides = [1, 1]} : vector<8x256xf32> to vector<8x64xf32>
    %166 = arith.negf %165 : vector<8x64xf32>
    %167 = math.exp %166 : vector<8x64xf32>
    %cst_38 = arith.constant 1.000000e+00 : f32
    %168 = vector.broadcast %cst_38 : f32 to vector<8x64xf32>
    %169 = arith.addf %168, %167 : vector<8x64xf32>
    %170 = arith.divf %168, %169 : vector<8x64xf32>
    %171 = vector.extract_strided_slice %158 {offsets = [0, 128], sizes = [8, 64], strides = [1, 1]} : vector<8x256xf32> to vector<8x64xf32>
    %172 = math.tanh %171 : vector<8x64xf32>
    %173 = vector.extract_strided_slice %158 {offsets = [0, 192], sizes = [8, 64], strides = [1, 1]} : vector<8x256xf32> to vector<8x64xf32>
    %174 = arith.negf %173 : vector<8x64xf32>
    %175 = math.exp %174 : vector<8x64xf32>
    %cst_39 = arith.constant 1.000000e+00 : f32
    %176 = vector.broadcast %cst_39 : f32 to vector<8x64xf32>
    %177 = arith.addf %176, %175 : vector<8x64xf32>
    %178 = arith.divf %176, %177 : vector<8x64xf32>
    %179 = arith.mulf %170, %147 : vector<8x64xf32>
    %180 = arith.mulf %164, %172 : vector<8x64xf32>
    %181 = arith.addf %179, %180 : vector<8x64xf32>
    %182 = math.tanh %181 : vector<8x64xf32>
    %183 = arith.mulf %178, %182 : vector<8x64xf32>
    %184 = arith.truncf %183 : vector<8x64xf32> to vector<8x64xbf16>
    %185 = vector.extract_strided_slice %184 {offsets = [0, 0], sizes = [8, 32], strides = [1, 1]} : vector<8x64xbf16> to vector<8x32xbf16>
    %c32_40 = arith.constant 32 : index
    %c0_41 = arith.constant 0 : index
    %186 = vector.load %arg13[%c32_40, %c0_41] : memref<64x64xbf16, #tpu.memory_space<vmem>>, vector<8x32xbf16>
    tpu.vector_store %arg13[%c32_40, %c0_41], %185 {strides = array<i32>} : memref<64x64xbf16, #tpu.memory_space<vmem>>, vector<8x32xbf16>,
    %187 = vector.extract_strided_slice %184 {offsets = [0, 32], sizes = [8, 32], strides = [1, 1]} : vector<8x64xbf16> to vector<8x32xbf16>
    %c24_42 = arith.constant 24 : index
    %c32_43 = arith.constant 32 : index
    %188 = vector.load %arg13[%c24_42, %c32_43] : memref<64x64xbf16, #tpu.memory_space<vmem>>, vector<8x32xbf16>
    tpu.vector_store %arg13[%c24_42, %c32_43], %187 {strides = array<i32>} : memref<64x64xbf16, #tpu.memory_space<vmem>>, vector<8x32xbf16>,
    %189 = vector.extract_strided_slice %15 {offsets = [40, 0], sizes = [8, 256], strides = [1, 1]} : vector<64x256xf32> to vector<8x256xf32>
    %190 = arith.truncf %183 : vector<8x64xf32> to vector<8x64xbf16>
    %cst_44 = arith.constant dense<0.000000e+00> : vector<8x256xf32>
    %191 = tpu.matmul %190, %16, %cst_44 {dimension_numbers = #tpu.dot_dimension_numbers<[1], [0], [0], [1], [0, 0, 1, 1], [], []>} : vector<8x64xbf16>, vector<64x256xbf16>, vector<8x256xf32> -> vector<8x256xf32>
    %192 = arith.addf %191, %189 : vector<8x256xf32>
    %193 = vector.extract_strided_slice %192 {offsets = [0, 0], sizes = [8, 64], strides = [1, 1]} : vector<8x256xf32> to vector<8x64xf32>
    %194 = arith.negf %193 : vector<8x64xf32>
    %195 = math.exp %194 : vector<8x64xf32>
    %cst_45 = arith.constant 1.000000e+00 : f32
    %196 = vector.broadcast %cst_45 : f32 to vector<8x64xf32>
    %197 = arith.addf %196, %195 : vector<8x64xf32>
    %198 = arith.divf %196, %197 : vector<8x64xf32>
    %199 = vector.extract_strided_slice %192 {offsets = [0, 64], sizes = [8, 64], strides = [1, 1]} : vector<8x256xf32> to vector<8x64xf32>
    %200 = arith.negf %199 : vector<8x64xf32>
    %201 = math.exp %200 : vector<8x64xf32>
    %cst_46 = arith.constant 1.000000e+00 : f32
    %202 = vector.broadcast %cst_46 : f32 to vector<8x64xf32>
    %203 = arith.addf %202, %201 : vector<8x64xf32>
    %204 = arith.divf %202, %203 : vector<8x64xf32>
    %205 = vector.extract_strided_slice %192 {offsets = [0, 128], sizes = [8, 64], strides = [1, 1]} : vector<8x256xf32> to vector<8x64xf32>
    %206 = math.tanh %205 : vector<8x64xf32>
    %207 = vector.extract_strided_slice %192 {offsets = [0, 192], sizes = [8, 64], strides = [1, 1]} : vector<8x256xf32> to vector<8x64xf32>
    %208 = arith.negf %207 : vector<8x64xf32>
    %209 = math.exp %208 : vector<8x64xf32>
    %cst_47 = arith.constant 1.000000e+00 : f32
    %210 = vector.broadcast %cst_47 : f32 to vector<8x64xf32>
    %211 = arith.addf %210, %209 : vector<8x64xf32>
    %212 = arith.divf %210, %211 : vector<8x64xf32>
    %213 = arith.mulf %204, %181 : vector<8x64xf32>
    %214 = arith.mulf %198, %206 : vector<8x64xf32>
    %215 = arith.addf %213, %214 : vector<8x64xf32>
    %216 = math.tanh %215 : vector<8x64xf32>
    %217 = arith.mulf %212, %216 : vector<8x64xf32>
    %218 = arith.truncf %217 : vector<8x64xf32> to vector<8x64xbf16>
    %219 = vector.extract_strided_slice %218 {offsets = [0, 0], sizes = [8, 32], strides = [1, 1]} : vector<8x64xbf16> to vector<8x32xbf16>
    %c40_48 = arith.constant 40 : index
    %c0_49 = arith.constant 0 : index
    %220 = vector.load %arg13[%c40_48, %c0_49] : memref<64x64xbf16, #tpu.memory_space<vmem>>, vector<8x32xbf16>
    tpu.vector_store %arg13[%c40_48, %c0_49], %219 {strides = array<i32>} : memref<64x64xbf16, #tpu.memory_space<vmem>>, vector<8x32xbf16>,
    %221 = vector.extract_strided_slice %218 {offsets = [0, 32], sizes = [8, 32], strides = [1, 1]} : vector<8x64xbf16> to vector<8x32xbf16>
    %c16_50 = arith.constant 16 : index
    %c32_51 = arith.constant 32 : index
    %222 = vector.load %arg13[%c16_50, %c32_51] : memref<64x64xbf16, #tpu.memory_space<vmem>>, vector<8x32xbf16>
    tpu.vector_store %arg13[%c16_50, %c32_51], %221 {strides = array<i32>} : memref<64x64xbf16, #tpu.memory_space<vmem>>, vector<8x32xbf16>,
    %223 = vector.extract_strided_slice %15 {offsets = [48, 0], sizes = [8, 256], strides = [1, 1]} : vector<64x256xf32> to vector<8x256xf32>
    %224 = arith.truncf %217 : vector<8x64xf32> to vector<8x64xbf16>
    %cst_52 = arith.constant dense<0.000000e+00> : vector<8x256xf32>
    %225 = tpu.matmul %224, %16, %cst_52 {dimension_numbers = #tpu.dot_dimension_numbers<[1], [0], [0], [1], [0, 0, 1, 1], [], []>} : vector<8x64xbf16>, vector<64x256xbf16>, vector<8x256xf32> -> vector<8x256xf32>
    %226 = arith.addf %225, %223 : vector<8x256xf32>
    %227 = vector.extract_strided_slice %226 {offsets = [0, 0], sizes = [8, 64], strides = [1, 1]} : vector<8x256xf32> to vector<8x64xf32>
    %228 = arith.negf %227 : vector<8x64xf32>
    %229 = math.exp %228 : vector<8x64xf32>
    %cst_53 = arith.constant 1.000000e+00 : f32
    %230 = vector.broadcast %cst_53 : f32 to vector<8x64xf32>
    %231 = arith.addf %230, %229 : vector<8x64xf32>
    %232 = arith.divf %230, %231 : vector<8x64xf32>
    %233 = vector.extract_strided_slice %226 {offsets = [0, 64], sizes = [8, 64], strides = [1, 1]} : vector<8x256xf32> to vector<8x64xf32>
    %234 = arith.negf %233 : vector<8x64xf32>
    %235 = math.exp %234 : vector<8x64xf32>
    %cst_54 = arith.constant 1.000000e+00 : f32
    %236 = vector.broadcast %cst_54 : f32 to vector<8x64xf32>
    %237 = arith.addf %236, %235 : vector<8x64xf32>
    %238 = arith.divf %236, %237 : vector<8x64xf32>
    %239 = vector.extract_strided_slice %226 {offsets = [0, 128], sizes = [8, 64], strides = [1, 1]} : vector<8x256xf32> to vector<8x64xf32>
    %240 = math.tanh %239 : vector<8x64xf32>
    %241 = vector.extract_strided_slice %226 {offsets = [0, 192], sizes = [8, 64], strides = [1, 1]} : vector<8x256xf32> to vector<8x64xf32>
    %242 = arith.negf %241 : vector<8x64xf32>
    %243 = math.exp %242 : vector<8x64xf32>
    %cst_55 = arith.constant 1.000000e+00 : f32
    %244 = vector.broadcast %cst_55 : f32 to vector<8x64xf32>
    %245 = arith.addf %244, %243 : vector<8x64xf32>
    %246 = arith.divf %244, %245 : vector<8x64xf32>
    %247 = arith.mulf %238, %215 : vector<8x64xf32>
    %248 = arith.mulf %232, %240 : vector<8x64xf32>
    %249 = arith.addf %247, %248 : vector<8x64xf32>
    %250 = math.tanh %249 : vector<8x64xf32>
    %251 = arith.mulf %246, %250 : vector<8x64xf32>
    %252 = arith.truncf %251 : vector<8x64xf32> to vector<8x64xbf16>
    %253 = vector.extract_strided_slice %252 {offsets = [0, 0], sizes = [8, 32], strides = [1, 1]} : vector<8x64xbf16> to vector<8x32xbf16>
    %c48_56 = arith.constant 48 : index
    %c0_57 = arith.constant 0 : index
    %254 = vector.load %arg13[%c48_56, %c0_57] : memref<64x64xbf16, #tpu.memory_space<vmem>>, vector<8x32xbf16>
    tpu.vector_store %arg13[%c48_56, %c0_57], %253 {strides = array<i32>} : memref<64x64xbf16, #tpu.memory_space<vmem>>, vector<8x32xbf16>,
    %255 = vector.extract_strided_slice %252 {offsets = [0, 32], sizes = [8, 32], strides = [1, 1]} : vector<8x64xbf16> to vector<8x32xbf16>
    %c8_58 = arith.constant 8 : index
    %c32_59 = arith.constant 32 : index
    %256 = vector.load %arg13[%c8_58, %c32_59] : memref<64x64xbf16, #tpu.memory_space<vmem>>, vector<8x32xbf16>
    tpu.vector_store %arg13[%c8_58, %c32_59], %255 {strides = array<i32>} : memref<64x64xbf16, #tpu.memory_space<vmem>>, vector<8x32xbf16>,
    %257 = vector.extract_strided_slice %15 {offsets = [56, 0], sizes = [8, 256], strides = [1, 1]} : vector<64x256xf32> to vector<8x256xf32>
    %258 = arith.truncf %251 : vector<8x64xf32> to vector<8x64xbf16>
    %cst_60 = arith.constant dense<0.000000e+00> : vector<8x256xf32>
    %259 = tpu.matmul %258, %16, %cst_60 {dimension_numbers = #tpu.dot_dimension_numbers<[1], [0], [0], [1], [0, 0, 1, 1], [], []>} : vector<8x64xbf16>, vector<64x256xbf16>, vector<8x256xf32> -> vector<8x256xf32>
    %260 = arith.addf %259, %257 : vector<8x256xf32>
    %261 = vector.extract_strided_slice %260 {offsets = [0, 0], sizes = [8, 64], strides = [1, 1]} : vector<8x256xf32> to vector<8x64xf32>
    %262 = arith.negf %261 : vector<8x64xf32>
    %263 = math.exp %262 : vector<8x64xf32>
    %cst_61 = arith.constant 1.000000e+00 : f32
    %264 = vector.broadcast %cst_61 : f32 to vector<8x64xf32>
    %265 = arith.addf %264, %263 : vector<8x64xf32>
    %266 = arith.divf %264, %265 : vector<8x64xf32>
    %267 = vector.extract_strided_slice %260 {offsets = [0, 64], sizes = [8, 64], strides = [1, 1]} : vector<8x256xf32> to vector<8x64xf32>
    %268 = arith.negf %267 : vector<8x64xf32>
    %269 = math.exp %268 : vector<8x64xf32>
    %cst_62 = arith.constant 1.000000e+00 : f32
    %270 = vector.broadcast %cst_62 : f32 to vector<8x64xf32>
    %271 = arith.addf %270, %269 : vector<8x64xf32>
    %272 = arith.divf %270, %271 : vector<8x64xf32>
    %273 = vector.extract_strided_slice %260 {offsets = [0, 128], sizes = [8, 64], strides = [1, 1]} : vector<8x256xf32> to vector<8x64xf32>
    %274 = math.tanh %273 : vector<8x64xf32>
    %275 = vector.extract_strided_slice %260 {offsets = [0, 192], sizes = [8, 64], strides = [1, 1]} : vector<8x256xf32> to vector<8x64xf32>
    %276 = arith.negf %275 : vector<8x64xf32>
    %277 = math.exp %276 : vector<8x64xf32>
    %cst_63 = arith.constant 1.000000e+00 : f32
    %278 = vector.broadcast %cst_63 : f32 to vector<8x64xf32>
    %279 = arith.addf %278, %277 : vector<8x64xf32>
    %280 = arith.divf %278, %279 : vector<8x64xf32>
    %281 = arith.mulf %272, %249 : vector<8x64xf32>
    %282 = arith.mulf %266, %274 : vector<8x64xf32>
    %283 = arith.addf %281, %282 : vector<8x64xf32>
    %284 = math.tanh %283 : vector<8x64xf32>
    %285 = arith.mulf %280, %284 : vector<8x64xf32>
    %286 = arith.truncf %285 : vector<8x64xf32> to vector<8x64xbf16>
    %287 = vector.extract_strided_slice %286 {offsets = [0, 0], sizes = [8, 32], strides = [1, 1]} : vector<8x64xbf16> to vector<8x32xbf16>
    %c56_64 = arith.constant 56 : index
    %c0_65 = arith.constant 0 : index
    %288 = vector.load %arg13[%c56_64, %c0_65] : memref<64x64xbf16, #tpu.memory_space<vmem>>, vector<8x32xbf16>
    tpu.vector_store %arg13[%c56_64, %c0_65], %287 {strides = array<i32>} : memref<64x64xbf16, #tpu.memory_space<vmem>>, vector<8x32xbf16>,
    %289 = vector.extract_strided_slice %286 {offsets = [0, 32], sizes = [8, 32], strides = [1, 1]} : vector<8x64xbf16> to vector<8x32xbf16>
    %c0_66 = arith.constant 0 : index
    %c32_67 = arith.constant 32 : index
    %290 = vector.load %arg13[%c0_66, %c32_67] : memref<64x64xbf16, #tpu.memory_space<vmem>>, vector<8x32xbf16>
    tpu.vector_store %arg13[%c0_66, %c32_67], %289 {strides = array<i32>} : memref<64x64xbf16, #tpu.memory_space<vmem>>, vector<8x32xbf16>,
    %c0_68 = arith.constant 0 : index
    %c0_69 = arith.constant 0 : index
    %291 = vector.load %arg13[%c0_68, %c0_69] : memref<64x64xbf16, #tpu.memory_space<vmem>>, vector<64x64xbf16>
    %c0_70 = arith.constant 0 : index
    %c0_71 = arith.constant 0 : index
    %292 = vector.load %arg7[%c0_70, %c0_71] : memref<64x8xbf16, #tpu.memory_space<vmem>>, vector<64x8xbf16>
    %cst_72 = arith.constant dense<0.000000e+00> : vector<64x8xf32>
    %293 = tpu.matmul %291, %292, %cst_72 {dimension_numbers = #tpu.dot_dimension_numbers<[1], [0], [0], [1], [0, 0, 1, 1], [], []>} : vector<64x64xbf16>, vector<64x8xbf16>, vector<64x8xf32> -> vector<64x8xf32>
    %c0_73 = arith.constant 0 : index
    %c0_74 = arith.constant 0 : index
    %294 = vector.load %arg8[%c0_73, %c0_74] : memref<1x8xf32, #tpu.memory_space<vmem>>, vector<1x8xf32>
    %295 = vector.broadcast %294 : vector<1x8xf32> to vector<64x8xf32>
    %296 = arith.addf %293, %295 : vector<64x8xf32>
    %c0_75 = arith.constant 0 : index
    %c0_76 = arith.constant 0 : index
    %297 = vector.load %arg3[%c0_75, %c0_76] : memref<8x1xi32, #tpu.memory_space<vmem>>, vector<8x1xi32>
    %c0_77 = arith.constant 0 : index
    %c0_78 = arith.constant 0 : index
    %298 = vector.load %arg11[%c0_77, %c0_78] : memref<8x8xf32, #tpu.memory_space<vmem>>, vector<8x8xf32>
    %299 = tpu.iota {dimensions = array<i32: 1>} : vector<8x8xi32>
    %300 = tpu.iota {dimensions = array<i32: 2>} : vector<8x8x8xi32>
    %c0_79 = arith.constant 0 : index
    %c0_80 = arith.constant 0 : index
    %301 = vector.load %arg9[%c0_79, %c0_80] : memref<1x8xf32, #tpu.memory_space<vmem>>, vector<1x8xf32>
    %302 = vector.extract_strided_slice %296 {offsets = [0, 0], sizes = [8, 8], strides = [1, 1]} : vector<64x8xf32> to vector<8x8xf32>
    %303 = vector.broadcast %301 : vector<1x8xf32> to vector<8x8xf32>
    %304 = arith.addf %303, %302 : vector<8x8xf32>
    %305 = vector.extract_strided_slice %296 {offsets = [8, 0], sizes = [8, 8], strides = [1, 1]} : vector<64x8xf32> to vector<8x8xf32>
    %306 = vector.shape_cast %304 : vector<8x8xf32> to vector<8x1x8xf32>
    %307 = vector.shape_cast %298 : vector<8x8xf32> to vector<1x8x8xf32>
    %308 = vector.broadcast %306 : vector<8x1x8xf32> to vector<8x8x8xf32>
    %309 = vector.broadcast %307 : vector<1x8x8xf32> to vector<8x8x8xf32>
    %310 = arith.addf %308, %309 : vector<8x8x8xf32>
    %311 = vector.shape_cast %305 : vector<8x8xf32> to vector<8x8x1xf32>
    %312 = vector.broadcast %311 : vector<8x8x1xf32> to vector<8x8x8xf32>
    %313 = arith.addf %310, %312 : vector<8x8x8xf32>
    %cst_81 = arith.constant dense<0xFF800000> : vector<8x8xf32>
    %314 = vector.multi_reduction <maximumf>, %313, %cst_81 [2] : vector<8x8x8xf32> to vector<8x8xf32>
    %315 = vector.shape_cast %314 : vector<8x8xf32> to vector<8x8x1xf32>
    %316 = vector.broadcast %315 : vector<8x8x1xf32> to vector<8x8x8xf32>
    %317 = arith.cmpf oge, %313, %316 : vector<8x8x8xf32>
    %c8_i32 = arith.constant 8 : i32
    %318 = vector.broadcast %c8_i32 : i32 to vector<8x8x8xi32>
    %319 = arith.select %317, %300, %318 : vector<8x8x8xi1>, vector<8x8x8xi32>
    %cst_82 = arith.constant dense<2147483647> : vector<8x8xi32>
    %320 = vector.multi_reduction <minsi>, %319, %cst_82 [2] : vector<8x8x8xi32> to vector<8x8xi32>
    %c1_i32 = arith.constant 1 : i32
    %321 = vector.broadcast %c1_i32 : i32 to vector<8x1xi32>
    %322 = arith.cmpi sgt, %297, %321 : vector<8x1xi32>
    %323 = vector.shape_cast %322 : vector<8x1xi1> to vector<8x1xi1>
    %324 = vector.broadcast %323 : vector<8x1xi1> to vector<8x8xi1>
    %325 = arith.select %324, %314, %304 : vector<8x8xi1>, vector<8x8xf32>
    %326 = vector.extract_strided_slice %296 {offsets = [16, 0], sizes = [8, 8], strides = [1, 1]} : vector<64x8xf32> to vector<8x8xf32>
    %327 = vector.shape_cast %325 : vector<8x8xf32> to vector<8x1x8xf32>
    %328 = vector.shape_cast %298 : vector<8x8xf32> to vector<1x8x8xf32>
    %329 = vector.broadcast %327 : vector<8x1x8xf32> to vector<8x8x8xf32>
    %330 = vector.broadcast %328 : vector<1x8x8xf32> to vector<8x8x8xf32>
    %331 = arith.addf %329, %330 : vector<8x8x8xf32>
    %332 = vector.shape_cast %326 : vector<8x8xf32> to vector<8x8x1xf32>
    %333 = vector.broadcast %332 : vector<8x8x1xf32> to vector<8x8x8xf32>
    %334 = arith.addf %331, %333 : vector<8x8x8xf32>
    %cst_83 = arith.constant dense<0xFF800000> : vector<8x8xf32>
    %335 = vector.multi_reduction <maximumf>, %334, %cst_83 [2] : vector<8x8x8xf32> to vector<8x8xf32>
    %336 = vector.shape_cast %335 : vector<8x8xf32> to vector<8x8x1xf32>
    %337 = vector.broadcast %336 : vector<8x8x1xf32> to vector<8x8x8xf32>
    %338 = arith.cmpf oge, %334, %337 : vector<8x8x8xf32>
    %c8_i32_84 = arith.constant 8 : i32
    %339 = vector.broadcast %c8_i32_84 : i32 to vector<8x8x8xi32>
    %340 = arith.select %338, %300, %339 : vector<8x8x8xi1>, vector<8x8x8xi32>
    %cst_85 = arith.constant dense<2147483647> : vector<8x8xi32>
    %341 = vector.multi_reduction <minsi>, %340, %cst_85 [2] : vector<8x8x8xi32> to vector<8x8xi32>
    %c2_i32 = arith.constant 2 : i32
    %342 = vector.broadcast %c2_i32 : i32 to vector<8x1xi32>
    %343 = arith.cmpi sgt, %297, %342 : vector<8x1xi32>
    %344 = vector.shape_cast %343 : vector<8x1xi1> to vector<8x1xi1>
    %345 = vector.broadcast %344 : vector<8x1xi1> to vector<8x8xi1>
    %346 = arith.select %345, %335, %325 : vector<8x8xi1>, vector<8x8xf32>
    %347 = vector.extract_strided_slice %296 {offsets = [24, 0], sizes = [8, 8], strides = [1, 1]} : vector<64x8xf32> to vector<8x8xf32>
    %348 = vector.shape_cast %346 : vector<8x8xf32> to vector<8x1x8xf32>
    %349 = vector.shape_cast %298 : vector<8x8xf32> to vector<1x8x8xf32>
    %350 = vector.broadcast %348 : vector<8x1x8xf32> to vector<8x8x8xf32>
    %351 = vector.broadcast %349 : vector<1x8x8xf32> to vector<8x8x8xf32>
    %352 = arith.addf %350, %351 : vector<8x8x8xf32>
    %353 = vector.shape_cast %347 : vector<8x8xf32> to vector<8x8x1xf32>
    %354 = vector.broadcast %353 : vector<8x8x1xf32> to vector<8x8x8xf32>
    %355 = arith.addf %352, %354 : vector<8x8x8xf32>
    %cst_86 = arith.constant dense<0xFF800000> : vector<8x8xf32>
    %356 = vector.multi_reduction <maximumf>, %355, %cst_86 [2] : vector<8x8x8xf32> to vector<8x8xf32>
    %357 = vector.shape_cast %356 : vector<8x8xf32> to vector<8x8x1xf32>
    %358 = vector.broadcast %357 : vector<8x8x1xf32> to vector<8x8x8xf32>
    %359 = arith.cmpf oge, %355, %358 : vector<8x8x8xf32>
    %c8_i32_87 = arith.constant 8 : i32
    %360 = vector.broadcast %c8_i32_87 : i32 to vector<8x8x8xi32>
    %361 = arith.select %359, %300, %360 : vector<8x8x8xi1>, vector<8x8x8xi32>
    %cst_88 = arith.constant dense<2147483647> : vector<8x8xi32>
    %362 = vector.multi_reduction <minsi>, %361, %cst_88 [2] : vector<8x8x8xi32> to vector<8x8xi32>
    %c3_i32 = arith.constant 3 : i32
    %363 = vector.broadcast %c3_i32 : i32 to vector<8x1xi32>
    %364 = arith.cmpi sgt, %297, %363 : vector<8x1xi32>
    %365 = vector.shape_cast %364 : vector<8x1xi1> to vector<8x1xi1>
    %366 = vector.broadcast %365 : vector<8x1xi1> to vector<8x8xi1>
    %367 = arith.select %366, %356, %346 : vector<8x8xi1>, vector<8x8xf32>
    %368 = vector.extract_strided_slice %296 {offsets = [32, 0], sizes = [8, 8], strides = [1, 1]} : vector<64x8xf32> to vector<8x8xf32>
    %369 = vector.shape_cast %367 : vector<8x8xf32> to vector<8x1x8xf32>
    %370 = vector.shape_cast %298 : vector<8x8xf32> to vector<1x8x8xf32>
    %371 = vector.broadcast %369 : vector<8x1x8xf32> to vector<8x8x8xf32>
    %372 = vector.broadcast %370 : vector<1x8x8xf32> to vector<8x8x8xf32>
    %373 = arith.addf %371, %372 : vector<8x8x8xf32>
    %374 = vector.shape_cast %368 : vector<8x8xf32> to vector<8x8x1xf32>
    %375 = vector.broadcast %374 : vector<8x8x1xf32> to vector<8x8x8xf32>
    %376 = arith.addf %373, %375 : vector<8x8x8xf32>
    %cst_89 = arith.constant dense<0xFF800000> : vector<8x8xf32>
    %377 = vector.multi_reduction <maximumf>, %376, %cst_89 [2] : vector<8x8x8xf32> to vector<8x8xf32>
    %378 = vector.shape_cast %377 : vector<8x8xf32> to vector<8x8x1xf32>
    %379 = vector.broadcast %378 : vector<8x8x1xf32> to vector<8x8x8xf32>
    %380 = arith.cmpf oge, %376, %379 : vector<8x8x8xf32>
    %c8_i32_90 = arith.constant 8 : i32
    %381 = vector.broadcast %c8_i32_90 : i32 to vector<8x8x8xi32>
    %382 = arith.select %380, %300, %381 : vector<8x8x8xi1>, vector<8x8x8xi32>
    %cst_91 = arith.constant dense<2147483647> : vector<8x8xi32>
    %383 = vector.multi_reduction <minsi>, %382, %cst_91 [2] : vector<8x8x8xi32> to vector<8x8xi32>
    %c4_i32 = arith.constant 4 : i32
    %384 = vector.broadcast %c4_i32 : i32 to vector<8x1xi32>
    %385 = arith.cmpi sgt, %297, %384 : vector<8x1xi32>
    %386 = vector.shape_cast %385 : vector<8x1xi1> to vector<8x1xi1>
    %387 = vector.broadcast %386 : vector<8x1xi1> to vector<8x8xi1>
    %388 = arith.select %387, %377, %367 : vector<8x8xi1>, vector<8x8xf32>
    %389 = vector.extract_strided_slice %296 {offsets = [40, 0], sizes = [8, 8], strides = [1, 1]} : vector<64x8xf32> to vector<8x8xf32>
    %390 = vector.shape_cast %388 : vector<8x8xf32> to vector<8x1x8xf32>
    %391 = vector.shape_cast %298 : vector<8x8xf32> to vector<1x8x8xf32>
    %392 = vector.broadcast %390 : vector<8x1x8xf32> to vector<8x8x8xf32>
    %393 = vector.broadcast %391 : vector<1x8x8xf32> to vector<8x8x8xf32>
    %394 = arith.addf %392, %393 : vector<8x8x8xf32>
    %395 = vector.shape_cast %389 : vector<8x8xf32> to vector<8x8x1xf32>
    %396 = vector.broadcast %395 : vector<8x8x1xf32> to vector<8x8x8xf32>
    %397 = arith.addf %394, %396 : vector<8x8x8xf32>
    %cst_92 = arith.constant dense<0xFF800000> : vector<8x8xf32>
    %398 = vector.multi_reduction <maximumf>, %397, %cst_92 [2] : vector<8x8x8xf32> to vector<8x8xf32>
    %399 = vector.shape_cast %398 : vector<8x8xf32> to vector<8x8x1xf32>
    %400 = vector.broadcast %399 : vector<8x8x1xf32> to vector<8x8x8xf32>
    %401 = arith.cmpf oge, %397, %400 : vector<8x8x8xf32>
    %c8_i32_93 = arith.constant 8 : i32
    %402 = vector.broadcast %c8_i32_93 : i32 to vector<8x8x8xi32>
    %403 = arith.select %401, %300, %402 : vector<8x8x8xi1>, vector<8x8x8xi32>
    %cst_94 = arith.constant dense<2147483647> : vector<8x8xi32>
    %404 = vector.multi_reduction <minsi>, %403, %cst_94 [2] : vector<8x8x8xi32> to vector<8x8xi32>
    %c5_i32 = arith.constant 5 : i32
    %405 = vector.broadcast %c5_i32 : i32 to vector<8x1xi32>
    %406 = arith.cmpi sgt, %297, %405 : vector<8x1xi32>
    %407 = vector.shape_cast %406 : vector<8x1xi1> to vector<8x1xi1>
    %408 = vector.broadcast %407 : vector<8x1xi1> to vector<8x8xi1>
    %409 = arith.select %408, %398, %388 : vector<8x8xi1>, vector<8x8xf32>
    %410 = vector.extract_strided_slice %296 {offsets = [48, 0], sizes = [8, 8], strides = [1, 1]} : vector<64x8xf32> to vector<8x8xf32>
    %411 = vector.shape_cast %409 : vector<8x8xf32> to vector<8x1x8xf32>
    %412 = vector.shape_cast %298 : vector<8x8xf32> to vector<1x8x8xf32>
    %413 = vector.broadcast %411 : vector<8x1x8xf32> to vector<8x8x8xf32>
    %414 = vector.broadcast %412 : vector<1x8x8xf32> to vector<8x8x8xf32>
    %415 = arith.addf %413, %414 : vector<8x8x8xf32>
    %416 = vector.shape_cast %410 : vector<8x8xf32> to vector<8x8x1xf32>
    %417 = vector.broadcast %416 : vector<8x8x1xf32> to vector<8x8x8xf32>
    %418 = arith.addf %415, %417 : vector<8x8x8xf32>
    %cst_95 = arith.constant dense<0xFF800000> : vector<8x8xf32>
    %419 = vector.multi_reduction <maximumf>, %418, %cst_95 [2] : vector<8x8x8xf32> to vector<8x8xf32>
    %420 = vector.shape_cast %419 : vector<8x8xf32> to vector<8x8x1xf32>
    %421 = vector.broadcast %420 : vector<8x8x1xf32> to vector<8x8x8xf32>
    %422 = arith.cmpf oge, %418, %421 : vector<8x8x8xf32>
    %c8_i32_96 = arith.constant 8 : i32
    %423 = vector.broadcast %c8_i32_96 : i32 to vector<8x8x8xi32>
    %424 = arith.select %422, %300, %423 : vector<8x8x8xi1>, vector<8x8x8xi32>
    %cst_97 = arith.constant dense<2147483647> : vector<8x8xi32>
    %425 = vector.multi_reduction <minsi>, %424, %cst_97 [2] : vector<8x8x8xi32> to vector<8x8xi32>
    %c6_i32 = arith.constant 6 : i32
    %426 = vector.broadcast %c6_i32 : i32 to vector<8x1xi32>
    %427 = arith.cmpi sgt, %297, %426 : vector<8x1xi32>
    %428 = vector.shape_cast %427 : vector<8x1xi1> to vector<8x1xi1>
    %429 = vector.broadcast %428 : vector<8x1xi1> to vector<8x8xi1>
    %430 = arith.select %429, %419, %409 : vector<8x8xi1>, vector<8x8xf32>
    %431 = vector.extract_strided_slice %296 {offsets = [56, 0], sizes = [8, 8], strides = [1, 1]} : vector<64x8xf32> to vector<8x8xf32>
    %432 = vector.shape_cast %430 : vector<8x8xf32> to vector<8x1x8xf32>
    %433 = vector.shape_cast %298 : vector<8x8xf32> to vector<1x8x8xf32>
    %434 = vector.broadcast %432 : vector<8x1x8xf32> to vector<8x8x8xf32>
    %435 = vector.broadcast %433 : vector<1x8x8xf32> to vector<8x8x8xf32>
    %436 = arith.addf %434, %435 : vector<8x8x8xf32>
    %437 = vector.shape_cast %431 : vector<8x8xf32> to vector<8x8x1xf32>
    %438 = vector.broadcast %437 : vector<8x8x1xf32> to vector<8x8x8xf32>
    %439 = arith.addf %436, %438 : vector<8x8x8xf32>
    %cst_98 = arith.constant dense<0xFF800000> : vector<8x8xf32>
    %440 = vector.multi_reduction <maximumf>, %439, %cst_98 [2] : vector<8x8x8xf32> to vector<8x8xf32>
    %441 = vector.shape_cast %440 : vector<8x8xf32> to vector<8x8x1xf32>
    %442 = vector.broadcast %441 : vector<8x8x1xf32> to vector<8x8x8xf32>
    %443 = arith.cmpf oge, %439, %442 : vector<8x8x8xf32>
    %c8_i32_99 = arith.constant 8 : i32
    %444 = vector.broadcast %c8_i32_99 : i32 to vector<8x8x8xi32>
    %445 = arith.select %443, %300, %444 : vector<8x8x8xi1>, vector<8x8x8xi32>
    %cst_100 = arith.constant dense<2147483647> : vector<8x8xi32>
    %446 = vector.multi_reduction <minsi>, %445, %cst_100 [2] : vector<8x8x8xi32> to vector<8x8xi32>
    %c7_i32 = arith.constant 7 : i32
    %447 = vector.broadcast %c7_i32 : i32 to vector<8x1xi32>
    %448 = arith.cmpi sgt, %297, %447 : vector<8x1xi32>
    %449 = vector.shape_cast %448 : vector<8x1xi1> to vector<8x1xi1>
    %450 = vector.broadcast %449 : vector<8x1xi1> to vector<8x8xi1>
    %451 = arith.select %450, %440, %430 : vector<8x8xi1>, vector<8x8xf32>
    %c0_101 = arith.constant 0 : index
    %c0_102 = arith.constant 0 : index
    %452 = vector.load %arg10[%c0_101, %c0_102] : memref<1x8xf32, #tpu.memory_space<vmem>>, vector<1x8xf32>
    %453 = vector.broadcast %452 : vector<1x8xf32> to vector<8x8xf32>
    %454 = arith.addf %451, %453 : vector<8x8xf32>
    %cst_103 = arith.constant dense<0xFF800000> : vector<8xf32>
    %455 = vector.multi_reduction <maximumf>, %454, %cst_103 [1] : vector<8x8xf32> to vector<8xf32>
    %456 = vector.shape_cast %455 : vector<8xf32> to vector<8x1xf32>
    %457 = vector.broadcast %456 : vector<8x1xf32> to vector<8x8xf32>
    %458 = arith.cmpf oge, %454, %457 : vector<8x8xf32>
    %c8_i32_104 = arith.constant 8 : i32
    %459 = vector.broadcast %c8_i32_104 : i32 to vector<8x8xi32>
    %460 = arith.select %458, %299, %459 : vector<8x8xi1>, vector<8x8xi32>
    %cst_105 = arith.constant dense<2147483647> : vector<8xi32>
    %461 = vector.multi_reduction <minsi>, %460, %cst_105 [1] : vector<8x8xi32> to vector<8xi32>
    %462 = vector.shape_cast %461 : vector<8xi32> to vector<8x1xi32>
    %c0_i32 = arith.constant 0 : i32
    %463 = vector.broadcast %c0_i32 : i32 to vector<8x1xi32>
    %c8_i32_106 = arith.constant 8 : i32
    %464 = vector.broadcast %c8_i32_106 : i32 to vector<8x1xi32>
    %465 = arith.cmpi eq, %297, %464 : vector<8x1xi32>
    %466 = arith.select %465, %462, %463 : vector<8x1xi1>, vector<8x1xi32>
    %c7_i32_107 = arith.constant 7 : i32
    %467 = vector.broadcast %c7_i32_107 : i32 to vector<8x1xi32>
    %468 = arith.cmpi sgt, %297, %467 : vector<8x1xi32>
    %c0_i32_108 = arith.constant 0 : i32
    %469 = vector.broadcast %c0_i32_108 : i32 to vector<8x1xi32>
    %470 = arith.select %468, %466, %469 : vector<8x1xi1>, vector<8x1xi32>
    %471 = vector.broadcast %470 : vector<8x1xi32> to vector<8x8xi32>
    %472 = arith.cmpi eq, %299, %471 : vector<8x8xi32>
    %c0_i32_109 = arith.constant 0 : i32
    %473 = vector.broadcast %c0_i32_109 : i32 to vector<8x8xi32>
    %474 = arith.select %472, %446, %473 : vector<8x8xi1>, vector<8x8xi32>
    %cst_110 = arith.constant dense<0> : vector<8xi32>
    %475 = vector.multi_reduction <add>, %474, %cst_110 [1] : vector<8x8xi32> to vector<8xi32>
    %476 = vector.shape_cast %475 : vector<8xi32> to vector<8x1xi32>
    %c7_i32_111 = arith.constant 7 : i32
    %477 = vector.broadcast %c7_i32_111 : i32 to vector<8x1xi32>
    %478 = arith.cmpi eq, %297, %477 : vector<8x1xi32>
    %479 = arith.select %478, %462, %476 : vector<8x1xi1>, vector<8x1xi32>
    %c6_i32_112 = arith.constant 6 : i32
    %480 = vector.broadcast %c6_i32_112 : i32 to vector<8x1xi32>
    %481 = arith.cmpi sgt, %297, %480 : vector<8x1xi32>
    %c0_i32_113 = arith.constant 0 : i32
    %482 = vector.broadcast %c0_i32_113 : i32 to vector<8x1xi32>
    %483 = arith.select %481, %479, %482 : vector<8x1xi1>, vector<8x1xi32>
    %484 = vector.broadcast %483 : vector<8x1xi32> to vector<8x8xi32>
    %485 = arith.cmpi eq, %299, %484 : vector<8x8xi32>
    %c0_i32_114 = arith.constant 0 : i32
    %486 = vector.broadcast %c0_i32_114 : i32 to vector<8x8xi32>
    %487 = arith.select %485, %425, %486 : vector<8x8xi1>, vector<8x8xi32>
    %cst_115 = arith.constant dense<0> : vector<8xi32>
    %488 = vector.multi_reduction <add>, %487, %cst_115 [1] : vector<8x8xi32> to vector<8xi32>
    %489 = vector.shape_cast %488 : vector<8xi32> to vector<8x1xi32>
    %c6_i32_116 = arith.constant 6 : i32
    %490 = vector.broadcast %c6_i32_116 : i32 to vector<8x1xi32>
    %491 = arith.cmpi eq, %297, %490 : vector<8x1xi32>
    %492 = arith.select %491, %462, %489 : vector<8x1xi1>, vector<8x1xi32>
    %c5_i32_117 = arith.constant 5 : i32
    %493 = vector.broadcast %c5_i32_117 : i32 to vector<8x1xi32>
    %494 = arith.cmpi sgt, %297, %493 : vector<8x1xi32>
    %c0_i32_118 = arith.constant 0 : i32
    %495 = vector.broadcast %c0_i32_118 : i32 to vector<8x1xi32>
    %496 = arith.select %494, %492, %495 : vector<8x1xi1>, vector<8x1xi32>
    %497 = vector.broadcast %496 : vector<8x1xi32> to vector<8x8xi32>
    %498 = arith.cmpi eq, %299, %497 : vector<8x8xi32>
    %c0_i32_119 = arith.constant 0 : i32
    %499 = vector.broadcast %c0_i32_119 : i32 to vector<8x8xi32>
    %500 = arith.select %498, %404, %499 : vector<8x8xi1>, vector<8x8xi32>
    %cst_120 = arith.constant dense<0> : vector<8xi32>
    %501 = vector.multi_reduction <add>, %500, %cst_120 [1] : vector<8x8xi32> to vector<8xi32>
    %502 = vector.shape_cast %501 : vector<8xi32> to vector<8x1xi32>
    %c5_i32_121 = arith.constant 5 : i32
    %503 = vector.broadcast %c5_i32_121 : i32 to vector<8x1xi32>
    %504 = arith.cmpi eq, %297, %503 : vector<8x1xi32>
    %505 = arith.select %504, %462, %502 : vector<8x1xi1>, vector<8x1xi32>
    %c4_i32_122 = arith.constant 4 : i32
    %506 = vector.broadcast %c4_i32_122 : i32 to vector<8x1xi32>
    %507 = arith.cmpi sgt, %297, %506 : vector<8x1xi32>
    %c0_i32_123 = arith.constant 0 : i32
    %508 = vector.broadcast %c0_i32_123 : i32 to vector<8x1xi32>
    %509 = arith.select %507, %505, %508 : vector<8x1xi1>, vector<8x1xi32>
    %510 = vector.broadcast %509 : vector<8x1xi32> to vector<8x8xi32>
    %511 = arith.cmpi eq, %299, %510 : vector<8x8xi32>
    %c0_i32_124 = arith.constant 0 : i32
    %512 = vector.broadcast %c0_i32_124 : i32 to vector<8x8xi32>
    %513 = arith.select %511, %383, %512 : vector<8x8xi1>, vector<8x8xi32>
    %cst_125 = arith.constant dense<0> : vector<8xi32>
    %514 = vector.multi_reduction <add>, %513, %cst_125 [1] : vector<8x8xi32> to vector<8xi32>
    %515 = vector.shape_cast %514 : vector<8xi32> to vector<8x1xi32>
    %c4_i32_126 = arith.constant 4 : i32
    %516 = vector.broadcast %c4_i32_126 : i32 to vector<8x1xi32>
    %517 = arith.cmpi eq, %297, %516 : vector<8x1xi32>
    %518 = arith.select %517, %462, %515 : vector<8x1xi1>, vector<8x1xi32>
    %c3_i32_127 = arith.constant 3 : i32
    %519 = vector.broadcast %c3_i32_127 : i32 to vector<8x1xi32>
    %520 = arith.cmpi sgt, %297, %519 : vector<8x1xi32>
    %c0_i32_128 = arith.constant 0 : i32
    %521 = vector.broadcast %c0_i32_128 : i32 to vector<8x1xi32>
    %522 = arith.select %520, %518, %521 : vector<8x1xi1>, vector<8x1xi32>
    %523 = vector.broadcast %522 : vector<8x1xi32> to vector<8x8xi32>
    %524 = arith.cmpi eq, %299, %523 : vector<8x8xi32>
    %c0_i32_129 = arith.constant 0 : i32
    %525 = vector.broadcast %c0_i32_129 : i32 to vector<8x8xi32>
    %526 = arith.select %524, %362, %525 : vector<8x8xi1>, vector<8x8xi32>
    %cst_130 = arith.constant dense<0> : vector<8xi32>
    %527 = vector.multi_reduction <add>, %526, %cst_130 [1] : vector<8x8xi32> to vector<8xi32>
    %528 = vector.shape_cast %527 : vector<8xi32> to vector<8x1xi32>
    %c3_i32_131 = arith.constant 3 : i32
    %529 = vector.broadcast %c3_i32_131 : i32 to vector<8x1xi32>
    %530 = arith.cmpi eq, %297, %529 : vector<8x1xi32>
    %531 = arith.select %530, %462, %528 : vector<8x1xi1>, vector<8x1xi32>
    %c2_i32_132 = arith.constant 2 : i32
    %532 = vector.broadcast %c2_i32_132 : i32 to vector<8x1xi32>
    %533 = arith.cmpi sgt, %297, %532 : vector<8x1xi32>
    %c0_i32_133 = arith.constant 0 : i32
    %534 = vector.broadcast %c0_i32_133 : i32 to vector<8x1xi32>
    %535 = arith.select %533, %531, %534 : vector<8x1xi1>, vector<8x1xi32>
    %536 = vector.broadcast %535 : vector<8x1xi32> to vector<8x8xi32>
    %537 = arith.cmpi eq, %299, %536 : vector<8x8xi32>
    %c0_i32_134 = arith.constant 0 : i32
    %538 = vector.broadcast %c0_i32_134 : i32 to vector<8x8xi32>
    %539 = arith.select %537, %341, %538 : vector<8x8xi1>, vector<8x8xi32>
    %cst_135 = arith.constant dense<0> : vector<8xi32>
    %540 = vector.multi_reduction <add>, %539, %cst_135 [1] : vector<8x8xi32> to vector<8xi32>
    %541 = vector.shape_cast %540 : vector<8xi32> to vector<8x1xi32>
    %c2_i32_136 = arith.constant 2 : i32
    %542 = vector.broadcast %c2_i32_136 : i32 to vector<8x1xi32>
    %543 = arith.cmpi eq, %297, %542 : vector<8x1xi32>
    %544 = arith.select %543, %462, %541 : vector<8x1xi1>, vector<8x1xi32>
    %c1_i32_137 = arith.constant 1 : i32
    %545 = vector.broadcast %c1_i32_137 : i32 to vector<8x1xi32>
    %546 = arith.cmpi sgt, %297, %545 : vector<8x1xi32>
    %c0_i32_138 = arith.constant 0 : i32
    %547 = vector.broadcast %c0_i32_138 : i32 to vector<8x1xi32>
    %548 = arith.select %546, %544, %547 : vector<8x1xi1>, vector<8x1xi32>
    %549 = vector.broadcast %548 : vector<8x1xi32> to vector<8x8xi32>
    %550 = arith.cmpi eq, %299, %549 : vector<8x8xi32>
    %c0_i32_139 = arith.constant 0 : i32
    %551 = vector.broadcast %c0_i32_139 : i32 to vector<8x8xi32>
    %552 = arith.select %550, %320, %551 : vector<8x8xi1>, vector<8x8xi32>
    %cst_140 = arith.constant dense<0> : vector<8xi32>
    %553 = vector.multi_reduction <add>, %552, %cst_140 [1] : vector<8x8xi32> to vector<8xi32>
    %554 = vector.shape_cast %553 : vector<8xi32> to vector<8x1xi32>
    %c1_i32_141 = arith.constant 1 : i32
    %555 = vector.broadcast %c1_i32_141 : i32 to vector<8x1xi32>
    %556 = arith.cmpi eq, %297, %555 : vector<8x1xi32>
    %557 = arith.select %556, %462, %554 : vector<8x1xi1>, vector<8x1xi32>
    %c0_i32_142 = arith.constant 0 : i32
    %558 = vector.broadcast %c0_i32_142 : i32 to vector<8x1xi32>
    %559 = arith.cmpi sgt, %297, %558 : vector<8x1xi32>
    %c0_i32_143 = arith.constant 0 : i32
    %560 = vector.broadcast %c0_i32_143 : i32 to vector<8x1xi32>
    %561 = arith.select %559, %557, %560 : vector<8x1xi1>, vector<8x1xi32>
    %562 = tpu.concatenate %561, %548, %535, %522, %509, %496, %483, %470 in 1 : vector<8x1xi32>, vector<8x1xi32>, vector<8x1xi32>, vector<8x1xi32>, vector<8x1xi32>, vector<8x1xi32>, vector<8x1xi32>, vector<8x1xi32> -> vector<8x8xi32>
    %c0_144 = arith.constant 0 : index
    %c0_145 = arith.constant 0 : index
    %563 = vector.load %arg12[%c0_144, %c0_145] : memref<8x8xi32, #tpu.memory_space<vmem>>, vector<8x8xi32>
    tpu.vector_store %arg12[%c0_144, %c0_145], %562 {strides = array<i32>} : memref<8x8xi32, #tpu.memory_space<vmem>>, vector<8x8xi32>,
    return
  }
  func.func @transform_0(%arg0: i32) -> (i32, i32) {
    %c0_i32 = arith.constant 0 : i32
    %c0_i32_0 = arith.constant 0 : i32
    return %arg0, %c0_i32 : i32, i32
  }
  func.func @transform_1(%arg0: i32) -> (i32, i32) {
    %c0_i32 = arith.constant 0 : i32
    %c0_i32_0 = arith.constant 0 : i32
    return %arg0, %c0_i32 : i32, i32
  }
  func.func @transform_2(%arg0: i32) -> (i32, i32) {
    %c0_i32 = arith.constant 0 : i32
    %c0_i32_0 = arith.constant 0 : i32
    return %arg0, %c0_i32 : i32, i32
  }
  func.func @transform_3(%arg0: i32) -> (i32, i32) {
    %c0_i32 = arith.constant 0 : i32
    %c0_i32_0 = arith.constant 0 : i32
    %c0_i32_1 = arith.constant 0 : i32
    return %c0_i32, %c0_i32_0 : i32, i32
  }
  func.func @transform_4(%arg0: i32) -> (i32, i32) {
    %c0_i32 = arith.constant 0 : i32
    %c0_i32_0 = arith.constant 0 : i32
    %c0_i32_1 = arith.constant 0 : i32
    return %c0_i32, %c0_i32_0 : i32, i32
  }
  func.func @transform_5(%arg0: i32) -> (i32, i32) {
    %c0_i32 = arith.constant 0 : i32
    %c0_i32_0 = arith.constant 0 : i32
    %c0_i32_1 = arith.constant 0 : i32
    return %c0_i32, %c0_i32_0 : i32, i32
  }
  func.func @transform_6(%arg0: i32) -> (i32, i32) {
    %c0_i32 = arith.constant 0 : i32
    %c0_i32_0 = arith.constant 0 : i32
    %c0_i32_1 = arith.constant 0 : i32
    return %c0_i32, %c0_i32_0 : i32, i32
  }
  func.func @transform_7(%arg0: i32) -> (i32, i32) {
    %c0_i32 = arith.constant 0 : i32
    %c0_i32_0 = arith.constant 0 : i32
    %c0_i32_1 = arith.constant 0 : i32
    return %c0_i32, %c0_i32_0 : i32, i32
  }
  func.func @transform_8(%arg0: i32) -> (i32, i32) {
    %c0_i32 = arith.constant 0 : i32
    %c0_i32_0 = arith.constant 0 : i32
    %c0_i32_1 = arith.constant 0 : i32
    return %c0_i32, %c0_i32_0 : i32, i32
  }
  func.func @transform_9(%arg0: i32) -> (i32, i32) {
    %c0_i32 = arith.constant 0 : i32
    %c0_i32_0 = arith.constant 0 : i32
    %c0_i32_1 = arith.constant 0 : i32
    return %c0_i32, %c0_i32_0 : i32, i32
  }
  func.func @transform_10(%arg0: i32) -> (i32, i32) {
    %c0_i32 = arith.constant 0 : i32
    %c0_i32_0 = arith.constant 0 : i32
    %c0_i32_1 = arith.constant 0 : i32
    return %c0_i32, %c0_i32_0 : i32, i32
  }
  func.func @transform_11(%arg0: i32) -> (i32, i32) {
    %c0_i32 = arith.constant 0 : i32
    %c0_i32_0 = arith.constant 0 : i32
    return %arg0, %c0_i32 : i32, i32
  }
}

</mosaic_0001>

<bundles_post_ra>
// kernel: bilstm_crf_forward.1
= control target key start
LH: loop header
LB: loop body
LE: loop exit
PB: predicated region body
PF: predicated region fallthrough
CT: control target
= control target key end

     0   :  { %v6196_v0 = vmov 0   ;;  %v39_v42 = vlaneseq  ;;  %v3774_v58 = vmov 0.0   ;;  %vm203_vm6 = vcmask 523264   ;;  %s3778_s30 = smov 3   ;;  %s3780_s12 = smov 7   ;;  %s6184_s1 = inlined_call_operand.vmem [shape: s32[64,1], index: 1, kind: input, shape index: {}]   ;;  %s6185_s0 = inlined_call_operand.vmem [shape: s32[64,1], index: 0, kind: input, shape index: {}]   ;;  %s6186_s3 = inlined_call_operand.vmem [shape: bf16[64,256], index: 3, kind: input, shape index: {}]   ;;  %s6187_s5 = inlined_call_operand.vmem [shape: bf16[64,256], index: 5, kind: input, shape index: {}]   ;;  %s6188_s4 = inlined_call_operand.vmem [shape: f32[1,256], index: 4, kind: input, shape index: {}]   ;;  %s6189_s2 = inlined_call_operand.vmem [shape: s32[8,1], index: 2, kind: input, shape index: {}]   ;;  %s6190_s6 = inlined_call_operand.vmem [shape: bf16[64,8], index: 6, kind: input, shape index: {}]   ;;  %s6191_s7 = inlined_call_operand.vmem [shape: f32[1,8], index: 7, kind: input, shape index: {}]   ;;  %s6192_s8 = inlined_call_operand.vmem [shape: f32[1,8], index: 8, kind: input, shape index: {}]   ;;  %s6193_s10 = inlined_call_operand.vmem [shape: f32[8,8], index: 10, kind: input, shape index: {}]   ;;  %s6194_s9 = inlined_call_operand.vmem [shape: f32[1,8], index: 9, kind: input, shape index: {}]   ;;  %s6195_s11 = inlined_call_operand.vmem [shape: s32[8,8], index: 11, kind: output, shape index: {}]  }
   0x1   :  { %3661 = vset.pattern.permute.xlu2 %v6196_v0  ;;  %3660 = vset.pattern.permute.xlu1 %v6196_v0  ;;  %v85_v1 = vld [vmem:[%s6184_s1 + $0x20] sm:$0xff]  ;;  %v86_v4 = vld [vmem:[%s6184_s1 + $0x28] sm:$0xff]  ;;  %v47_v9 = vld [vmem:[%s6185_s0 + $0x30] sm:$0xff]  ;;  %s3781_s13 = smov 6   ;;  %s3782_s14 = smov 5  }
   0x2   :  { %v45_v2 = vld [vmem:[%s6185_s0 + $0x20] sm:$0xff]  ;;  %3659 = vset.pattern.permute.xlu0 %v6196_v0  ;;  %102 = vperm.xlu1 %3660, %v85_v1   ;;  %v46_v5 = vld [vmem:[%s6185_s0 + $0x28] sm:$0xff]  ;;  %v87_v10 = vld [vmem:[%s6184_s1 + $0x30] sm:$0xff]  ;;  %v3965_v47 = vand.u32 127, %v39_v42 }
   0x3   :  { %v41_v3 = vld [vmem:[%s6185_s0] sm:$0xff]  ;;  %62 = vperm.xlu0 %3659, %v45_v2   ;;  %v42_v6 = vld [vmem:[%s6185_s0 + $0x8] sm:$0xff]  ;;  %v48_v11 = vld [vmem:[%s6185_s0 + $0x38] sm:$0xff] }
   0x4   :  { %50 = vperm.xlu2 %3661, %v41_v3   ;;  %v82_v7 = vld [vmem:[%s6184_s1 + $0x8] sm:$0xff]  ;;  %v81_v8 = vld [vmem:[%s6184_s1] sm:$0xff]  ;;  %v88_v12 = vld [vmem:[%s6184_s1 + $0x38] sm:$0xff] }
   0x5   :  { %v44_v13 = vld [vmem:[%s6185_s0 + $0x18] sm:$0xff]  ;;  %v43_v14 = vld [vmem:[%s6185_s0 + $0x10] sm:$0xff]  ;;  %v3493_v20 = vld [vmem:[%s6186_s3 + $0x20] sm:$0xf] }
   0x6   :  { %v83_v15 = vld [vmem:[%s6184_s1 + $0x10] sm:$0xff]  ;;  %v84_v16 = vld [vmem:[%s6184_s1 + $0x18] sm:$0xff]  ;;  %v3618_v21 = vld [vmem:[%s6186_s3 + $0x24] sm:$0xf0] }
   0x7   :  { %v3501_v17 = vld [vmem:[%s6186_s3 + $0x30] sm:$0xf]  ;;  %v3620_v18 = vld [vmem:[%s6186_s3 + $0x34] sm:$0xf0]  ;;  %v3494_v22 = vor.u32 %v3618_v21, %v3493_v20  ;;  %v3477_v26 = vld [vmem:[%s6186_s3] sm:$0xf] }
   0x8   :  { %v3502_v19 = vor.u32 %v3620_v18, %v3501_v17  ;;  %v3485_v23 = vld [vmem:[%s6186_s3 + $0x10] sm:$0xf]  ;;  %v3616_v24 = vld [vmem:[%s6186_s3 + $0x14] sm:$0xf0]  ;;  %v3614_v27 = vld [vmem:[%s6186_s3 + $0x4] sm:$0xf0] }
   0x9   :  { %v3486_v25 = vor.u32 %v3616_v24, %v3485_v23  ;;  %v3478_v28 = vor.u32 %v3614_v27, %v3477_v26  ;;  %v3541_v29 = vld [vmem:[%s6187_s5 + $0x30] sm:$0xf]  ;;  %v3628_v30 = vld [vmem:[%s6187_s5 + $0x34] sm:$0xf0]  ;;  %v3533_v32 = vld [vmem:[%s6187_s5 + $0x20] sm:$0xf] }
   0xa   :  { %105 = vperm.xlu1 %3660, %v86_v4   ;;  %3638 = vmatpush.bf16.msra.mxu2 %v3502_v19  ;;  %v3924_v31 = vor.u32 %v3628_v30, %v3541_v29  ;;  %v3626_v33 = vld [vmem:[%s6187_s5 + $0x24] sm:$0xf0]  ;;  %v3525_v35 = vld [vmem:[%s6187_s5 + $0x10] sm:$0xf]  ;;  %v3624_v36 = vld [vmem:[%s6187_s5 + $0x14] sm:$0xf0] }
   0xb   :  { %65 = vperm.xlu0 %3659, %v46_v5   ;;  %220 = vmatpush.bf16.msra.mxu0 %v3502_v19  ;;  %v3934_v34 = vor.u32 %v3626_v33, %v3533_v32  ;;  %v3944_v37 = vor.u32 %v3624_v36, %v3525_v35  ;;  %v3517_v38 = vld [vmem:[%s6187_s5] sm:$0xf]  ;;  %v3622_v39 = vld [vmem:[%s6187_s5 + $0x4] sm:$0xf0]  ;;  %v3627_v45 = vld [vmem:[%s6187_s5 + $0x34] sm:$0xf] }
   0xc   :  { %53 = vperm.xlu2 %3661, %v42_v6   ;;  %3639 = vmatpush.bf16.msra.mxu3 %v3502_v19  ;;  %v3954_v40 = vor.u32 %v3622_v39, %v3517_v38  ;;  %v3543_v46 = vld [vmem:[%s6187_s5 + $0x38] sm:$0xf0]  ;;  %v3625_v49 = vld [vmem:[%s6187_s5 + $0x24] sm:$0xf]  ;;  %v3535_v50 = vld [vmem:[%s6187_s5 + $0x28] sm:$0xf0] }
   0xd   :  { %3637 = vmatpush.bf16.msra.mxu1 %v3502_v19  ;;  %v3967_v48 = vor.u32 %v3627_v45, %v3543_v46  ;;  %v3976_v52 = vor.u32 %v3625_v49, %v3535_v50  ;;  %v3623_v55 = vld [vmem:[%s6187_s5 + $0x14] sm:$0xf]  ;;  %v3527_v56 = vld [vmem:[%s6187_s5 + $0x18] sm:$0xf0]  ;;  %v3621_v1 = vld [vmem:[%s6187_s5 + $0x4] sm:$0xf] }
   0xe   :  { %3641 = vmatpush.bf16.msra.mxu2 %v3494_v22  ;;  %v3989_v57 = vor.u32 %v3623_v55, %v3527_v56  ;;  %v3619_v62 = vld [vmem:[%s6186_s3 + $0x34] sm:$0xf]  ;;  %v3503_v63 = vld [vmem:[%s6186_s3 + $0x38] sm:$0xf0]  ;;  %v3519_v3 = vld [vmem:[%s6187_s5 + $0x8] sm:$0xf0] }
   0xf   :  { %221 = vmatpush.bf16.msra.mxu0 %v3494_v22  ;;  %v3506_v2 = vor.u32 %v3619_v62, %v3503_v63  ;;  %v4010_v5 = vor.u32 %v3621_v1, %v3519_v3  ;;  %v3617_v6 = vld [vmem:[%s6186_s3 + $0x24] sm:$0xf]  ;;  %v3479_v18 = vld [vmem:[%s6186_s3 + $0x8] sm:$0xf0]  ;;  %v157_v35 = vld [vmem:[%s6188_s4] sm:$0x3] }
  0x10   :  { %3642 = vmatpush.bf16.msra.mxu3 %v3494_v22  ;;  %v3613_v17 = vld [vmem:[%s6186_s3 + $0x4] sm:$0xf]  ;;  %v4090_v36 = vperm.slane %v157_v35, 0  ;;  %s3775_s4 = smov 64  }
  0x11   :  { %3640 = vmatpush.bf16.msra.mxu1 %v3494_v22  ;;  %v3482_v20 = vor.u32 %v3613_v17, %v3479_v18 }
  0x12   :  { %93 = vperm.xlu1 %3660, %v82_v7   ;;  %3644 = vmatpush.bf16.msra.mxu2 %v3486_v25  ;;  %v3495_v7 = vld [vmem:[%s6186_s3 + $0x28] sm:$0xf0] }
  0x13   :  { %90 = vperm.xlu0 %3659, %v81_v8   ;;  %222 = vmatpush.bf16.msra.mxu0 %v3486_v25 }
  0x14   :  { %68 = vperm.xlu2 %3661, %v47_v9   ;;  %3645 = vmatpush.bf16.msra.mxu3 %v3486_v25  ;;  %v3498_v9 = vor.u32 %v3617_v6, %v3495_v7 }
  0x15   :  { %3643 = vmatpush.bf16.msra.mxu1 %v3486_v25 }
  0x16   :  { %3647 = vmatpush.bf16.msra.mxu2 %v3478_v28 }
  0x17   :  { %223 = vmatpush.bf16.msra.mxu0 %v3478_v28 }
  0x18   :  { %3648 = vmatpush.bf16.msra.mxu3 %v3478_v28 }
  0x19   :  { %3646 = vmatpush.bf16.msra.mxu1 %v3478_v28 }
  0x1a   :  { %108 = vperm.xlu1 %3660, %v87_v10   ;;  %329 = vmatpush.bf16.msrb.mxu2 %v3924_v31 }
  0x1b   :  { %71 = vperm.xlu0 %3659, %v48_v11   ;;  %683 = vmatpush.bf16.msrb.mxu0 %v3924_v31  ;;  %v3615_v11 = vld [vmem:[%s6186_s3 + $0x14] sm:$0xf] }
  0x1c   :  { %111 = vperm.xlu2 %3661, %v88_v12   ;;  %342 = vmatpush.bf16.msrb.mxu3 %v3967_v48  ;;  %v3487_v12 = vld [vmem:[%s6186_s3 + $0x18] sm:$0xf0]  ;;  %s3777_s3 = smov 1  }
  0x1d   :  { %249 = vmatpush.bf16.msrb.mxu1 %v3506_v2 }
  0x1e   :  { %330 = vmatpush.bf16.msrb.mxu2 %v3934_v34 }
  0x1f   :  { %684 = vmatpush.bf16.msrb.mxu0 %v3934_v34 }
  0x20   :  { %343 = vmatpush.bf16.msrb.mxu3 %v3976_v52 }
  0x21   :  { %250 = vmatpush.bf16.msrb.mxu1 %v3498_v9 }
  0x22   :  { %59 = vperm.xlu1 %3660, %v44_v13   ;;  %331 = vmatpush.bf16.msrb.mxu2 %v3944_v37 }
  0x23   :  { %56 = vperm.xlu0 %3659, %v43_v14   ;;  %685 = vmatpush.bf16.msrb.mxu0 %v3944_v37 }
  0x24   :  { %96 = vperm.xlu2 %3661, %v83_v15   ;;  %344 = vmatpush.bf16.msrb.mxu3 %v3989_v57  ;;  %v3490_v15 = vor.u32 %v3615_v11, %v3487_v12 }
  0x26   :  { %332 = vmatpush.bf16.msrb.mxu2 %v3954_v40  ;;  %251 = vmatpush.bf16.msrb.mxu1 %v3490_v15 }
  0x27   :  { %686 = vmatpush.bf16.msrb.mxu0 %v3954_v40 }
  0x28   :  { %345 = vmatpush.bf16.msrb.mxu3 %v4010_v5 }
  0x2a   :  { %252 = vmatpush.bf16.msrb.mxu1 %v3482_v20 }
  0x2b   :  { %99 = vperm.xlu0 %3659, %v84_v16  }
  0x5e   :  { %v51_v41 = vpop.permute.xlu2 %50 }
  0x5f   :  { %vm73_vm9 = vcmp.eq.s32.totalorder %v51_v41, %v3965_v47 }
  0x66   :  { %v54_v51 = vpop.permute.xlu2 %53 }
  0x67   :  { %vm74_vm7 = vcmp.eq.s32.totalorder %v54_v51, %v3965_v47 }
  0x6e   :  { %v69_v4 = vpop.permute.xlu2 %68 }
  0x6f   :  { %vm79_vm13 = vcmp.eq.s32.totalorder %v69_v4, %v3965_v47  ;;  %v4111_v4 = vperm.slane %v157_v35, 1 }
  0x74   :  { %v103_v43 = vpop.permute.xlu1 %102 }
  0x75   :  { %v63_v44 = vpop.permute.xlu0 %62  ;;  %vm117_vm0 = vcmp.eq.s32.totalorder %v103_v43, %v3965_v47 }
  0x76   :  { %vm77_vm1 = vcmp.eq.s32.totalorder %v63_v44, %v3965_v47  ;;  %v112_v21 = vpop.permute.xlu2 %111 }
  0x77   :  { %vm125_vm2 = vmor %vm77_vm1, %vm117_vm0  ;;  %vm120_vm15 = vcmp.eq.s32.totalorder %v112_v21, %v3965_v47 }
  0x78   :  { %v3471_v59 = vsel %vm125_vm2, 1.0, %v3774_v58 }
  0x7c   :  { %v106_v53 = vpop.permute.xlu1 %105 }
  0x7d   :  { %vm118_vm3 = vcmp.eq.s32.totalorder %v106_v53, %v3965_v47  ;;  %v66_v54 = vpop.permute.xlu0 %65 }
  0x7e   :  { %vm78_vm4 = vcmp.eq.s32.totalorder %v66_v54, %v3965_v47  ;;  %v97_v27 = vpop.permute.xlu2 %96 }
  0x7f   :  { %vm126_vm5 = vmor %vm78_vm4, %vm118_vm3  ;;  %vm115_vm4 = vcmp.eq.s32.totalorder %v97_v27, %v3965_v47 }
  0x80   :  { %v3472_v60 = vsel %vm126_vm5, 1.0, %v3774_v58 }
  0x81   :  { %v3994_v61 = vpack.c.bf16 %v3472_v60, %v3471_v59 }
  0x83   :  { %3509 = vmatmul.msk.bf16.vlgmr.msra.gmra.mxu2 %vm203_vm6, %v3994_v61 }
  0x84   :  { %v94_v8 = vpop.permute.xlu1 %93  ;;  %419 = vmatpush.bf16.msra.mxu2 %v3924_v31 }
  0x85   :  { %vm114_vm8 = vcmp.eq.s32.totalorder %v94_v8, %v3965_v47  ;;  %v91_v10 = vpop.permute.xlu0 %90 }
  0x86   :  { %vm122_vm10 = vmor %vm74_vm7, %vm114_vm8  ;;  %vm113_vm11 = vcmp.eq.s32.totalorder %v91_v10, %v3965_v47 }
  0x87   :  { %v3468_v13 = vsel %vm122_vm10, 1.0, %v3774_v58  ;;  %vm121_vm12 = vmor %vm73_vm9, %vm113_vm11 }
  0x88   :  { %v3467_v14 = vsel %vm121_vm12, 1.0, %v3774_v58  ;;  %420 = vmatpush.bf16.msra.mxu2 %v3934_v34 }
  0x89   :  { %v145_v16 = vpack.c.bf16 %v3468_v13, %v3467_v14 }
  0x8b   :  { %3507 = vmatmul.msk.bf16.vlgmr.msra.gmra.mxu0 %vm203_vm6, %v145_v16 }
  0x8c   :  { %v109_v19 = vpop.permute.xlu1 %108  ;;  %421 = vmatpush.bf16.msra.mxu2 %v3944_v37  ;;  %859 = vmatpush.bf16.msra.mxu0 %v3924_v31 }
  0x8d   :  { %vm119_vm14 = vcmp.eq.s32.totalorder %v109_v19, %v3965_v47  ;;  %v72_v22 = vpop.permute.xlu0 %71 }
  0x8e   :  { %vm127_vm0 = vmor %vm79_vm13, %vm119_vm14  ;;  %vm80_vm1 = vcmp.eq.s32.totalorder %v72_v22, %v3965_v47 }
  0x8f   :  { %v3473_v23 = vsel %vm127_vm0, 1.0, %v3774_v58  ;;  %vm128_vm2 = vmor %vm80_vm1, %vm120_vm15 }
  0x90   :  { %v3474_v24 = vsel %vm128_vm2, 1.0, %v3774_v58  ;;  %422 = vmatpush.bf16.msra.mxu2 %v3954_v40  ;;  %860 = vmatpush.bf16.msra.mxu0 %v3934_v34 }
  0x91   :  { %v148_v25 = vpack.c.bf16 %v3474_v24, %v3473_v23 }
  0x93   :  { %3510 = vmatmul.msk.bf16.vlgmr.msra.gmra.mxu3 %vm203_vm6, %v148_v25  ;;  %333 = vmatmul.bf16.vlgmr.msrb.gmra.mxu2 %v6196_v0 }
  0x94   :  { %432 = vmatpush.bf16.msra.mxu3 %v3967_v48  ;;  %507 = vmatpush.bf16.msrb.mxu2 %v3924_v31  ;;  %v60_v28 = vpop.permute.xlu1 %59 }
  0x95   :  { %v57_v26 = vpop.permute.xlu0 %56  ;;  %861 = vmatpush.bf16.msra.mxu0 %v3944_v37  ;;  %vm76_vm7 = vcmp.eq.s32.totalorder %v60_v28, %v3965_v47 }
  0x96   :  { %vm75_vm3 = vcmp.eq.s32.totalorder %v57_v26, %v3965_v47 }
  0x97   :  { %vm123_vm5 = vmor %vm75_vm3, %vm115_vm4 }
  0x98   :  { %433 = vmatpush.bf16.msra.mxu3 %v3976_v52  ;;  %508 = vmatpush.bf16.msrb.mxu2 %v3934_v34  ;;  %v3469_v30 = vsel %vm123_vm5, 1.0, %v3774_v58 }
  0x99   :  { %862 = vmatpush.bf16.msra.mxu0 %v3954_v40 }
  0x9c   :  { %434 = vmatpush.bf16.msra.mxu3 %v3989_v57  ;;  %509 = vmatpush.bf16.msrb.mxu2 %v3944_v37 }
  0x9d   :  { %v100_v29 = vpop.permute.xlu0 %99 }
  0x9e   :  { %vm116_vm8 = vcmp.eq.s32.totalorder %v100_v29, %v3965_v47 }
  0x9f   :  { %vm124_vm9 = vmor %vm76_vm7, %vm116_vm8 }
  0xa0   :  { %v3470_v32 = vsel %vm124_vm9, 1.0, %v3774_v58  ;;  %435 = vmatpush.bf16.msra.mxu3 %v4010_v5  ;;  %510 = vmatpush.bf16.msrb.mxu2 %v3954_v40 }
  0xa1   :  { %v146_v33 = vpack.c.bf16 %v3470_v32, %v3469_v30 }
  0xa3   :  { %3508 = vmatmul.msk.bf16.vlgmr.msra.gmra.mxu1 %vm203_vm6, %v146_v33  ;;  %346 = vmatmul.bf16.vlgmr.msrb.gmra.mxu3 %v6196_v0 }
  0xa4   :  { %520 = vmatpush.bf16.msrb.mxu3 %v3967_v48  ;;  %696 = vmatpush.bf16.msra.mxu1 %v3967_v48 }
  0xa8   :  { %521 = vmatpush.bf16.msrb.mxu3 %v3976_v52  ;;  %697 = vmatpush.bf16.msra.mxu1 %v3976_v52 }
  0xac   :  { %522 = vmatpush.bf16.msrb.mxu3 %v3989_v57  ;;  %698 = vmatpush.bf16.msra.mxu1 %v3989_v57 }
  0xb0   :  { %523 = vmatpush.bf16.msrb.mxu3 %v4010_v5  ;;  %699 = vmatpush.bf16.msra.mxu1 %v4010_v5 }
  0xb3   :  { %3511 = vmatmul.msk.bf16.vlgmr.msrb.gmra.mxu1 %vm203_vm6, %v145_v16 }
  0xb4   :  { %872 = vmatpush.bf16.msrb.mxu1 %v3967_v48 }
  0xb8   :  { %873 = vmatpush.bf16.msrb.mxu1 %v3976_v52 }
  0xbc   :  { %874 = vmatpush.bf16.msrb.mxu1 %v3989_v57 }
  0xc0   :  { %875 = vmatpush.bf16.msrb.mxu1 %v4010_v5 }
  0xc3   :  { %3512 = vmatmul.msk.bf16.gmra.mxu1 %vm203_vm6, %v146_v33 }
  0xd3   :  { %3513 = vmatmul.msk.bf16.gmra.mxu1 %vm203_vm6, %v3994_v61 }
  0xe3   :  { %3514 = vmatmul.msk.bf16.gmra.mxu1 %vm203_vm6, %v148_v25 }
 0x106   :  { %v235_v38 = vpop.f32.mrf.mxu2 }
 0x107   :  { %v4093_v39 = vadd.f32 %v235_v38, %v4090_v36 }
 0x108   :  { %v225_v44 = vpop.f32.mrf.mxu0 }
 0x109   :  { %v226_v45 = vadd.f32 %v225_v44, %v4090_v36 }
 0x10e   :  { %v237_v41 = vpop.f32.mrf.mxu2 }
 0x10f   :  { %v4096_v43 = vadd.f32 %v237_v41, %v4090_v36 }
 0x116   :  { %v240_v46 = vpop.f32.mrf.mxu3  ;;  %v334_v49 = vpop.f32.mrf.mxu2 }
 0x117   :  { %v4100_v50 = vadd.f32 %v240_v46, %v4090_v36  ;;  %v335_v51 = vadd.f32 %v334_v49, %v226_v45 }
 0x119   :  { %v3547_v53 = vmul.f32 -1.442695, %v335_v51 }
 0x11b   :  { %3673 = vpow2.f32 %v3547_v53 }
 0x11e   :  { %v242_v54 = vpop.f32.mrf.mxu3  ;;  %v336_v55 = vpop.f32.mrf.mxu2 }
 0x11f   :  { %v4103_v56 = vadd.f32 %v242_v54, %v4090_v36 }
 0x120   :  { %v230_v58 = vpop.f32.mrf.mxu1 }
 0x121   :  { %v3674_v59 = vpop.eup %3673  ;;  %v4106_v60 = vadd.f32 %v230_v58, %v4090_v36 }
 0x122   :  { %v354_v61 = vadd.f32 1.0, %v3674_v59 }
 0x124   :  { %3675 = vrcp.f32 %v354_v61  ;;  %v366_v13 = vand.u32 2147483648, %v354_v61  ;;  %vm360_vm11 = vweird.f32 %v354_v61  ;;  %v364_v14 = vand.u32 2147483647, %v354_v61 }
 0x126   :  { %v347_v62 = vpop.f32.mrf.mxu3  ;;  %v367_v17 = vor.u32 1.1754944e-38, %v366_v13  ;;  %vm365_vm13 = vcmp.eq.f32.partialorder %v364_v14, 8.507059e+37 }
 0x128   :  { %v232_v63 = vpop.f32.mrf.mxu1 }
 0x129   :  { %v4109_v1 = vadd.f32 %v232_v63, %v4090_v36 }
 0x12a   :  { %v3676_v2 = vpop.eup %3675 }
 0x12b   :  { %v356_v3 = vmul.f32 %v3676_v2, %v354_v61  ;;  %vm361_vm10 = vweird.f32 %v3676_v2 }
 0x12c   :  { %vm362_vm12 = vmor %vm360_vm11, %vm361_vm10 }
 0x12d   :  { %v357_v6 = vsub.f32 1.0, %v356_v3  ;;  %v227_v3 = vpop.f32.mrf.mxu0 }
 0x12e   :  { %v349_v7 = vpop.f32.mrf.mxu3 }
 0x12f   :  { %v358_v9 = vmul.f32 %v3676_v2, %v357_v6  ;;  %v228_v6 = vadd.f32 %v227_v3, %v4090_v36 }
 0x130   :  { %v254_v8 = vpop.f32.mrf.mxu1 }
 0x131   :  { %v255_v10 = vadd.f32 %v254_v8, %v4111_v4  ;;  %v359_v12 = vadd.f32 %v3676_v2, %v358_v9 }
 0x133   :  { %v348_v11 = vadd.f32 %v347_v62, %v255_v10  ;;  %v363_v16 = vsel %vm362_vm12, %v3676_v2, %v359_v12 }
 0x134   :  { %v368_v19 = vsel %vm365_vm13, %v367_v17, %v363_v16 }
 0x135   :  { %3677 = vtanh.f32 %v348_v11  ;;  %v3548_v28 = vmul.f32 -1.442695, %v348_v11  ;;  %v390_v41 = vmul.f32 0.0, %v368_v19 }
 0x137   :  { %3679 = vpow2.f32 %v3548_v28 }
 0x138   :  { %v4114_v15 = vpop.f32.mrf.mxu1 }
 0x139   :  { %v257_v16 = vadd.f32 %v4114_v15, %v4111_v4 }
 0x13b   :  { %v3678_v18 = vpop.eup %3677 }
 0x13c   :  { %v391_v20 = vmul.f32 %v3678_v18, %v368_v19 }
 0x13d   :  { %v3680_v29 = vpop.eup %3679 }
 0x13e   :  { %393 = vrot.lane.b32.xlu1 %v391_v20, %s3775_s4  ;;  %v374_v30 = vadd.f32 1.0, %v3680_v29 }
 0x140   :  { %v4117_v21 = vpop.f32.mrf.mxu1  ;;  %3681 = vrcp.f32 %v374_v30  ;;  %v386_v49 = vand.u32 2147483648, %v374_v30  ;;  %vm380_vm15 = vweird.f32 %v374_v30  ;;  %v384_v51 = vand.u32 2147483647, %v374_v30 }
 0x142   :  { %v387_v54 = vor.u32 1.1754944e-38, %v386_v49  ;;  %vm385_vm1 = vcmp.eq.f32.partialorder %v384_v51, 8.507059e+37 }
 0x146   :  { %v3682_v32 = vpop.eup %3681 }
 0x147   :  { %v376_v33 = vmul.f32 %v3682_v32, %v374_v30  ;;  %vm381_vm14 = vweird.f32 %v3682_v32 }
 0x148   :  { %v4119_v22 = vpop.f32.mrf.mxu1  ;;  %vm382_vm0 = vmor %vm380_vm15, %vm381_vm14 }
 0x149   :  { %v377_v35 = vsub.f32 1.0, %v376_v33 }
 0x14b   :  { %v378_v38 = vmul.f32 %v3682_v32, %v377_v35 }
 0x14d   :  { %v379_v46 = vadd.f32 %v3682_v32, %v378_v38 }
 0x14f   :  { %v383_v53 = vsel %vm382_vm0, %v3682_v32, %v379_v46 }
 0x150   :  { %v4121_v23 = vpop.f32.mrf.mxu1  ;;  %v388_v58 = vsel %vm385_vm1, %v387_v54, %v383_v53 }
 0x158   :  { %v266_v24 = vpop.f32.mrf.mxu1 }
 0x159   :  { %v4124_v25 = vadd.f32 %v266_v24, %v4111_v4 }
 0x160   :  { %v269_v26 = vpop.f32.mrf.mxu1 }
 0x161   :  { %v4127_v27 = vadd.f32 %v269_v26, %v4111_v4 }
 0x1b0   :  { %v394_v44 = vpop.permute.xlu1 %393 }
 0x1b1   :  { %v4129_v45 = vadd.f32 %v394_v44, %v390_v41 }
 0x1b3   :  { %3683 = vtanh.f32 %v4129_v45 }
 0x1b9   :  { %v3684_v55 = vpop.eup %3683 }
 0x1ba   :  { %v398_v59 = vmul.f32 %v3684_v55, %v388_v58 }
 0x1bc   :  { %v4132_v61 = vpack.c.bf16 %v398_v59, %v398_v59 }
 0x1be   :  { %v408_v62 = vunpack.c.l.b16 %v4132_v61 }
 0x1c0   :  { %v409_v63 = vpack.c.b16 %v408_v62, %v408_v62 }
 0x1c2   :  { %410 = vrot.lane.b32.xlu2 %v409_v63, %s3775_s4 }
 0x21c   :  { %v411_v2 = vpop.permute.xlu2 %410 }
 0x21d   :  { %3549 = vmatmul.msk.bf16.vlgmr.msra.gmra.mxu2 %vm203_vm6, %v411_v2  ;;  %3550 = vmatmul.msk.bf16.vlgmr.msra.gmra.mxu3 %vm203_vm6, %v411_v2 }
 0x21e   :  { %595 = vmatpush.bf16.msra.mxu2 %v3924_v31  ;;  %608 = vmatpush.bf16.msra.mxu3 %v3967_v48 }
 0x222   :  { %596 = vmatpush.bf16.msra.mxu2 %v3934_v34  ;;  %609 = vmatpush.bf16.msra.mxu3 %v3976_v52 }
 0x226   :  { %597 = vmatpush.bf16.msra.mxu2 %v3944_v37  ;;  %610 = vmatpush.bf16.msra.mxu3 %v3989_v57 }
 0x22a   :  { %598 = vmatpush.bf16.msra.mxu2 %v3954_v40  ;;  %611 = vmatpush.bf16.msra.mxu3 %v4010_v5 }
 0x2a0   :  { %v424_v7 = vpop.f32.mrf.mxu2  ;;  %v437_v8 = vpop.f32.mrf.mxu3 }
 0x2a1   :  { %v425_v9 = vadd.f32 %v424_v7, %v228_v6  ;;  %v438_v18 = vadd.f32 %v437_v8, %v257_v16 }
 0x2a3   :  { %v3551_v10 = vmul.f32 -1.442695, %v425_v9  ;;  %v3552_v15 = vmul.f32 -1.442695, %v438_v18 }
 0x2a5   :  { %3685 = vpow2.f32 %v3551_v10 }
 0x2a8   :  { %v426_v11 = vpop.f32.mrf.mxu2  ;;  %v439_v12 = vpop.f32.mrf.mxu3 }
 0x2ab   :  { %v3686_v13 = vpop.eup %3685 }
 0x2ac   :  { %v444_v14 = vadd.f32 1.0, %v3686_v13 }
 0x2ae   :  { %3687 = vrcp.f32 %v444_v14  ;;  %v456_v24 = vand.u32 2147483648, %v444_v14  ;;  %v454_v26 = vand.u32 2147483647, %v444_v14  ;;  %vm450_vm3 = vweird.f32 %v444_v14 }
 0x2af   :  { %3689 = vtanh.f32 %v438_v18 }
 0x2b0   :  { %v457_v29 = vor.u32 1.1754944e-38, %v456_v24  ;;  %vm455_vm5 = vcmp.eq.f32.partialorder %v454_v26, 8.507059e+37  ;;  %3691 = vpow2.f32 %v3552_v15 }
 0x2b4   :  { %v3688_v17 = vpop.eup %3687 }
 0x2b5   :  { %v446_v19 = vmul.f32 %v3688_v17, %v444_v14  ;;  %vm451_vm2 = vweird.f32 %v3688_v17  ;;  %v3690_v32 = vpop.eup %3689 }
 0x2b6   :  { %vm452_vm4 = vmor %vm450_vm3, %vm451_vm2  ;;  %v3692_v38 = vpop.eup %3691 }
 0x2b7   :  { %v447_v20 = vsub.f32 1.0, %v446_v19  ;;  %v464_v41 = vadd.f32 1.0, %v3692_v38 }
 0x2b9   :  { %v448_v36 = vmul.f32 %v3688_v17, %v447_v20  ;;  %3693 = vrcp.f32 %v464_v41  ;;  %v476_v59 = vand.u32 2147483648, %v464_v41  ;;  %vm470_vm8 = vweird.f32 %v464_v41 }
 0x2ba   :  { %v474_v62 = vand.u32 2147483647, %v464_v41  ;;  %v260_v20 = vadd.f32 %v4117_v21, %v4111_v4 }
 0x2bb   :  { %v449_v28 = vadd.f32 %v3688_v17, %v448_v36  ;;  %v477_v2 = vor.u32 1.1754944e-38, %v476_v59 }
 0x2bc   :  { %vm475_vm10 = vcmp.eq.f32.partialorder %v474_v62, 8.507059e+37 }
 0x2bd   :  { %v453_v30 = vsel %vm452_vm4, %v3688_v17, %v449_v28 }
 0x2be   :  { %v458_v33 = vsel %vm455_vm5, %v457_v29, %v453_v30 }
 0x2bf   :  { %v481_v35 = vmul.f32 %v3690_v32, %v458_v33  ;;  %v3694_v44 = vpop.eup %3693  ;;  %v480_v53 = vmul.f32 %v458_v33, %v4129_v45 }
 0x2c0   :  { %v466_v46 = vmul.f32 %v3694_v44, %v464_v41  ;;  %vm471_vm7 = vweird.f32 %v3694_v44 }
 0x2c1   :  { %483 = vrot.lane.b32.xlu0 %v481_v35, %s3775_s4  ;;  %vm472_vm9 = vmor %vm470_vm8, %vm471_vm7 }
 0x2c2   :  { %v467_v49 = vsub.f32 1.0, %v466_v46 }
 0x2c4   :  { %v468_v51 = vmul.f32 %v3694_v44, %v467_v49 }
 0x2c6   :  { %v469_v58 = vadd.f32 %v3694_v44, %v468_v51 }
 0x2c8   :  { %v473_v63 = vsel %vm472_vm9, %v3694_v44, %v469_v58 }
 0x2c9   :  { %v478_v6 = vsel %vm475_vm10, %v477_v2, %v473_v63 }
 0x333   :  { %v484_v54 = vpop.permute.xlu0 %483 }
 0x334   :  { %v4151_v55 = vadd.f32 %v484_v54, %v480_v53 }
 0x336   :  { %3695 = vtanh.f32 %v4151_v55 }
 0x33c   :  { %v3696_v3 = vpop.eup %3695 }
 0x33d   :  { %v488_v7 = vmul.f32 %v3696_v3, %v478_v6 }
 0x33f   :  { %v4154_v8 = vpack.c.bf16 %v488_v7, %v488_v7 }
 0x341   :  { %v496_v45 = vunpack.c.l.b16 %v4154_v8 }
 0x343   :  { %v497_v9 = vpack.c.b16 %v496_v45, %v496_v45 }
 0x345   :  { %498 = vrot.lane.b32.xlu1 %v497_v9, %s3775_s4 }
 0x3b7   :  { %v499_v10 = vpop.permute.xlu1 %498 }
 0x3b8   :  { %3553 = vmatmul.msk.bf16.vlgmr.msrb.gmra.mxu2 %vm203_vm6, %v499_v10  ;;  %3554 = vmatmul.msk.bf16.vlgmr.msrb.gmra.mxu3 %vm203_vm6, %v499_v10 }
 0x3b9   :  { %771 = vmatpush.bf16.msrb.mxu2 %v3924_v31  ;;  %784 = vmatpush.bf16.msrb.mxu3 %v3967_v48 }
 0x3bd   :  { %772 = vmatpush.bf16.msrb.mxu2 %v3934_v34  ;;  %785 = vmatpush.bf16.msrb.mxu3 %v3976_v52 }
 0x3c1   :  { %773 = vmatpush.bf16.msrb.mxu2 %v3944_v37  ;;  %786 = vmatpush.bf16.msrb.mxu3 %v3989_v57 }
 0x3c5   :  { %774 = vmatpush.bf16.msrb.mxu2 %v3954_v40  ;;  %787 = vmatpush.bf16.msrb.mxu3 %v4010_v5 }
 0x43b   :  { %v512_v11 = vpop.f32.mrf.mxu2  ;;  %v525_v12 = vpop.f32.mrf.mxu3 }
 0x43c   :  { %v513_v13 = vadd.f32 %v512_v11, %v4106_v60  ;;  %v526_v36 = vadd.f32 %v525_v12, %v260_v20 }
 0x43e   :  { %v3555_v14 = vmul.f32 -1.442695, %v513_v13  ;;  %v3556_v21 = vmul.f32 -1.442695, %v526_v36 }
 0x440   :  { %3697 = vpow2.f32 %v3555_v14 }
 0x443   :  { %v514_v16 = vpop.f32.mrf.mxu2  ;;  %v527_v17 = vpop.f32.mrf.mxu3 }
 0x446   :  { %v3698_v18 = vpop.eup %3697 }
 0x447   :  { %v532_v19 = vadd.f32 1.0, %v3698_v18 }
 0x449   :  { %3699 = vrcp.f32 %v532_v19  ;;  %v544_v29 = vand.u32 2147483648, %v532_v19  ;;  %v542_v32 = vand.u32 2147483647, %v532_v19  ;;  %vm538_vm12 = vweird.f32 %v532_v19 }
 0x44a   :  { %3701 = vtanh.f32 %v526_v36 }
 0x44b   :  { %v545_v33 = vor.u32 1.1754944e-38, %v544_v29  ;;  %vm543_vm14 = vcmp.eq.f32.partialorder %v542_v32, 8.507059e+37  ;;  %3703 = vpow2.f32 %v3556_v21 }
 0x44f   :  { %v3700_v24 = vpop.eup %3699 }
 0x450   :  { %v534_v26 = vmul.f32 %v3700_v24, %v532_v19  ;;  %vm539_vm11 = vweird.f32 %v3700_v24  ;;  %v3702_v15 = vpop.eup %3701 }
 0x451   :  { %vm540_vm13 = vmor %vm538_vm12, %vm539_vm11  ;;  %v3704_v44 = vpop.eup %3703 }
 0x452   :  { %v535_v28 = vsub.f32 1.0, %v534_v26  ;;  %v552_v46 = vadd.f32 1.0, %v3704_v44 }
 0x454   :  { %v536_v30 = vmul.f32 %v3700_v24, %v535_v28  ;;  %3705 = vrcp.f32 %v552_v46  ;;  %v564_v2 = vand.u32 2147483648, %v552_v46  ;;  %vm558_vm0 = vweird.f32 %v552_v46 }
 0x455   :  { %v562_v3 = vand.u32 2147483647, %v552_v46 }
 0x456   :  { %v537_v60 = vadd.f32 %v3700_v24, %v536_v30  ;;  %v565_v7 = vor.u32 1.1754944e-38, %v564_v2 }
 0x457   :  { %vm563_vm2 = vcmp.eq.f32.partialorder %v562_v3, 8.507059e+37 }
 0x458   :  { %v541_v35 = vsel %vm540_vm13, %v3700_v24, %v537_v60 }
 0x459   :  { %v546_v38 = vsel %vm543_vm14, %v545_v33, %v541_v35 }
 0x45a   :  { %v569_v41 = vmul.f32 %v3702_v15, %v546_v38  ;;  %v3706_v49 = vpop.eup %3705  ;;  %v568_v58 = vmul.f32 %v546_v38, %v4151_v55 }
 0x45b   :  { %v554_v51 = vmul.f32 %v3706_v49, %v552_v46  ;;  %vm559_vm15 = vweird.f32 %v3706_v49 }
 0x45c   :  { %571 = vrot.lane.b32.xlu2 %v569_v41, %s3775_s4  ;;  %vm560_vm1 = vmor %vm558_vm0, %vm559_vm15 }
 0x45d   :  { %v555_v53 = vsub.f32 1.0, %v554_v51 }
 0x45f   :  { %v556_v54 = vmul.f32 %v3706_v49, %v555_v53 }
 0x461   :  { %v557_v63 = vadd.f32 %v3706_v49, %v556_v54 }
 0x463   :  { %v561_v6 = vsel %vm560_vm1, %v3706_v49, %v557_v63 }
 0x464   :  { %v566_v9 = vsel %vm563_vm2, %v565_v7, %v561_v6 }
 0x4b6   :  { %v572_v59 = vpop.permute.xlu2 %571 }
 0x4b7   :  { %v4173_v62 = vadd.f32 %v572_v59, %v568_v58 }
 0x4b9   :  { %3707 = vtanh.f32 %v4173_v62 }
 0x4bf   :  { %v3708_v45 = vpop.eup %3707 }
 0x4c0   :  { %v576_v10 = vmul.f32 %v3708_v45, %v566_v9  ;;  %v4201_v45 = vpop.f32.mrf.mxu1 }
 0x4c2   :  { %v4176_v11 = vpack.c.bf16 %v576_v10, %v576_v10 }
 0x4c4   :  { %v584_v55 = vunpack.c.l.b16 %v4176_v11 }
 0x4c6   :  { %v585_v12 = vpack.c.b16 %v584_v55, %v584_v55 }
 0x4c8   :  { %586 = vrot.lane.b32.xlu0 %v585_v12, %s3775_s4 }
 0x53a   :  { %v587_v13 = vpop.permute.xlu0 %586 }
 0x53b   :  { %3557 = vmatmul.msk.bf16.vlgmr.msra.gmra.mxu2 %vm203_vm6, %v587_v13  ;;  %3558 = vmatmul.msk.bf16.vlgmr.msra.gmra.mxu3 %vm203_vm6, %v587_v13 }
 0x53c   :  { %947 = vmatpush.bf16.msra.mxu2 %v3924_v31  ;;  %960 = vmatpush.bf16.msra.mxu3 %v3967_v48 }
 0x540   :  { %948 = vmatpush.bf16.msra.mxu2 %v3934_v34  ;;  %961 = vmatpush.bf16.msra.mxu3 %v3976_v52 }
 0x544   :  { %949 = vmatpush.bf16.msra.mxu2 %v3944_v37  ;;  %962 = vmatpush.bf16.msra.mxu3 %v3989_v57  ;;  %v262_v37 = vadd.f32 %v4119_v22, %v4111_v4 }
 0x548   :  { %950 = vmatpush.bf16.msra.mxu2 %v3954_v40  ;;  %963 = vmatpush.bf16.msra.mxu3 %v4010_v5 }
 0x5be   :  { %v600_v14 = vpop.f32.mrf.mxu2  ;;  %v613_v16 = vpop.f32.mrf.mxu3 }
 0x5bf   :  { %v601_v17 = vadd.f32 %v600_v14, %v4109_v1  ;;  %v614_v57 = vadd.f32 %v613_v16, %v262_v37 }
 0x5c1   :  { %v3559_v18 = vmul.f32 -1.442695, %v601_v17  ;;  %v3560_v22 = vmul.f32 -1.442695, %v614_v57 }
 0x5c3   :  { %3709 = vpow2.f32 %v3559_v18  ;;  %v265_v18 = vadd.f32 %v4121_v23, %v4111_v4 }
 0x5c6   :  { %v602_v31 = vpop.f32.mrf.mxu2  ;;  %v615_v48 = vpop.f32.mrf.mxu3 }
 0x5c9   :  { %v3710_v19 = vpop.eup %3709 }
 0x5ca   :  { %v620_v34 = vadd.f32 1.0, %v3710_v19 }
 0x5cc   :  { %3711 = vrcp.f32 %v620_v34  ;;  %v632_v5 = vand.u32 2147483648, %v620_v34  ;;  %v630_v36 = vand.u32 2147483647, %v620_v34  ;;  %vm626_vm4 = vweird.f32 %v620_v34 }
 0x5cd   :  { %3713 = vtanh.f32 %v614_v57 }
 0x5ce   :  { %v633_v26 = vor.u32 1.1754944e-38, %v632_v5  ;;  %vm631_vm7 = vcmp.eq.f32.partialorder %v630_v36, 8.507059e+37  ;;  %3715 = vpow2.f32 %v3560_v22 }
 0x5d2   :  { %v3712_v52 = vpop.eup %3711 }
 0x5d3   :  { %v622_v20 = vmul.f32 %v3712_v52, %v620_v34  ;;  %vm627_vm3 = vweird.f32 %v3712_v52  ;;  %v3714_v29 = vpop.eup %3713 }
 0x5d4   :  { %vm628_vm5 = vmor %vm626_vm4, %vm627_vm3  ;;  %v3716_v60 = vpop.eup %3715 }
 0x5d5   :  { %v623_v40 = vsub.f32 1.0, %v622_v20  ;;  %v640_v33 = vadd.f32 1.0, %v3716_v60 }
 0x5d7   :  { %v624_v24 = vmul.f32 %v3712_v52, %v623_v40  ;;  %3717 = vrcp.f32 %v640_v33  ;;  %v652_v51 = vand.u32 2147483648, %v640_v33  ;;  %vm646_vm9 = vweird.f32 %v640_v33 }
 0x5d8   :  { %v650_v53 = vand.u32 2147483647, %v640_v33 }
 0x5d9   :  { %v625_v1 = vadd.f32 %v3712_v52, %v624_v24  ;;  %v653_v58 = vor.u32 1.1754944e-38, %v652_v51 }
 0x5da   :  { %vm651_vm11 = vcmp.eq.f32.partialorder %v650_v53, 8.507059e+37 }
 0x5db   :  { %v629_v28 = vsel %vm628_vm5, %v3712_v52, %v625_v1 }
 0x5dc   :  { %v634_v30 = vsel %vm631_vm7, %v633_v26, %v629_v28 }
 0x5dd   :  { %v657_v32 = vmul.f32 %v3714_v29, %v634_v30  ;;  %v3718_v35 = vpop.eup %3717  ;;  %v656_v21 = vmul.f32 %v634_v30, %v4173_v62 }
 0x5de   :  { %v642_v15 = vmul.f32 %v3718_v35, %v640_v33  ;;  %vm647_vm8 = vweird.f32 %v3718_v35 }
 0x5df   :  { %659 = vrot.lane.b32.xlu1 %v657_v32, %s3775_s4  ;;  %vm648_vm10 = vmor %vm646_vm9, %vm647_vm8 }
 0x5e0   :  { %v643_v38 = vsub.f32 1.0, %v642_v15 }
 0x5e2   :  { %v644_v41 = vmul.f32 %v3718_v35, %v643_v38 }
 0x5e4   :  { %v645_v49 = vadd.f32 %v3718_v35, %v644_v41 }
 0x5e6   :  { %v649_v54 = vsel %vm648_vm10, %v3718_v35, %v645_v49 }
 0x5e7   :  { %v654_v63 = vsel %vm651_vm11, %v653_v58, %v649_v54 }
 0x651   :  { %v660_v44 = vpop.permute.xlu1 %659 }
 0x652   :  { %v662_v46 = vadd.f32 %v660_v44, %v656_v21 }
 0x654   :  { %3719 = vtanh.f32 %v662_v46 }
 0x65a   :  { %v3720_v59 = vpop.eup %3719 }
 0x65b   :  { %v664_v2 = vmul.f32 %v3720_v59, %v654_v63 }
 0x65d   :  { %v4195_v3 = vpack.c.bf16 %v664_v2, %v664_v2 }
 0x65f   :  { %v672_v6 = vunpack.c.l.b16 %v4195_v3 }
 0x661   :  { %v673_v62 = vpack.c.b16 %v672_v6, %v672_v6 }
 0x663   :  { %674 = vrot.lane.b32.xlu2 %v673_v62, %s3775_s4 }
 0x6bd   :  { %v675_v7 = vpop.permute.xlu2 %674 }
 0x6be   :  { %3561 = vmatmul.msk.bf16.vlgmr.msrb.gmra.mxu0 %vm203_vm6, %v675_v7  ;;  %3562 = vmatmul.msk.bf16.vlgmr.msra.gmra.mxu1 %vm203_vm6, %v675_v7 }
 0x73b   :  { %v688_v9 = vpop.f32.mrf.mxu0  ;;  %v701_v10 = vpop.f32.mrf.mxu1 }
 0x73c   :  { %v689_v55 = vadd.f32 %v688_v9, %v4093_v39  ;;  %v702_v48 = vadd.f32 %v701_v10, %v265_v18 }
 0x73e   :  { %v3563_v12 = vmul.f32 -1.442695, %v689_v55  ;;  %v3564_v23 = vmul.f32 -1.442695, %v702_v48 }
 0x740   :  { %3721 = vpow2.f32 %v3563_v12 }
 0x743   :  { %v690_v13 = vpop.f32.mrf.mxu0  ;;  %v703_v14 = vpop.f32.mrf.mxu1 }
 0x746   :  { %v3722_v16 = vpop.eup %3721 }
 0x747   :  { %v708_v17 = vadd.f32 1.0, %v3722_v16 }
 0x749   :  { %3723 = vrcp.f32 %v708_v17  ;;  %v720_v37 = vand.u32 2147483648, %v708_v17  ;;  %v718_v57 = vand.u32 2147483647, %v708_v17  ;;  %vm714_vm13 = vweird.f32 %v708_v17 }
 0x74a   :  { %3725 = vtanh.f32 %v702_v48 }
 0x74b   :  { %v721_v20 = vor.u32 1.1754944e-38, %v720_v37  ;;  %vm719_vm15 = vcmp.eq.f32.partialorder %v718_v57, 8.507059e+37  ;;  %3727 = vpow2.f32 %v3564_v23 }
 0x74f   :  { %v3724_v31 = vpop.eup %3723 }
 0x750   :  { %v710_v19 = vmul.f32 %v3724_v31, %v708_v17  ;;  %vm715_vm12 = vweird.f32 %v3724_v31  ;;  %v3726_v5 = vpop.eup %3725 }
 0x751   :  { %vm716_vm14 = vmor %vm714_vm13, %vm715_vm12  ;;  %v3728_v1 = vpop.eup %3727 }
 0x752   :  { %v711_v34 = vsub.f32 1.0, %v710_v19  ;;  %v728_v26 = vadd.f32 1.0, %v3728_v1 }
 0x754   :  { %v712_v52 = vmul.f32 %v3724_v31, %v711_v34  ;;  %3729 = vrcp.f32 %v728_v26  ;;  %v740_v15 = vand.u32 2147483648, %v728_v26  ;;  %vm734_vm1 = vweird.f32 %v728_v26 }
 0x755   :  { %v738_v38 = vand.u32 2147483647, %v728_v26 }
 0x756   :  { %v713_v39 = vadd.f32 %v3724_v31, %v712_v52  ;;  %v741_v21 = vor.u32 1.1754944e-38, %v740_v15 }
 0x757   :  { %vm739_vm3 = vcmp.eq.f32.partialorder %v738_v38, 8.507059e+37 }
 0x758   :  { %v717_v40 = vsel %vm716_vm14, %v3724_v31, %v713_v39 }
 0x759   :  { %v722_v24 = vsel %vm719_vm15, %v721_v20, %v717_v40 }
 0x75a   :  { %v745_v36 = vmul.f32 %v3726_v5, %v722_v24  ;;  %v3730_v28 = vpop.eup %3729  ;;  %v744_v22 = vmul.f32 %v722_v24, %v662_v46 }
 0x75b   :  { %v730_v29 = vmul.f32 %v3730_v28, %v728_v26  ;;  %vm735_vm0 = vweird.f32 %v3730_v28 }
 0x75c   :  { %747 = vrot.lane.b32.xlu0 %v745_v36, %s3775_s4  ;;  %vm736_vm2 = vmor %vm734_vm1, %vm735_vm0 }
 0x75d   :  { %v731_v30 = vsub.f32 1.0, %v730_v29 }
 0x75f   :  { %v732_v32 = vmul.f32 %v3730_v28, %v731_v30 }
 0x761   :  { %v733_v35 = vadd.f32 %v3730_v28, %v732_v32 }
 0x763   :  { %v737_v41 = vsel %vm736_vm2, %v3730_v28, %v733_v35 }
 0x764   :  { %v742_v49 = vsel %vm739_vm3, %v741_v21, %v737_v41 }
 0x7ce   :  { %v748_v60 = vpop.permute.xlu0 %747 }
 0x7cf   :  { %v750_v33 = vadd.f32 %v748_v60, %v744_v22 }
 0x7d1   :  { %3731 = vtanh.f32 %v750_v33 }
 0x7d7   :  { %v3732_v44 = vpop.eup %3731 }
 0x7d8   :  { %v752_v51 = vmul.f32 %v3732_v44, %v742_v49 }
 0x7da   :  { %v4207_v53 = vpack.c.bf16 %v752_v51, %v752_v51 }
 0x7dc   :  { %v760_v54 = vunpack.c.l.b16 %v4207_v53 }
 0x7de   :  { %v761_v46 = vpack.c.b16 %v760_v54, %v760_v54 }
 0x7e0   :  { %762 = vrot.lane.b32.xlu1 %v761_v46, %s3775_s4 }
 0x852   :  { %v763_v58 = vpop.permute.xlu1 %762 }
 0x853   :  { %3565 = vmatmul.msk.bf16.vlgmr.msrb.gmra.mxu2 %vm203_vm6, %v763_v58  ;;  %3566 = vmatmul.msk.bf16.vlgmr.msrb.gmra.mxu3 %vm203_vm6, %v763_v58 }
 0x8d6   :  { %v776_v59 = vpop.f32.mrf.mxu2  ;;  %v789_v63 = vpop.f32.mrf.mxu3 }
 0x8d7   :  { %v777_v2 = vadd.f32 %v776_v59, %v4096_v43  ;;  %v790_v12 = vadd.f32 %v789_v63, %v4124_v25 }
 0x8d9   :  { %v3567_v6 = vmul.f32 -1.442695, %v777_v2  ;;  %v3568_v52 = vmul.f32 -1.442695, %v790_v12 }
 0x8db   :  { %3733 = vpow2.f32 %v3567_v6 }
 0x8de   :  { %v778_v62 = vpop.f32.mrf.mxu2  ;;  %v791_v7 = vpop.f32.mrf.mxu3 }
 0x8e1   :  { %v3734_v9 = vpop.eup %3733 }
 0x8e2   :  { %v796_v10 = vadd.f32 1.0, %v3734_v9 }
 0x8e4   :  { %3735 = vrcp.f32 %v796_v10  ;;  %v808_v16 = vand.u32 2147483648, %v796_v10  ;;  %v806_v18 = vand.u32 2147483647, %v796_v10  ;;  %vm802_vm5 = vweird.f32 %v796_v10 }
 0x8e5   :  { %3737 = vtanh.f32 %v790_v12 }
 0x8e6   :  { %v809_v43 = vor.u32 1.1754944e-38, %v808_v16  ;;  %vm807_vm8 = vcmp.eq.f32.partialorder %v806_v18, 8.507059e+37  ;;  %3739 = vpow2.f32 %v3568_v52 }
 0x8ea   :  { %v3736_v55 = vpop.eup %3735 }
 0x8eb   :  { %v798_v13 = vmul.f32 %v3736_v55, %v796_v10  ;;  %vm803_vm4 = vweird.f32 %v3736_v55  ;;  %v3738_v19 = vpop.eup %3737 }
 0x8ec   :  { %vm804_vm7 = vmor %vm802_vm5, %vm803_vm4  ;;  %v3740_v25 = vpop.eup %3739  ;;  %vm404_vm4 = vcmask 257024   ;;  %vm406_vm5 = vcmask 519424  }
 0x8ed   :  { %v799_v14 = vsub.f32 1.0, %v798_v13  ;;  %v816_v57 = vadd.f32 1.0, %v3740_v25 }
 0x8ef   :  { %v800_v17 = vmul.f32 %v3736_v55, %v799_v14  ;;  %3741 = vrcp.f32 %v816_v57  ;;  %v828_v26 = vand.u32 2147483648, %v816_v57  ;;  %vm822_vm10 = vweird.f32 %v816_v57 }
 0x8f0   :  { %v826_v28 = vand.u32 2147483647, %v816_v57 }
 0x8f1   :  { %v801_v31 = vadd.f32 %v3736_v55, %v800_v17  ;;  %v829_v30 = vor.u32 1.1754944e-38, %v828_v26  ;;  %v4240_v26 = vld [vmem:[%s6189_s2] sm:$0xff] }
 0x8f2   :  { %vm827_vm12 = vcmp.eq.f32.partialorder %v826_v28, 8.507059e+37  ;;  %6266 = vst [vmem:[#allocation3_spill] sm:$0xff] %v4240_v26 }
 0x8f3   :  { %v805_v48 = vsel %vm804_vm7, %v3736_v55, %v801_v31 }
 0x8f4   :  { %v810_v34 = vsel %vm807_vm8, %v809_v43, %v805_v48  ;;  %vm6264_vm8 = vcmp.gt.s32.totalorder %v4240_v26, 2 }
 0x8f5   :  { %v833_v37 = vmul.f32 %v3738_v19, %v810_v34  ;;  %v3742_v39 = vpop.eup %3741  ;;  %v832_v24 = vmul.f32 %v810_v34, %v750_v33  ;;  %v1688_v28 = vsel %vm6264_vm8, 1, %v6196_v0 }
 0x8f6   :  { %v818_v20 = vmul.f32 %v3742_v39, %v816_v57  ;;  %vm823_vm9 = vweird.f32 %v3742_v39 }
 0x8f7   :  { %835 = vrot.lane.b32.xlu2 %v833_v37, %s3775_s4  ;;  %vm824_vm11 = vmor %vm822_vm10, %vm823_vm9  ;;  %vm2261_vm9 = vcmp.gt.s32.totalorder %v4240_v26, 4  ;;  %vm2548_vm10 = vcmp.gt.s32.totalorder %v4240_v26, 5 }
 0x8f8   :  { %v819_v40 = vsub.f32 1.0, %v818_v20 }
 0x8fa   :  { %v820_v5 = vmul.f32 %v3742_v39, %v819_v40 }
 0x8fc   :  { %v821_v1 = vadd.f32 %v3742_v39, %v820_v5 }
 0x8fe   :  { %v825_v29 = vsel %vm824_vm11, %v3742_v39, %v821_v1 }
 0x8ff   :  { %v830_v22 = vsel %vm827_vm12, %v829_v30, %v825_v29 }
 0x951   :  { %v836_v36 = vpop.permute.xlu2 %835 }
 0x952   :  { %v838_v23 = vadd.f32 %v836_v36, %v832_v24 }
 0x954   :  { %3743 = vtanh.f32 %v838_v23 }
 0x95a   :  { %v3744_v32 = vpop.eup %3743 }
 0x95b   :  { %v840_v60 = vmul.f32 %v3744_v32, %v830_v22 }
 0x95d   :  { %v4216_v35 = vpack.c.bf16 %v840_v60, %v840_v60 }
 0x95f   :  { %v848_v15 = vunpack.c.l.b16 %v4216_v35 }
 0x961   :  { %v849_v33 = vpack.c.b16 %v848_v15, %v848_v15 }
 0x963   :  { %850 = vrot.lane.b32.xlu0 %v849_v33, %s3775_s4 }
 0x9d5   :  { %v851_v38 = vpop.permute.xlu0 %850 }
 0x9d6   :  { %3569 = vmatmul.msk.bf16.vlgmr.msra.gmra.mxu0 %vm203_vm6, %v851_v38  ;;  %3570 = vmatmul.msk.bf16.vlgmr.msrb.gmra.mxu1 %vm203_vm6, %v851_v38 }
 0xa53   :  { %v864_v41 = vpop.f32.mrf.mxu0  ;;  %v877_v21 = vpop.f32.mrf.mxu1 }
 0xa54   :  { %v865_v44 = vadd.f32 %v864_v41, %v4100_v50  ;;  %v878_v63 = vadd.f32 %v877_v21, %v4127_v27 }
 0xa56   :  { %v3571_v49 = vmul.f32 -1.442695, %v865_v44  ;;  %v3572_v27 = vmul.f32 -1.442695, %v878_v63 }
 0xa58   :  { %3745 = vpow2.f32 %v3571_v49  ;;  %v272_v49 = vadd.f32 %v4201_v45, %v4111_v4 }
 0xa5b   :  { %v866_v51 = vpop.f32.mrf.mxu0  ;;  %v879_v54 = vpop.f32.mrf.mxu1 }
 0xa5e   :  { %v3746_v46 = vpop.eup %3745 }
 0xa5f   :  { %v884_v58 = vadd.f32 1.0, %v3746_v46 }
 0xa61   :  { %3747 = vrcp.f32 %v884_v58  ;;  %v896_v62 = vand.u32 2147483648, %v884_v58  ;;  %v894_v9 = vand.u32 2147483647, %v884_v58  ;;  %vm890_vm14 = vweird.f32 %v884_v58 }
 0xa62   :  { %3749 = vtanh.f32 %v878_v63 }
 0xa63   :  { %v897_v50 = vor.u32 1.1754944e-38, %v896_v62  ;;  %vm895_vm0 = vcmp.eq.f32.partialorder %v894_v9, 8.507059e+37  ;;  %3751 = vpow2.f32 %v3572_v27 }
 0xa67   :  { %v3748_v59 = vpop.eup %3747 }
 0xa68   :  { %v886_v2 = vmul.f32 %v3748_v59, %v884_v58  ;;  %vm891_vm13 = vweird.f32 %v3748_v59  ;;  %v3750_v12 = vpop.eup %3749 }
 0xa69   :  { %vm892_vm15 = vmor %vm890_vm14, %vm891_vm13  ;;  %v3752_v16 = vpop.eup %3751 }
 0xa6a   :  { %v887_v6 = vsub.f32 1.0, %v886_v2  ;;  %v904_v17 = vadd.f32 1.0, %v3752_v16 }
 0xa6c   :  { %v888_v7 = vmul.f32 %v3748_v59, %v887_v6  ;;  %3753 = vrcp.f32 %v904_v17  ;;  %v916_v25 = vand.u32 2147483648, %v904_v17  ;;  %vm910_vm2 = vweird.f32 %v904_v17 }
 0xa6e   :  { %v889_v10 = vadd.f32 %v3748_v59, %v888_v7  ;;  %v917_v39 = vor.u32 1.1754944e-38, %v916_v25 }
 0xa70   :  { %v893_v55 = vsel %vm892_vm15, %v3748_v59, %v889_v10 }
 0xa71   :  { %v898_v13 = vsel %vm895_vm0, %v897_v50, %v893_v55 }
 0xa72   :  { %v921_v14 = vmul.f32 %v3750_v12, %v898_v13  ;;  %v3754_v18 = vpop.eup %3753  ;;  %v920_v19 = vmul.f32 %v898_v13, %v838_v23 }
 0xa73   :  { %v906_v31 = vmul.f32 %v3754_v18, %v904_v17  ;;  %vm911_vm1 = vweird.f32 %v3754_v18 }
 0xa74   :  { %923 = vrot.lane.b32.xlu1 %v921_v14, %s3775_s4  ;;  %vm912_vm3 = vmor %vm910_vm2, %vm911_vm1 }
 0xa75   :  { %v907_v43 = vsub.f32 1.0, %v906_v31 }
 0xa77   :  { %v908_v48 = vmul.f32 %v3754_v18, %v907_v43 }
 0xa79   :  { %v909_v52 = vadd.f32 %v3754_v18, %v908_v48  ;;  %v3636_v48 = vld [vmem:[%s6190_s6 + $0x18] sm:$0xff] }
 0xa7a   :  { %1104 = vmatpush.bf16.msrb.mxu0 %v3636_v48 }
 0xa7b   :  { %v913_v57 = vsel %vm912_vm3, %v3754_v18, %v909_v52  ;;  %vm6262_vm3 = vcmp.gt.s32.totalorder %v4240_v26, 1 }
 0xa7c   :  { %401 = vrot.lane.b32.xlu1 %v4132_v61, %s3775_s4  ;;  %v914_v61 = vand.u32 2147483647, %v904_v17 }
 0xa7e   :  { %vm915_vm7 = vcmp.eq.f32.partialorder %v914_v61, 8.507059e+37 }
 0xa7f   :  { %v918_v5 = vsel %vm915_vm7, %v917_v39, %v913_v57  ;;  %vm6265_vm7 = vcmp.gt.s32.totalorder %v4240_v26, 3 }
 0xae6   :  { %v924_v34 = vpop.permute.xlu1 %923 }
 0xae7   :  { %v4227_v37 = vadd.f32 %v924_v34, %v920_v19 }
 0xae9   :  { %3755 = vtanh.f32 %v4227_v37 }
 0xaee   :  { %v402_v20 = vpop.permute.xlu1 %401 }
 0xaef   :  { %v3756_v40 = vpop.eup %3755  ;;  %405 = vst.msk [vmem:[#allocation2] sm:$0xf] %vm404_vm4, %v402_v20 }
 0xaf0   :  { %407 = vst.msk [vmem:[#allocation2 + $0x1c] sm:$0xf] %vm406_vm5, %v402_v20  ;;  %v928_v24 = vmul.f32 %v3756_v40, %v918_v5  ;;  %v1394_v20 = vsel %vm6262_vm3, 1, %v6196_v0  ;;  %v1975_v40 = vsel %vm6265_vm7, 1, %v6196_v0  ;;  %v3634_v5 = vld [vmem:[%s6190_s6 + $0x8] sm:$0xff] }
 0xaf2   :  { %v929_v36 = vpack.c.bf16 %v928_v24, %v928_v24 }
 0xaf4   :  { %v936_v23 = vunpack.c.l.b16 %v929_v36 }
 0xaf6   :  { %v937_v1 = vpack.c.b16 %v936_v23, %v936_v23 }
 0xaf8   :  { %938 = vrot.lane.b32.xlu2 %v937_v1, %s3775_s4 }
 0xb00   :  { %491 = vrot.lane.b32.xlu2 %v4154_v8, %s3775_s4  ;;  %v2262_v8 = vsel %vm2261_vm9, 1, %v6196_v0 }
 0xb08   :  { %579 = vrot.lane.b32.xlu2 %v4176_v11, %s3775_s4  ;;  %v2549_v11 = vsel %vm2548_vm10, 1, %v6196_v0 }
 0xb10   :  { %843 = vrot.lane.b32.xlu2 %v4216_v35, %s3775_s4 }
 0xb18   :  { %1690 = vperm.xlu2 %3661, %v1688_v28  }
 0xb20   :  { %2264 = vperm.xlu2 %3661, %v2262_v8  }
 0xb28   :  { %2551 = vperm.xlu2 %3661, %v2549_v11   ;;  %v4308_v11 = vshrl.u32 %v39_v42, 7 }
 0xb2a   :  { %3662 = vset.pattern.permute.xlu0 %v4308_v11 }
 0xb30   :  { %3664 = vset.pattern.permute.xlu2 %v4308_v11 }
 0xb52   :  { %v939_v29 = vpop.permute.xlu2 %938 }
 0xb53   :  { %3573 = vmatmul.msk.bf16.vlgmr.msra.gmra.mxu2 %vm203_vm6, %v939_v29  ;;  %3574 = vmatmul.msk.bf16.vlgmr.msra.gmra.mxu3 %vm203_vm6, %v939_v29  ;;  %v4316_v29 = vld [vmem:[%s6191_s7] ss:$0 sm:$0xff] }
 0xb5a   :  { %v492_v30 = vpop.permute.xlu2 %491 }
 0xb5b   :  { %494 = vst.msk [vmem:[#allocation2 + $0x4] sm:$0xf] %vm404_vm4, %v492_v30 }
 0xb5c   :  { %495 = vst.msk [vmem:[#allocation2 + $0x18] sm:$0xf] %vm406_vm5, %v492_v30 }
 0xb62   :  { %v580_v32 = vpop.permute.xlu2 %579 }
 0xb63   :  { %582 = vst.msk [vmem:[#allocation2 + $0x8] sm:$0xf] %vm404_vm4, %v580_v32 }
 0xb64   :  { %583 = vst.msk [vmem:[#allocation2 + $0x14] sm:$0xf] %vm406_vm5, %v580_v32 }
 0xb6a   :  { %v844_v22 = vpop.permute.xlu2 %843 }
 0xb6b   :  { %846 = vst.msk [vmem:[#allocation2 + $0x14] sm:$0xf] %vm404_vm4, %v844_v22 }
 0xb6c   :  { %847 = vst.msk [vmem:[#allocation2 + $0x8] sm:$0xf] %vm406_vm5, %v844_v22 }
 0xbd6   :  { %v952_v60 = vpop.f32.mrf.mxu2  ;;  %v965_v35 = vpop.f32.mrf.mxu3 }
 0xbd7   :  { %v953_v15 = vadd.f32 %v952_v60, %v4103_v56  ;;  %v966_v54 = vadd.f32 %v965_v35, %v272_v49 }
 0xbd9   :  { %v3575_v33 = vmul.f32 -1.442695, %v953_v15  ;;  %v3576_v4 = vmul.f32 -1.442695, %v966_v54 }
 0xbdb   :  { %3757 = vpow2.f32 %v3575_v33 }
 0xbde   :  { %v954_v38 = vpop.f32.mrf.mxu2  ;;  %v967_v41 = vpop.f32.mrf.mxu3 }
 0xbe1   :  { %v3758_v21 = vpop.eup %3757 }
 0xbe2   :  { %v972_v44 = vadd.f32 1.0, %v3758_v21 }
 0xbe4   :  { %3759 = vrcp.f32 %v972_v44  ;;  %v984_v59 = vand.u32 2147483648, %v972_v44  ;;  %v982_v2 = vand.u32 2147483647, %v972_v44  ;;  %vm978_vm12 = vweird.f32 %v972_v44 }
 0xbe5   :  { %3761 = vtanh.f32 %v966_v54 }
 0xbe6   :  { %v985_v6 = vor.u32 1.1754944e-38, %v984_v59  ;;  %vm983_vm14 = vcmp.eq.f32.partialorder %v982_v2, 8.507059e+37  ;;  %3763 = vpow2.f32 %v3576_v4 }
 0xbea   :  { %v3760_v51 = vpop.eup %3759 }
 0xbeb   :  { %v974_v46 = vmul.f32 %v3760_v51, %v972_v44  ;;  %vm979_vm11 = vweird.f32 %v3760_v51  ;;  %v3762_v7 = vpop.eup %3761 }
 0xbec   :  { %vm980_vm13 = vmor %vm978_vm12, %vm979_vm11  ;;  %v3764_v45 = vpop.eup %3763  ;;  %vm1419_vm11 = vcmask 1043459   ;;  %vm1421_vm12 = vcmask 1044484  }
 0xbed   :  { %v975_v58 = vsub.f32 1.0, %v974_v46  ;;  %v992_v50 = vadd.f32 1.0, %v3764_v45 }
 0xbef   :  { %v976_v63 = vmul.f32 %v3760_v51, %v975_v58  ;;  %3765 = vrcp.f32 %v992_v50  ;;  %v1004_v31 = vand.u32 2147483648, %v992_v50  ;;  %vm998_vm0 = vweird.f32 %v992_v50 }
 0xbf0   :  { %v1002_v43 = vand.u32 2147483647, %v992_v50 }
 0xbf1   :  { %v977_v56 = vadd.f32 %v3760_v51, %v976_v63  ;;  %v1005_v19 = vor.u32 1.1754944e-38, %v1004_v31 }
 0xbf2   :  { %vm1003_vm2 = vcmp.eq.f32.partialorder %v1002_v43, 8.507059e+37 }
 0xbf3   :  { %v981_v62 = vsel %vm980_vm13, %v3760_v51, %v977_v56  ;;  %vm1423_vm13 = vcmask 1045509  }
 0xbf4   :  { %v986_v9 = vsel %vm983_vm14, %v985_v6, %v981_v62  ;;  %vm1425_vm14 = vcmask 1046534  }
 0xbf5   :  { %v1009_v10 = vmul.f32 %v3762_v7, %v986_v9  ;;  %v3766_v55 = vpop.eup %3765  ;;  %v1008_v27 = vmul.f32 %v986_v9, %v4227_v37  ;;  %v3635_v37 = vld [vmem:[%s6190_s6 + $0x10] sm:$0xff] }
 0xbf6   :  { %v994_v12 = vmul.f32 %v3766_v55, %v992_v50  ;;  %vm999_vm15 = vweird.f32 %v3766_v55  ;;  %1105 = vmatpush.bf16.msrb.mxu0 %v3635_v37 }
 0xbf7   :  { %1011 = vrot.lane.b32.xlu0 %v1009_v10, %s3775_s4  ;;  %vm1000_vm1 = vmor %vm998_vm0, %vm999_vm15  ;;  %vm1427_vm15 = vcmask 1047559  }
 0xbf8   :  { %v995_v13 = vsub.f32 1.0, %v994_v12 }
 0xbfa   :  { %v996_v14 = vmul.f32 %v3766_v55, %v995_v13  ;;  %1106 = vmatpush.bf16.msrb.mxu0 %v3634_v5 }
 0xbfc   :  { %v997_v18 = vadd.f32 %v3766_v55, %v996_v14 }
 0xbff   :  { %931 = vrot.lane.b32.xlu0 %v929_v36, %s3775_s4 }
 0xc07   :  { %667 = vrot.lane.b32.xlu0 %v4195_v3, %s3775_s4  ;;  %v1001_v3 = vsel %vm1000_vm1, %v3766_v55, %v997_v18 }
 0xc08   :  { %v1006_v25 = vsel %vm1003_vm2, %v1005_v19, %v1001_v3 }
 0xc69   :  { %v1012_v16 = vpop.permute.xlu0 %1011 }
 0xc6a   :  { %v1014_v17 = vadd.f32 %v1012_v16, %v1008_v27 }
 0xc6c   :  { %3767 = vtanh.f32 %v1014_v17 }
 0xc71   :  { %v932_v34 = vpop.permute.xlu0 %931 }
 0xc72   :  { %v3768_v52 = vpop.eup %3767  ;;  %934 = vst.msk [vmem:[#allocation2 + $0x18] sm:$0xf] %vm404_vm4, %v932_v34 }
 0xc73   :  { %935 = vst.msk [vmem:[#allocation2 + $0x4] sm:$0xf] %vm406_vm5, %v932_v34  ;;  %v1016_v61 = vmul.f32 %v3768_v52, %v1006_v25 }
 0xc75   :  { %v1017_v57 = vpack.c.bf16 %v1016_v61, %v1016_v61 }
 0xc77   :  { %1019 = vrot.lane.b32.xlu1 %v1017_v57, %s3775_s4 }
 0xc79   :  { %v668_v39 = vpop.permute.xlu0 %667 }
 0xc7a   :  { %670 = vst.msk [vmem:[#allocation2 + $0xc] sm:$0xf] %vm404_vm4, %v668_v39 }
 0xc7b   :  { %671 = vst.msk [vmem:[#allocation2 + $0x10] sm:$0xf] %vm406_vm5, %v668_v39 }
 0xc7f   :  { %755 = vrot.lane.b32.xlu1 %v4207_v53, %s3775_s4  ;;  %v3633_v53 = vld [vmem:[%s6190_s6] sm:$0xff]  ;;  %s3779_s4 = smov 4  }
 0xc80   :  { %1107 = vmatpush.bf16.msrb.mxu0 %v3633_v53 }
 0xc87   :  { %1396 = vperm.xlu1 %3660, %v1394_v20  }
 0xc8f   :  { %1977 = vperm.xlu1 %3660, %v1975_v40  }
 0xc97   :  { %3663 = vset.pattern.permute.xlu1 %v4308_v11 }
 0xce9   :  { %v1020_v24 = vpop.permute.xlu1 %1019 }
 0xcea   :  { %1022 = vst.msk [vmem:[#allocation2 + $0x1c] sm:$0xf] %vm404_vm4, %v1020_v24 }
 0xceb   :  { %1023 = vst.msk [vmem:[#allocation2] sm:$0xf] %vm406_vm5, %v1020_v24 }
 0xcf1   :  { %v756_v36 = vpop.permute.xlu1 %755  ;;  %v3632_v8 = vld [vmem:[#allocation2 + $0x18] sm:$0xff] }
 0xcf2   :  { %758 = vst.msk [vmem:[#allocation2 + $0x10] sm:$0xf] %vm404_vm4, %v756_v36  ;;  %v3629_v23 = vld [vmem:[#allocation2] sm:$0xff]  ;;  %vm1415_vm4 = vcmask 1041409  }
 0xcf3   :  { %759 = vst.msk [vmem:[#allocation2 + $0xc] sm:$0xf] %vm406_vm5, %v756_v36  ;;  %3609 = vmatmul.msk.bf16.vlgmr.msrb.gmra.mxu0 %vm203_vm6, %v3629_v23  ;;  %vm1417_vm5 = vcmask 1042434  }
 0xcf9   :  { %v3631_v28 = vld [vmem:[#allocation2 + $0x10] sm:$0xff] }
 0xcfa   :  { %v3630_v1 = vld [vmem:[#allocation2 + $0x8] sm:$0xff] }
 0xd03   :  { %3610 = vmatmul.msk.bf16.gmra.mxu0 %vm203_vm6, %v3630_v1  ;;  %v4331_v1 = vpop.permute.xlu2 %1690 }
 0xd04   :  { %vm1692_vm1 = vcmp.eq.s32.totalorder %v4331_v1, 1 }
 0xd13   :  { %3611 = vmatmul.msk.bf16.gmra.mxu0 %vm203_vm6, %v3631_v28 }
 0xd23   :  { %3612 = vmatmul.msk.bf16.gmra.mxu0 %vm203_vm6, %v3632_v8  ;;  %vm1232_vm6 = vcmask 64512  }
 0xd70   :  { %v1109_v30 = vpop.f32.mrf.mxu0 }
 0xd71   :  { %v4319_v32 = vadd.f32 %v4316_v29, %v1109_v30  ;;  %v4335_v30 = vpop.permute.xlu1 %1396 }
 0xd72   :  { %vm1398_vm0 = vcmp.eq.s32.totalorder %v4335_v30, 1 }
 0xd78   :  { %v1111_v22 = vpop.f32.mrf.mxu0 }
 0xd79   :  { %v1112_v60 = vadd.f32 %v4316_v29, %v1111_v22  ;;  %v4337_v22 = vpop.permute.xlu2 %2264 }
 0xd7b   :  { %v1182_v42 = vperm.slane %v1112_v60, 2  ;;  %v1175_v35 = vperm.slane %v1112_v60, 1  ;;  %v1168_v15 = vperm.slane %v1112_v60, 0  ;;  %v1196_v33 = vperm.slane %v1112_v60, 4 }
 0xd7c   :  { %v1189_v38 = vperm.slane %v1112_v60, 3  ;;  %v1203_v41 = vperm.slane %v1112_v60, 5  ;;  %v1217_v49 = vperm.slane %v1112_v60, 7  ;;  %v1210_v51 = vperm.slane %v1112_v60, 6 }
 0xd7d   :  { %1187 = vperm.xlu2 %3664, %v1182_v42   ;;  %1180 = vperm.xlu1 %3663, %v1175_v35   ;;  %v4340_v35 = vpop.permute.xlu1 %1977 }
 0xd7e   :  { %1173 = vperm.xlu0 %3662, %v1168_v15   ;;  %v3671_v15 = vld [vmem:[%s6192_s8] ss:$0 sm:$0xff]  ;;  %vm1979_vm2 = vcmp.eq.s32.totalorder %v4340_v35, 1 }
 0xd80   :  { %v1114_v21 = vpop.f32.mrf.mxu0 }
 0xd81   :  { %v1115_v44 = vadd.f32 %v4316_v29, %v1114_v21 }
 0xd83   :  { %v1470_v54 = vperm.slane %v1115_v44, 1  ;;  %v1477_v46 = vperm.slane %v1115_v44, 2  ;;  %v1463_v58 = vperm.slane %v1115_v44, 0  ;;  %v1484_v59 = vperm.slane %v1115_v44, 3 }
 0xd84   :  { %v1498_v63 = vperm.slane %v1115_v44, 5  ;;  %v1491_v2 = vperm.slane %v1115_v44, 4  ;;  %v1505_v6 = vperm.slane %v1115_v44, 6  ;;  %v1512_v9 = vperm.slane %v1115_v44, 7 }
 0xd85   :  { %1201 = vperm.xlu2 %3664, %v1196_v33   ;;  %1194 = vperm.xlu1 %3663, %v1189_v38   ;;  %v4345_v33 = vpop.permute.xlu2 %2551  ;;  %v4348_v38 = vadd.f32 %v3671_v15, %v4319_v32 }
 0xd86   :  { %1208 = vperm.xlu0 %3662, %v1203_v41  }
 0xd87   :  { %v1138_v41 = vrot.slane %v4348_v38, 2 }
 0xd88   :  { %v1116_v56 = vpop.f32.mrf.mxu0 }
 0xd89   :  { %v1117_v62 = vadd.f32 %v4316_v29, %v1116_v56 }
 0xd8b   :  { %v1750_v7 = vperm.slane %v1117_v62, 0  ;;  %v1757_v10 = vperm.slane %v1117_v62, 1  ;;  %v1778_v4 = vperm.slane %v1117_v62, 4  ;;  %v1764_v45 = vperm.slane %v1117_v62, 2 }
 0xd8c   :  { %v1771_v50 = vperm.slane %v1117_v62, 3  ;;  %v1799_v55 = vperm.slane %v1117_v62, 7  ;;  %v1785_v12 = vperm.slane %v1117_v62, 5  ;;  %v1792_v14 = vperm.slane %v1117_v62, 6 }
 0xd8d   :  { %1222 = vperm.xlu2 %3664, %v1217_v49   ;;  %1215 = vperm.xlu1 %3663, %v1210_v51   ;;  %v1146_v51 = vperm.slane %v1138_v41, 0 }
 0xd8e   :  { %1475 = vperm.xlu0 %3662, %v1470_v54   ;;  %v4354_v54 = vld [vmem:[%s6193_s10] sm:$0xff] }
 0xd90   :  { %v1119_v13 = vpop.f32.mrf.mxu0 }
 0xd91   :  { %v1120_v27 = vadd.f32 %v4316_v29, %v1119_v13 }
 0xd93   :  { %v2051_v16 = vperm.slane %v1120_v27, 2  ;;  %v2037_v17 = vperm.slane %v1120_v27, 0  ;;  %v2044_v18 = vperm.slane %v1120_v27, 1  ;;  %v2072_v31 = vperm.slane %v1120_v27, 5 }
 0xd94   :  { %v2065_v43 = vperm.slane %v1120_v27, 4  ;;  %v2058_v48 = vperm.slane %v1120_v27, 3  ;;  %v2086_v37 = vperm.slane %v1120_v27, 7  ;;  %v2079_v52 = vperm.slane %v1120_v27, 6 }
 0xd95   :  { %1482 = vperm.xlu1 %3663, %v1477_v46   ;;  %1468 = vperm.xlu2 %3664, %v1463_v58   ;;  %v1162_v46 = vadd.f32 %v1146_v51, %v4354_v54  ;;  %v1139_v58 = vrot.slane %v4348_v38, 3 }
 0xd96   :  { %1489 = vperm.xlu0 %3662, %v1484_v59   ;;  %v1137_v59 = vrot.slane %v4348_v38, 1 }
 0xd97   :  { %v1147_v56 = vperm.slane %v1139_v58, 0 }
 0xd98   :  { %v1121_v3 = vpop.f32.mrf.mxu0  ;;  %v1145_v62 = vperm.slane %v1137_v59, 0 }
 0xd99   :  { %v1122_v19 = vadd.f32 %v4316_v29, %v1121_v3 }
 0xd9b   :  { %v2324_v34 = vperm.slane %v1122_v19, 0  ;;  %v2352_v25 = vperm.slane %v1122_v19, 4  ;;  %v2338_v61 = vperm.slane %v1122_v19, 2  ;;  %v2331_v57 = vperm.slane %v1122_v19, 1 }
 0xd9c   :  { %v2373_v39 = vperm.slane %v1122_v19, 7  ;;  %v2359_v20 = vperm.slane %v1122_v19, 5  ;;  %v2345_v5 = vperm.slane %v1122_v19, 3  ;;  %v2366_v23 = vperm.slane %v1122_v19, 6 }
 0xd9d   :  { %1503 = vperm.xlu1 %3663, %v1498_v63   ;;  %1496 = vperm.xlu2 %3664, %v1491_v2  }
 0xd9e   :  { %1510 = vperm.xlu0 %3662, %v1505_v6  }
 0xda0   :  { %v1124_v40 = vpop.f32.mrf.mxu0 }
 0xda1   :  { %v4327_v53 = vadd.f32 %v4316_v29, %v1124_v40 }
 0xda3   :  { %v2611_v24 = vperm.slane %v4327_v53, 0  ;;  %v2625_v36 = vperm.slane %v4327_v53, 2  ;;  %v2639_v28 = vperm.slane %v4327_v53, 4  ;;  %v2618_v8 = vperm.slane %v4327_v53, 1 }
 0xda4   :  { %v2632_v60 = vperm.slane %v4327_v53, 3  ;;  %v2646_v58 = vperm.slane %v4327_v53, 5 }
 0xda5   :  { %1755 = vperm.xlu1 %3663, %v1750_v7   ;;  %1517 = vperm.xlu2 %3664, %v1512_v9   ;;  %v1163_v9 = vadd.f32 %v1147_v56, %v4354_v54 }
 0xda6   :  { %1762 = vperm.xlu0 %3662, %v1757_v10   ;;  %v1142_v10 = vrot.slane %v4348_v38, 6 }
 0xda8   :  { %v1150_v13 = vperm.slane %v1142_v10, 0 }
 0xdad   :  { %1783 = vperm.xlu1 %3663, %v1778_v4   ;;  %1769 = vperm.xlu2 %3664, %v1764_v45   ;;  %v1161_v4 = vadd.f32 %v1145_v62, %v4354_v54  ;;  %v1141_v45 = vrot.slane %v4348_v38, 5 }
 0xdae   :  { %1776 = vperm.xlu0 %3662, %v1771_v50  }
 0xdaf   :  { %v1149_v27 = vperm.slane %v1141_v45, 0 }
 0xdb1   :  { %v1165_v3 = vadd.f32 %v1149_v27, %v4354_v54 }
 0xdb5   :  { %1804 = vperm.xlu1 %3663, %v1799_v55   ;;  %1790 = vperm.xlu2 %3664, %v1785_v12  }
 0xdb6   :  { %1797 = vperm.xlu0 %3662, %v1792_v14  }
 0xdbd   :  { %2056 = vperm.xlu1 %3663, %v2051_v16   ;;  %2042 = vperm.xlu2 %3664, %v2037_v17   ;;  %v1144_v16 = vperm.slane %v4348_v38, 0 }
 0xdbe   :  { %2049 = vperm.xlu0 %3662, %v2044_v18  }
 0xdbf   :  { %v1160_v19 = vadd.f32 %v1144_v16, %v4354_v54 }
 0xdc5   :  { %2077 = vperm.xlu1 %3663, %v2072_v31   ;;  %2070 = vperm.xlu2 %3664, %v2065_v43   ;;  %v1166_v43 = vadd.f32 %v1150_v13, %v4354_v54 }
 0xdc6   :  { %2063 = vperm.xlu0 %3662, %v2058_v48   ;;  %v1140_v48 = vrot.slane %v4348_v38, 4 }
 0xdcd   :  { %2329 = vperm.xlu1 %3663, %v2324_v34   ;;  %2091 = vperm.xlu2 %3664, %v2086_v37  }
 0xdce   :  { %2084 = vperm.xlu0 %3662, %v2079_v52  }
 0xdd5   :  { %2357 = vperm.xlu1 %3663, %v2352_v25   ;;  %2343 = vperm.xlu2 %3664, %v2338_v61   ;;  %v1148_v25 = vperm.slane %v1140_v48, 0 }
 0xdd6   :  { %2336 = vperm.xlu0 %3662, %v2331_v57  }
 0xdd7   :  { %v1188_v49 = vpop.permute.xlu2 %1187 }
 0xdd8   :  { %v4359_v63 = vadd.f32 %v1188_v49, %v1162_v46 }
 0xdda   :  { %6267 = vst [vmem:[#allocation4_spill] sm:$0xff] %v4359_v63  ;;  %v1239_v7 = vsel %vm1232_vm6, %v4359_v63, -inf }
 0xddd   :  { %2378 = vperm.xlu1 %3663, %v2373_v39   ;;  %2364 = vperm.xlu2 %3664, %v2359_v20  }
 0xdde   :  { %2350 = vperm.xlu0 %3662, %v2345_v5  }
 0xddf   :  { %v1202_v6 = vpop.permute.xlu2 %1201 }
 0xde5   :  { %2616 = vperm.xlu1 %3663, %v2611_v24   ;;  %2630 = vperm.xlu2 %3664, %v2625_v36   ;;  %v1164_v24 = vadd.f32 %v1148_v25, %v4354_v54  ;;  %v1143_v36 = vrot.slane %v4348_v38, 7 }
 0xde6   :  { %2371 = vperm.xlu0 %3662, %v2366_v23  }
 0xde7   :  { %v1223_v18 = vpop.permute.xlu2 %1222  ;;  %v4404_v23 = vadd.f32 %v1202_v6, %v1164_v24  ;;  %v2653_v6 = vperm.slane %v4327_v53, 6 }
 0xde9   :  { %6273 = vst [vmem:[#allocation10_spill] sm:$0xff] %v4404_v23 }
 0xded   :  { %2644 = vperm.xlu1 %3663, %v2639_v28   ;;  %v1151_v28 = vperm.slane %v1143_v36, 0 }
 0xdee   :  { %2623 = vperm.xlu0 %3662, %v2618_v8  }
 0xdef   :  { %v1181_v21 = vpop.permute.xlu1 %1180  ;;  %v4400_v5 = vpop.permute.xlu2 %1468  ;;  %v1167_v15 = vadd.f32 %v1151_v28, %v4354_v54 }
 0xdf0   :  { %v1174_v42 = vpop.permute.xlu0 %1173  ;;  %v4371_v55 = vadd.f32 %v1181_v21, %v1161_v4 }
 0xdf1   :  { %v4388_v52 = vadd.f32 %v1174_v42, %v1160_v19  ;;  %v1245_v42 = vsel %vm1232_vm6, %v4404_v23, -inf  ;;  %v4415_v21 = vadd.f32 %v1223_v18, %v1167_v15 }
 0xdf2   :  { %6269 = vst [vmem:[#allocation6_spill] sm:$0xff] %v4371_v55  ;;  %v1236_v31 = vsel %vm1232_vm6, %v4371_v55, -inf }
 0xdf3   :  { %6272 = vst [vmem:[#allocation9_spill] sm:$0xff] %v4388_v52  ;;  %v1233_v40 = vsel %vm1232_vm6, %v4388_v52, -inf }
 0xdf4   :  { %6274 = vst [vmem:[#allocation11_spill] sm:$0xff] %v4415_v21 }
 0xdf6   :  { %2637 = vperm.xlu0 %3662, %v2632_v60  }
 0xdf7   :  { %v1195_v32 = vpop.permute.xlu1 %1194  ;;  %v4413_v41 = vpop.permute.xlu2 %1496 }
 0xdf8   :  { %v1209_v44 = vpop.permute.xlu0 %1208  ;;  %v4369_v50 = vadd.f32 %v1195_v32, %v1163_v9 }
 0xdf9   :  { %v4386_v37 = vadd.f32 %v1209_v44, %v1165_v3  ;;  %v1254_v44 = vsel %vm1232_vm6, %v4415_v21, -inf }
 0xdfa   :  { %6268 = vst [vmem:[#allocation5_spill] sm:$0xff] %v4369_v50  ;;  %v1242_v17 = vsel %vm1232_vm6, %v4369_v50, -inf }
 0xdfb   :  { %6271 = vst [vmem:[#allocation8_spill] sm:$0xff] %v4386_v37  ;;  %v1248_v20 = vsel %vm1232_vm6, %v4386_v37, -inf }
 0xdff   :  { %v1216_v12 = vpop.permute.xlu1 %1215  ;;  %v4423_v46 = vpop.permute.xlu2 %1517 }
 0xe00   :  { %v4361_v2 = vpop.permute.xlu0 %1475  ;;  %v4384_v34 = vadd.f32 %v1216_v12, %v1166_v43 }
 0xe02   :  { %6270 = vst [vmem:[#allocation7_spill] sm:$0xff] %v4384_v34  ;;  %v1251_v39 = vsel %vm1232_vm6, %v4384_v34, -inf }
 0xe07   :  { %v4390_v61 = vpop.permute.xlu1 %1482  ;;  %v4430_v56 = vpop.permute.xlu2 %1769 }
 0xe08   :  { %v4373_v14 = vpop.permute.xlu0 %1489 }
 0xe0e   :  { %1240 = vmax.xlane.f32.xlu2 %v1239_v7 }
 0xe0f   :  { %v4406_v8 = vpop.permute.xlu1 %1503  ;;  %v4437_v9 = vpop.permute.xlu2 %1790 }
 0xe10   :  { %v4392_v57 = vpop.permute.xlu0 %1510 }
 0xe16   :  { %1243 = vmax.xlane.f32.xlu2 %v1242_v17 }
 0xe17   :  { %1237 = vmax.xlane.f32.xlu1 %v1236_v31  ;;  %v4419_v49 = vpop.permute.xlu1 %1755  ;;  %v4443_v45 = vpop.permute.xlu2 %2042 }
 0xe18   :  { %v4408_v60 = vpop.permute.xlu0 %1762 }
 0xe1e   :  { %1252 = vmax.xlane.f32.xlu2 %v1251_v39 }
 0xe1f   :  { %1249 = vmax.xlane.f32.xlu1 %v1248_v20  ;;  %v4426_v59 = vpop.permute.xlu1 %1783  ;;  %v4449_v27 = vpop.permute.xlu2 %2070 }
 0xe20   :  { %1234 = vmax.xlane.f32.xlu0 %v1233_v40  ;;  %v4421_v51 = vpop.permute.xlu0 %1776 }
 0xe27   :  { %v4433_v62 = vpop.permute.xlu1 %1804  ;;  %v4455_v18 = vpop.permute.xlu2 %2091 }
 0xe28   :  { %1246 = vmax.xlane.f32.xlu0 %v1245_v42  ;;  %v4428_v32 = vpop.permute.xlu0 %1797 }
 0xe2f   :  { %v4439_v10 = vpop.permute.xlu1 %2056  ;;  %v4461_v3 = vpop.permute.xlu2 %2343 }
 0xe30   :  { %1255 = vmax.xlane.f32.xlu0 %v1254_v44  ;;  %v4435_v7 = vpop.permute.xlu0 %2049 }
 0xe36   :  { %2651 = vperm.xlu2 %3664, %v2646_v58  }
 0xe37   :  { %v4445_v12 = vpop.permute.xlu1 %2077  ;;  %v4467_v25 = vpop.permute.xlu2 %2364 }
 0xe38   :  { %v4441_v4 = vpop.permute.xlu0 %2063 }
 0xe3f   :  { %v4451_v16 = vpop.permute.xlu1 %2329  ;;  %v4473_v40 = vpop.permute.xlu2 %2630 }
 0xe40   :  { %v4447_v13 = vpop.permute.xlu0 %2084 }
 0xe44   :  { %2658 = vperm.xlu0 %3662, %v2653_v6  }
 0xe47   :  { %v4457_v31 = vpop.permute.xlu1 %2357 }
 0xe48   :  { %v4453_v17 = vpop.permute.xlu0 %2336 }
 0xe4f   :  { %v4463_v48 = vpop.permute.xlu1 %2378 }
 0xe50   :  { %v4459_v43 = vpop.permute.xlu0 %2350 }
 0xe57   :  { %v4469_v39 = vpop.permute.xlu1 %2616 }
 0xe58   :  { %v4465_v19 = vpop.permute.xlu0 %2371 }
 0xe5f   :  { %v4475_v24 = vpop.permute.xlu1 %2644 }
 0xe60   :  { %v4471_v20 = vpop.permute.xlu0 %2623  ;;  %6275 = vst [vmem:[#allocation12_spill] sm:$0xff] %v4475_v24 }
 0xe68   :  { %v4477_v36 = vpop.permute.xlu0 %2637 }
 0xe81   :  { %v4479_v28 = vpop.xlane.xlu2 %1240 }
 0xe82   :  { %6276 = vst [vmem:[#allocation13_spill] sm:$0xff] %v4479_v28  ;;  %v1409_v34 = vperm.slane %v4479_v28, %v3965_v47 }
 0xe89   :  { %v4487_v58 = vpop.xlane.xlu2 %1243 }
 0xe8a   :  { %v4481_v42 = vpop.xlane.xlu1 %1237  ;;  %6279 = vst [vmem:[#allocation16_spill] sm:$0xff] %v4487_v58  ;;  %v1410_v63 = vperm.slane %v4487_v58, %v3965_v47 }
 0xe8b   :  { %6277 = vst [vmem:[#allocation14_spill] sm:$0xff] %v4481_v42  ;;  %v1408_v6 = vperm.slane %v4481_v42, %v3965_v47 }
 0xe93   :  { %v4483_v15 = vpop.xlane.xlu0 %1234 }
 0xe94   :  { %6278 = vst [vmem:[#allocation15_spill] sm:$0xff] %v4483_v15  ;;  %v1407_v44 = vperm.slane %v4483_v15, %v3965_v47  ;;  %v4501_v15 = vpop.xlane.xlu1 %1249 }
 0xe95   :  { %6281 = vst [vmem:[#allocation18_spill] sm:$0xff] %v4501_v15 }
 0xe96   :  { %v1416_v0 = vsel %vm1415_vm4, %v1408_v6, %v1407_v44  ;;  %v4505_v6 = vpop.xlane.xlu2 %1252 }
 0xe97   :  { %v1418_v21 = vsel %vm1417_vm5, %v1409_v34, %v1416_v0  ;;  %6282 = vst [vmem:[#allocation19_spill] sm:$0xff] %v4505_v6  ;;  %v1412_v0 = vperm.slane %v4501_v15, %v3965_v47  ;;  %v1413_v28 = vperm.slane %v4505_v6, %v3965_v47 }
 0xe98   :  { %v1420_v37 = vsel %vm1419_vm11, %v1410_v63, %v1418_v21 }
 0xe9b   :  { %v4495_v23 = vpop.xlane.xlu0 %1246 }
 0xe9c   :  { %6280 = vst [vmem:[#allocation17_spill] sm:$0xff] %v4495_v23  ;;  %v1411_v52 = vperm.slane %v4495_v23, %v3965_v47 }
 0xe9e   :  { %v1422_v44 = vsel %vm1421_vm12, %v1411_v52, %v1420_v37 }
 0xe9f   :  { %v1424_v34 = vsel %vm1423_vm13, %v1412_v0, %v1422_v44 }
 0xea0   :  { %v1426_v21 = vsel %vm1425_vm14, %v1413_v28, %v1424_v34 }
 0xea3   :  { %v4512_v23 = vpop.xlane.xlu0 %1255 }
 0xea4   :  { %6283 = vst [vmem:[#allocation20_spill] sm:$0xff] %v4512_v23  ;;  %v1414_v63 = vperm.slane %v4512_v23, %v3965_v47 }
 0xea6   :  { %v1428_v37 = vsel %vm1427_vm15, %v1414_v63, %v1426_v21 }
 0xea7   :  { %v4520_v52 = vsel %vm1398_vm0, %v1428_v37, %v4348_v38 }
 0xea8   :  { %v1439_v44 = vperm.slane %v4520_v52, 0  ;;  %v1433_v0 = vrot.slane %v4520_v52, 2  ;;  %v1432_v6 = vrot.slane %v4520_v52, 1  ;;  %v1434_v15 = vrot.slane %v4520_v52, 3 }
 0xea9   :  { %v1436_v50 = vrot.slane %v4520_v52, 5  ;;  %v1435_v23 = vrot.slane %v4520_v52, 4  ;;  %v1437_v42 = vrot.slane %v4520_v52, 6 }
 0xeaa   :  { %v1455_v28 = vadd.f32 %v1439_v44, %v4354_v54  ;;  %v1441_v30 = vperm.slane %v1433_v0, 0  ;;  %v1440_v34 = vperm.slane %v1432_v6, 0  ;;  %v1442_v63 = vperm.slane %v1434_v15, 0 }
 0xeab   :  { %v1444_v21 = vperm.slane %v1436_v50, 0  ;;  %v1443_v55 = vperm.slane %v1435_v23, 0 }
 0xeac   :  { %v4530_v38 = vadd.f32 %v4400_v5, %v1455_v28  ;;  %v1457_v37 = vadd.f32 %v1441_v30, %v4354_v54  ;;  %v1456_v58 = vadd.f32 %v1440_v34, %v4354_v54  ;;  %v1458_v50 = vadd.f32 %v1442_v63, %v4354_v54 }
 0xead   :  { %v1438_v5 = vrot.slane %v4520_v52, 7  ;;  %v1460_v44 = vadd.f32 %v1444_v21, %v4354_v54  ;;  %v1459_v0 = vadd.f32 %v1443_v55, %v4354_v54 }
 0xeae   :  { %6284 = vst [vmem:[#allocation21_spill] sm:$0xff] %v4530_v38  ;;  %v1527_v26 = vsel %vm1232_vm6, %v4530_v38, -inf  ;;  %v4538_v24 = vadd.f32 %v4390_v61, %v1457_v37  ;;  %v4541_v6 = vadd.f32 %v4361_v2, %v1456_v58  ;;  %v4552_v2 = vadd.f32 %v4373_v14, %v1458_v50 }
 0xeaf   :  { %1528 = vmax.xlane.f32.xlu1 %v1527_v26  ;;  %v1445_v61 = vperm.slane %v1437_v42, 0  ;;  %v4555_v26 = vadd.f32 %v4406_v8, %v1460_v44  ;;  %v4558_v58 = vadd.f32 %v4413_v41, %v1459_v0  ;;  %v1446_v28 = vperm.slane %v1438_v5, 0  ;;  %v4580_v5 = vpop.permute.xlu2 %2651 }
 0xeb0   :  { %6285 = vst [vmem:[#allocation22_spill] sm:$0xff] %v4538_v24  ;;  %v1533_v15 = vsel %vm1232_vm6, %v4538_v24, -inf  ;;  %v1530_v23 = vsel %vm1232_vm6, %v4541_v6, -inf  ;;  %v1536_v30 = vsel %vm1232_vm6, %v4552_v2, -inf  ;;  %v2660_v37 = vperm.slane %v4327_v53, 7 }
 0xeb1   :  { %6286 = vst [vmem:[#allocation23_spill] sm:$0xff] %v4541_v6  ;;  %1534 = vmax.xlane.f32.xlu2 %v1533_v15  ;;  %1531 = vmax.xlane.f32.xlu0 %v1530_v23  ;;  %v1461_v34 = vadd.f32 %v1445_v61, %v4354_v54  ;;  %v1542_v55 = vsel %vm1232_vm6, %v4555_v26, -inf  ;;  %v1539_v14 = vsel %vm1232_vm6, %v4558_v58, -inf  ;;  %v1462_v42 = vadd.f32 %v1446_v28, %v4354_v54 }
 0xeb2   :  { %6287 = vst [vmem:[#allocation24_spill] sm:$0xff] %v4552_v2  ;;  %v6292_v50 = vmov 0  }
 0xeb3   :  { %6288 = vst [vmem:[#allocation25_spill] sm:$0xff] %v4555_v26  ;;  %v4569_v8 = vadd.f32 %v4392_v57, %v1461_v34  ;;  %v4572_v41 = vadd.f32 %v4423_v46, %v1462_v42 }
 0xeb4   :  { %6289 = vst [vmem:[#allocation26_spill] sm:$0xff] %v4558_v58 }
 0xeb5   :  { %6290 = vst [vmem:[#allocation27_spill] sm:$0xff] %v4569_v8  ;;  %v1545_v63 = vsel %vm1232_vm6, %v4569_v8, -inf  ;;  %v1548_v21 = vsel %vm1232_vm6, %v4572_v41, -inf }
 0xeb6   :  { %6291 = vst [vmem:[#allocation28_spill] sm:$0xff] %v4572_v41  ;;  %v4582_v57 = vpop.permute.xlu0 %2658 }
 0xeb7   :  { %1537 = vmax.xlane.f32.xlu1 %v1536_v30 }
 0xeb9   :  { %1543 = vmax.xlane.f32.xlu2 %v1542_v55  ;;  %1540 = vmax.xlane.f32.xlu0 %v1539_v14 }
 0xebf   :  { %1546 = vmax.xlane.f32.xlu1 %v1545_v63 }
 0xec1   :  { %1549 = vmax.xlane.f32.xlu0 %v1548_v21 }
 0xed8   :  { %2665 = vperm.xlu1 %3663, %v2660_v37  }
 0xee0   :  { %3665 = vset.pattern.permute.xlu1 %v6292_v50 }
 0xf22   :  { %v4584_v15 = vpop.xlane.xlu1 %1528 }
 0xf23   :  { %6293 = vst [vmem:[#allocation29_spill] sm:$0xff] %v4584_v15  ;;  %v1701_v0 = vperm.slane %v4584_v15, %v3965_v47 }
 0xf24   :  { %v4586_v46 = vpop.xlane.xlu0 %1531  ;;  %v4588_v23 = vpop.xlane.xlu2 %1534 }
 0xf25   :  { %6294 = vst [vmem:[#allocation30_spill] sm:$0xff] %v4586_v46  ;;  %v1702_v44 = vperm.slane %v4586_v46, %v3965_v47  ;;  %v1703_v53 = vperm.slane %v4588_v23, %v3965_v47 }
 0xf26   :  { %6295 = vst [vmem:[#allocation31_spill] sm:$0xff] %v4588_v23 }
 0xf27   :  { %v1709_v61 = vsel %vm1415_vm4, %v1702_v44, %v1701_v0 }
 0xf28   :  { %v1710_v55 = vsel %vm1417_vm5, %v1703_v53, %v1709_v61 }
 0xf2a   :  { %v4597_v28 = vpop.xlane.xlu1 %1537 }
 0xf2b   :  { %6296 = vst [vmem:[#allocation32_spill] sm:$0xff] %v4597_v28  ;;  %v1704_v30 = vperm.slane %v4597_v28, %v3965_v47 }
 0xf2c   :  { %v4601_v34 = vpop.xlane.xlu0 %1540  ;;  %v4606_v42 = vpop.xlane.xlu2 %1543 }
 0xf2d   :  { %6297 = vst [vmem:[#allocation33_spill] sm:$0xff] %v4601_v34  ;;  %v1705_v14 = vperm.slane %v4601_v34, %v3965_v47  ;;  %v1711_v63 = vsel %vm1419_vm11, %v1704_v30, %v1710_v55  ;;  %v1706_v21 = vperm.slane %v4606_v42, %v3965_v47 }
 0xf2e   :  { %6298 = vst [vmem:[#allocation34_spill] sm:$0xff] %v4606_v42 }
 0xf2f   :  { %v1712_v37 = vsel %vm1421_vm12, %v1705_v14, %v1711_v63 }
 0xf30   :  { %v1713_v8 = vsel %vm1423_vm13, %v1706_v21, %v1712_v37 }
 0xf32   :  { %v4612_v44 = vpop.xlane.xlu1 %1546 }
 0xf33   :  { %6299 = vst [vmem:[#allocation35_spill] sm:$0xff] %v4612_v44  ;;  %v1707_v0 = vperm.slane %v4612_v44, %v3965_v47 }
 0xf34   :  { %v4617_v53 = vpop.xlane.xlu0 %1549 }
 0xf35   :  { %6300 = vst [vmem:[#allocation36_spill] sm:$0xff] %v4617_v53  ;;  %v1714_v61 = vsel %vm1425_vm14, %v1707_v0, %v1713_v8  ;;  %v1708_v26 = vperm.slane %v4617_v53, %v3965_v47 }
 0xf37   :  { %v1715_v30 = vsel %vm1427_vm15, %v1708_v26, %v1714_v61 }
 0xf38   :  { %v4625_v55 = vsel %vm1692_vm1, %v1715_v30, %v4520_v52  ;;  %vm2266_vm1 = vcmp.eq.s32.totalorder %v4337_v22, 1 }
 0xf39   :  { %v1726_v14 = vperm.slane %v4625_v55, 0  ;;  %v1720_v63 = vrot.slane %v4625_v55, 2  ;;  %v1719_v21 = vrot.slane %v4625_v55, 1  ;;  %v1721_v37 = vrot.slane %v4625_v55, 3 }
 0xf3a   :  { %v1723_v8 = vrot.slane %v4625_v55, 5  ;;  %v1722_v0 = vrot.slane %v4625_v55, 4  ;;  %v1724_v6 = vrot.slane %v4625_v55, 6 }
 0xf3b   :  { %v1742_v44 = vadd.f32 %v1726_v14, %v4354_v54  ;;  %v1728_v1 = vperm.slane %v1720_v63, 0  ;;  %v1727_v42 = vperm.slane %v1719_v21, 0  ;;  %v1729_v26 = vperm.slane %v1721_v37, 0 }
 0xf3c   :  { %v1731_v61 = vperm.slane %v1723_v8, 0  ;;  %v1730_v28 = vperm.slane %v1722_v0, 0 }
 0xf3d   :  { %v4635_v52 = vadd.f32 %v4419_v49, %v1742_v44  ;;  %v1744_v30 = vadd.f32 %v1728_v1, %v4354_v54  ;;  %v1743_v2 = vadd.f32 %v1727_v42, %v4354_v54  ;;  %v1745_v63 = vadd.f32 %v1729_v26, %v4354_v54 }
 0xf3e   :  { %v1725_v49 = vrot.slane %v4625_v55, 7  ;;  %v1747_v21 = vadd.f32 %v1731_v61, %v4354_v54  ;;  %v1746_v37 = vadd.f32 %v1730_v28, %v4354_v54 }
 0xf3f   :  { %6301 = vst [vmem:[#allocation37_spill] sm:$0xff] %v4635_v52  ;;  %v1814_v46 = vsel %vm1232_vm6, %v4635_v52, -inf  ;;  %v4643_v41 = vadd.f32 %v4430_v56, %v1744_v30  ;;  %v4646_v14 = vadd.f32 %v4408_v60, %v1743_v2  ;;  %v4657_v60 = vadd.f32 %v4421_v51, %v1745_v63 }
 0xf40   :  { %1815 = vmax.xlane.f32.xlu2 %v1814_v46  ;;  %v1732_v56 = vperm.slane %v1724_v6, 0  ;;  %v4660_v2 = vadd.f32 %v4437_v9, %v1747_v21  ;;  %v4663_v46 = vadd.f32 %v4426_v59, %v1746_v37  ;;  %v1733_v8 = vperm.slane %v1725_v49, 0 }
 0xf41   :  { %6302 = vst [vmem:[#allocation38_spill] sm:$0xff] %v4643_v41  ;;  %v1820_v42 = vsel %vm1232_vm6, %v4643_v41, -inf  ;;  %v1817_v44 = vsel %vm1232_vm6, %v4646_v14, -inf  ;;  %v1823_v0 = vsel %vm1232_vm6, %v4657_v60, -inf }
 0xf42   :  { %6303 = vst [vmem:[#allocation39_spill] sm:$0xff] %v4646_v14  ;;  %1821 = vmax.xlane.f32.xlu1 %v1820_v42  ;;  %1818 = vmax.xlane.f32.xlu0 %v1817_v44  ;;  %v1748_v1 = vadd.f32 %v1732_v56, %v4354_v54  ;;  %v1829_v28 = vsel %vm1232_vm6, %v4660_v2, -inf  ;;  %v1826_v51 = vsel %vm1232_vm6, %v4663_v46, -inf  ;;  %v1749_v6 = vadd.f32 %v1733_v8, %v4354_v54 }
 0xf43   :  { %6304 = vst [vmem:[#allocation40_spill] sm:$0xff] %v4657_v60 }
 0xf44   :  { %6305 = vst [vmem:[#allocation41_spill] sm:$0xff] %v4660_v2  ;;  %v4674_v59 = vadd.f32 %v4428_v32, %v1748_v1  ;;  %v4677_v9 = vadd.f32 %v4433_v62, %v1749_v6 }
 0xf45   :  { %6306 = vst [vmem:[#allocation42_spill] sm:$0xff] %v4663_v46 }
 0xf46   :  { %6307 = vst [vmem:[#allocation43_spill] sm:$0xff] %v4674_v59  ;;  %v1832_v26 = vsel %vm1232_vm6, %v4674_v59, -inf  ;;  %v1835_v61 = vsel %vm1232_vm6, %v4677_v9, -inf }
 0xf47   :  { %6308 = vst [vmem:[#allocation44_spill] sm:$0xff] %v4677_v9 }
 0xf48   :  { %1824 = vmax.xlane.f32.xlu2 %v1823_v0 }
 0xf4a   :  { %1830 = vmax.xlane.f32.xlu1 %v1829_v28  ;;  %1827 = vmax.xlane.f32.xlu0 %v1826_v51  ;;  %v4683_v30 = vpop.permute.xlu1 %2665 }
 0xf50   :  { %1833 = vmax.xlane.f32.xlu2 %v1832_v26 }
 0xf52   :  { %1836 = vmax.xlane.f32.xlu0 %v1835_v61 }
 0xfb3   :  { %v4685_v63 = vpop.xlane.xlu2 %1815 }
 0xfb4   :  { %6309 = vst [vmem:[#allocation45_spill] sm:$0xff] %v4685_v63  ;;  %v1988_v62 = vperm.slane %v4685_v63, %v3965_v47 }
 0xfb5   :  { %v4687_v49 = vpop.xlane.xlu1 %1821  ;;  %v4689_v42 = vpop.xlane.xlu0 %1818 }
 0xfb6   :  { %6310 = vst [vmem:[#allocation46_spill] sm:$0xff] %v4687_v49  ;;  %v1989_v32 = vperm.slane %v4689_v42, %v3965_v47  ;;  %v1990_v44 = vperm.slane %v4687_v49, %v3965_v47 }
 0xfb7   :  { %6311 = vst [vmem:[#allocation47_spill] sm:$0xff] %v4689_v42 }
 0xfb8   :  { %v1996_v21 = vsel %vm1415_vm4, %v1989_v32, %v1988_v62 }
 0xfb9   :  { %v1997_v0 = vsel %vm1417_vm5, %v1990_v44, %v1996_v21 }
 0xfbb   :  { %v4698_v37 = vpop.xlane.xlu2 %1824 }
 0xfbc   :  { %6312 = vst [vmem:[#allocation48_spill] sm:$0xff] %v4698_v37  ;;  %v1991_v56 = vperm.slane %v4698_v37, %v3965_v47 }
 0xfbd   :  { %v4702_v8 = vpop.xlane.xlu0 %1827  ;;  %v4705_v1 = vpop.xlane.xlu1 %1830 }
 0xfbe   :  { %6313 = vst [vmem:[#allocation49_spill] sm:$0xff] %v4702_v8  ;;  %v1998_v28 = vsel %vm1419_vm11, %v1991_v56, %v1997_v0  ;;  %v1992_v51 = vperm.slane %v4702_v8, %v3965_v47  ;;  %v1993_v6 = vperm.slane %v4705_v1, %v3965_v47 }
 0xfbf   :  { %6314 = vst [vmem:[#allocation50_spill] sm:$0xff] %v4705_v1 }
 0xfc0   :  { %v1999_v26 = vsel %vm1421_vm12, %v1992_v51, %v1998_v28 }
 0xfc1   :  { %v2000_v62 = vsel %vm1423_vm13, %v1993_v6, %v1999_v26 }
 0xfc3   :  { %v4713_v61 = vpop.xlane.xlu2 %1833 }
 0xfc4   :  { %6315 = vst [vmem:[#allocation51_spill] sm:$0xff] %v4713_v61  ;;  %v1994_v32 = vperm.slane %v4713_v61, %v3965_v47 }
 0xfc5   :  { %v4718_v44 = vpop.xlane.xlu0 %1836 }
 0xfc6   :  { %6316 = vst [vmem:[#allocation52_spill] sm:$0xff] %v4718_v44  ;;  %v2001_v21 = vsel %vm1425_vm14, %v1994_v32, %v2000_v62  ;;  %v1995_v56 = vperm.slane %v4718_v44, %v3965_v47 }
 0xfc8   :  { %v2002_v0 = vsel %vm1427_vm15, %v1995_v56, %v2001_v21 }
 0xfc9   :  { %v4726_v28 = vsel %vm1979_vm2, %v2002_v0, %v4625_v55  ;;  %vm2553_vm2 = vcmp.eq.s32.totalorder %v4345_v33, 1 }
 0xfca   :  { %v2013_v51 = vperm.slane %v4726_v28, 0  ;;  %v2007_v53 = vrot.slane %v4726_v28, 2  ;;  %v2006_v6 = vrot.slane %v4726_v28, 1  ;;  %v2008_v26 = vrot.slane %v4726_v28, 3 }
 0xfcb   :  { %v2010_v32 = vrot.slane %v4726_v28, 5  ;;  %v2009_v62 = vrot.slane %v4726_v28, 4  ;;  %v2011_v38 = vrot.slane %v4726_v28, 6 }
 0xfcc   :  { %v2029_v58 = vadd.f32 %v2013_v51, %v4354_v54  ;;  %v2015_v35 = vperm.slane %v2007_v53, 0  ;;  %v2014_v34 = vperm.slane %v2006_v6, 0  ;;  %v2016_v21 = vperm.slane %v2008_v26, 0 }
 0xfcd   :  { %v2018_v56 = vperm.slane %v2010_v32, 0  ;;  %v2017_v23 = vperm.slane %v2009_v62, 0 }
 0xfce   :  { %v4736_v55 = vadd.f32 %v4443_v45, %v2029_v58  ;;  %v2031_v0 = vadd.f32 %v2015_v35, %v4354_v54  ;;  %v2030_v24 = vadd.f32 %v2014_v34, %v4354_v54  ;;  %v2032_v51 = vadd.f32 %v2016_v21, %v4354_v54 }
 0xfcf   :  { %v2034_v34 = vadd.f32 %v2018_v56, %v4354_v54  ;;  %v2033_v6 = vadd.f32 %v2017_v23, %v4354_v54  ;;  %v2012_v56 = vrot.slane %v4726_v28, 7 }
 0xfd0   :  { %6317 = vst [vmem:[#allocation53_spill] sm:$0xff] %v4736_v55  ;;  %v2101_v15 = vsel %vm1232_vm6, %v4736_v55, -inf  ;;  %v4744_v9 = vadd.f32 %v4439_v10, %v2031_v0  ;;  %v4747_v53 = vadd.f32 %v4435_v7, %v2030_v24  ;;  %v4757_v10 = vadd.f32 %v4441_v4, %v2032_v51 }
 0xfd1   :  { %2102 = vmax.xlane.f32.xlu1 %v2101_v15  ;;  %v2019_v7 = vperm.slane %v2011_v38, 0  ;;  %v4760_v24 = vadd.f32 %v4445_v12, %v2034_v34  ;;  %v4763_v15 = vadd.f32 %v4449_v27, %v2033_v6  ;;  %v1126_v38 = vpop.f32.mrf.mxu0  ;;  %v2020_v0 = vperm.slane %v2012_v56, 0 }
 0xfd2   :  { %6318 = vst [vmem:[#allocation54_spill] sm:$0xff] %v4744_v9  ;;  %v2107_v45 = vsel %vm1232_vm6, %v4744_v9, -inf  ;;  %v2104_v58 = vsel %vm1232_vm6, %v4747_v53, -inf  ;;  %v2110_v26 = vsel %vm1232_vm6, %v4757_v10, -inf  ;;  %v4778_v62 = vadd.f32 %v4316_v29, %v1126_v38  ;;  %v4792_v29 = vld [vmem:[%s6189_s2] sm:$0xff] }
 0xfd3   :  { %6319 = vst [vmem:[#allocation55_spill] sm:$0xff] %v4747_v53  ;;  %2108 = vmax.xlane.f32.xlu2 %v2107_v45  ;;  %2105 = vmax.xlane.f32.xlu0 %v2104_v58  ;;  %v2035_v32 = vadd.f32 %v2019_v7, %v4354_v54  ;;  %v2116_v23 = vsel %vm1232_vm6, %v4760_v24, -inf  ;;  %v2113_v4 = vsel %vm1232_vm6, %v4763_v15, -inf  ;;  %vm2835_vm0 = vcmp.gt.s32.totalorder %v4792_v29, 6 }
 0xfd4   :  { %6320 = vst [vmem:[#allocation56_spill] sm:$0xff] %v4757_v10  ;;  %v2905_v35 = vperm.slane %v4778_v62, 1  ;;  %v2898_v21 = vperm.slane %v4778_v62, 0  ;;  %v2836_v58 = vsel %vm2835_vm0, 1, %v6292_v50 }
 0xfd5   :  { %6321 = vst [vmem:[#allocation57_spill] sm:$0xff] %v4760_v24  ;;  %v4773_v12 = vadd.f32 %v4447_v13, %v2035_v32  ;;  %v2036_v13 = vadd.f32 %v2020_v0, %v4354_v54 }
 0xfd6   :  { %6322 = vst [vmem:[#allocation58_spill] sm:$0xff] %v4763_v15 }
 0xfd7   :  { %6323 = vst [vmem:[#allocation59_spill] sm:$0xff] %v4773_v12  ;;  %v2119_v27 = vsel %vm1232_vm6, %v4773_v12, -inf  ;;  %v4785_v51 = vadd.f32 %v4455_v18, %v2036_v13 }
 0xfd9   :  { %2111 = vmax.xlane.f32.xlu1 %v2110_v26  ;;  %6324 = vst [vmem:[#allocation60_spill] sm:$0xff] %v4785_v51  ;;  %v2122_v45 = vsel %vm1232_vm6, %v4785_v51, -inf }
 0xfdb   :  { %2117 = vmax.xlane.f32.xlu2 %v2116_v23  ;;  %2114 = vmax.xlane.f32.xlu0 %v2113_v4 }
 0xfe1   :  { %2120 = vmax.xlane.f32.xlu1 %v2119_v27 }
 0xfef   :  { %2910 = vperm.xlu0 %3662, %v2905_v35  }
 0xff3   :  { %2903 = vperm.xlu2 %3664, %v2898_v21  }
 0xffa   :  { %2838 = vperm.xlu1 %3665, %v2836_v58  }
0x1002   :  { %3666 = vset.pattern.permute.xlu1 %v4308_v11 }
0x1019   :  { %2123 = vmax.xlane.f32.xlu0 %v2122_v45 }
0x1044   :  { %v4801_v34 = vpop.xlane.xlu1 %2102 }
0x1045   :  { %v2275_v23 = vperm.slane %v4801_v34, %v3965_v47 }
0x1046   :  { %v4799_v18 = vpop.xlane.xlu0 %2105  ;;  %v4803_v6 = vpop.xlane.xlu2 %2108 }
0x1047   :  { %6325 = vst [vmem:[#allocation61_spill] sm:$0xff] %v4799_v18  ;;  %v2276_v32 = vperm.slane %v4799_v18, %v3965_v47  ;;  %v2277_v4 = vperm.slane %v4803_v6, %v3965_v47 }
0x1048   :  { %6326 = vst [vmem:[#allocation62_spill] sm:$0xff] %v4803_v6 }
0x1049   :  { %v2283_v11 = vsel %vm1415_vm4, %v2276_v32, %v2275_v23 }
0x104a   :  { %v2284_v35 = vsel %vm1417_vm5, %v2277_v4, %v2283_v11 }
0x104c   :  { %v4807_v26 = vpop.xlane.xlu1 %2111 }
0x104d   :  { %6328 = vst [vmem:[#allocation64_spill] sm:$0xff] %v4807_v26  ;;  %v2278_v27 = vperm.slane %v4807_v26, %v3965_v47 }
0x104e   :  { %v4805_v7 = vpop.xlane.xlu0 %2114  ;;  %v4821_v21 = vpop.xlane.xlu2 %2117 }
0x104f   :  { %6327 = vst [vmem:[#allocation63_spill] sm:$0xff] %v4805_v7  ;;  %v2279_v56 = vperm.slane %v4805_v7, %v3965_v47  ;;  %v2285_v0 = vsel %vm1419_vm11, %v2278_v27, %v2284_v35  ;;  %v2280_v45 = vperm.slane %v4821_v21, %v3965_v47 }
0x1050   :  { %6329 = vst [vmem:[#allocation65_spill] sm:$0xff] %v4821_v21 }
0x1051   :  { %v2286_v58 = vsel %vm1421_vm12, %v2279_v56, %v2285_v0 }
0x1052   :  { %v2287_v4 = vsel %vm1423_vm13, %v2280_v45, %v2286_v58 }
0x1054   :  { %v4826_v13 = vpop.xlane.xlu1 %2120 }
0x1055   :  { %6330 = vst [vmem:[#allocation66_spill] sm:$0xff] %v4826_v13  ;;  %v2281_v32 = vperm.slane %v4826_v13, %v3965_v47 }
0x1057   :  { %v2288_v44 = vsel %vm1425_vm14, %v2281_v32, %v2287_v4 }
0x1061   :  { %v4818_v38 = vpop.permute.xlu0 %2910 }
0x108c   :  { %v4833_v23 = vpop.xlane.xlu0 %2123 }
0x108d   :  { %6331 = vst [vmem:[#allocation67_spill] sm:$0xff] %v4833_v23  ;;  %v2282_v11 = vperm.slane %v4833_v23, %v3965_v47 }
0x108f   :  { %v2289_v27 = vsel %vm1427_vm15, %v2282_v11, %v2288_v44 }
0x1090   :  { %v4842_v35 = vsel %vm2266_vm1, %v2289_v27, %v4726_v28 }
0x1091   :  { %v2300_v56 = vperm.slane %v4842_v35, 0  ;;  %v2294_v0 = vrot.slane %v4842_v35, 2  ;;  %v2293_v59 = vrot.slane %v4842_v35, 1  ;;  %v2295_v45 = vrot.slane %v4842_v35, 3 }
0x1092   :  { %v2298_v58 = vrot.slane %v4842_v35, 6  ;;  %v2296_v61 = vrot.slane %v4842_v35, 4  ;;  %v2297_v41 = vrot.slane %v4842_v35, 5 }
0x1093   :  { %v2316_v32 = vadd.f32 %v2300_v56, %v4354_v54  ;;  %v2302_v22 = vperm.slane %v2294_v0, 0  ;;  %v2301_v4 = vperm.slane %v2293_v59, 0  ;;  %v2303_v44 = vperm.slane %v2295_v45, 0 }
0x1094   :  { %v2306_v11 = vperm.slane %v2298_v58, 0  ;;  %v2304_v8 = vperm.slane %v2296_v61, 0 }
0x1095   :  { %v4852_v28 = vadd.f32 %v4451_v16, %v2316_v32  ;;  %v2318_v27 = vadd.f32 %v2302_v22, %v4354_v54  ;;  %v2317_v46 = vadd.f32 %v2301_v4, %v4354_v54  ;;  %v2319_v56 = vadd.f32 %v2303_v44, %v4354_v54 }
0x1096   :  { %v2322_v0 = vadd.f32 %v2306_v11, %v4354_v54  ;;  %v2320_v45 = vadd.f32 %v2304_v8, %v4354_v54  ;;  %v2912_v22 = vperm.slane %v4778_v62, 2  ;;  %v2926_v4 = vperm.slane %v4778_v62, 4 }
0x1097   :  { %v2388_v49 = vsel %vm1232_vm6, %v4852_v28, -inf  ;;  %v4860_v52 = vadd.f32 %v4461_v3, %v2318_v27  ;;  %v4863_v59 = vadd.f32 %v4453_v17, %v2317_v46  ;;  %v4873_v3 = vadd.f32 %v4459_v43, %v2319_v56 }
0x1098   :  { %2389 = vmax.xlane.f32.xlu2 %v2388_v49  ;;  %v2305_v17 = vperm.slane %v2297_v41, 0  ;;  %v4876_v46 = vadd.f32 %v4465_v19, %v2322_v0  ;;  %v4879_v49 = vadd.f32 %v4457_v31, %v2320_v45  ;;  %v2919_v41 = vperm.slane %v4778_v62, 3  ;;  %v4909_v45 = vpop.permute.xlu1 %2838 }
0x1099   :  { %v2394_v16 = vsel %vm1232_vm6, %v4860_v52, -inf  ;;  %v2391_v61 = vsel %vm1232_vm6, %v4863_v59, -inf  ;;  %v2397_v58 = vsel %vm1232_vm6, %v4873_v3, -inf  ;;  %v2299_v44 = vrot.slane %v4842_v35, 7 }
0x109a   :  { %2395 = vmax.xlane.f32.xlu1 %v2394_v16  ;;  %2392 = vmax.xlane.f32.xlu0 %v2391_v61  ;;  %v2321_v32 = vadd.f32 %v2305_v17, %v4354_v54  ;;  %v2406_v8 = vsel %vm1232_vm6, %v4876_v46, -inf  ;;  %v2400_v43 = vsel %vm1232_vm6, %v4879_v49, -inf  ;;  %v4903_v16 = vpop.permute.xlu2 %2903  ;;  %vm2840_vm1 = vcmp.eq.s32.totalorder %v4909_v45, 1  ;;  %v3770_v45 = vld [vmem:[%s6193_s10] sm:$0xff] }
0x109b   :  { %v2307_v11 = vperm.slane %v2299_v44, 0 }
0x109c   :  { %v4889_v19 = vadd.f32 %v4467_v25, %v2321_v32 }
0x109d   :  { %v2323_v27 = vadd.f32 %v2307_v11, %v4354_v54 }
0x109e   :  { %v2403_v31 = vsel %vm1232_vm6, %v4889_v19, -inf }
0x109f   :  { %v4899_v25 = vadd.f32 %v4463_v48, %v2323_v27 }
0x10a0   :  { %2398 = vmax.xlane.f32.xlu2 %v2397_v58 }
0x10a1   :  { %v2409_v56 = vsel %vm1232_vm6, %v4899_v25, -inf }
0x10a2   :  { %2407 = vmax.xlane.f32.xlu1 %v2406_v8  ;;  %2401 = vmax.xlane.f32.xlu0 %v2400_v43 }
0x10a8   :  { %2404 = vmax.xlane.f32.xlu2 %v2403_v31 }
0x10b6   :  { %2924 = vperm.xlu0 %3662, %v2919_v41  }
0x10bb   :  { %2917 = vperm.xlu1 %3666, %v2912_v22  }
0x10c0   :  { %2931 = vperm.xlu2 %3664, %v2926_v4  }
0x10e0   :  { %2410 = vmax.xlane.f32.xlu0 %v2409_v56 }
0x110b   :  { %v4905_v61 = vpop.xlane.xlu2 %2389 }
0x110c   :  { %v2562_v8 = vperm.slane %v4905_v61, %v3965_v47 }
0x110d   :  { %v4907_v0 = vpop.xlane.xlu0 %2392  ;;  %v4915_v32 = vpop.xlane.xlu1 %2395 }
0x110e   :  { %v2563_v48 = vperm.slane %v4907_v0, %v3965_v47  ;;  %v2564_v43 = vperm.slane %v4915_v32, %v3965_v47 }
0x1110   :  { %v2570_v31 = vsel %vm1415_vm4, %v2563_v48, %v2562_v8 }
0x1111   :  { %v2571_v44 = vsel %vm1417_vm5, %v2564_v43, %v2570_v31 }
0x1113   :  { %v4911_v17 = vpop.xlane.xlu2 %2398 }
0x1114   :  { %v2565_v41 = vperm.slane %v4911_v17, %v3965_v47 }
0x1115   :  { %v4913_v58 = vpop.xlane.xlu0 %2401  ;;  %v4936_v63 = vpop.xlane.xlu1 %2407 }
0x1116   :  { %v2566_v11 = vperm.slane %v4913_v58, %v3965_v47  ;;  %v2572_v27 = vsel %vm1419_vm11, %v2565_v41, %v2571_v44  ;;  %v2568_v2 = vperm.slane %v4936_v63, %v3965_v47 }
0x1118   :  { %v2573_v48 = vsel %vm1421_vm12, %v2566_v11, %v2572_v27 }
0x111b   :  { %v4926_v22 = vpop.xlane.xlu2 %2404 }
0x111c   :  { %v2567_v56 = vperm.slane %v4926_v22, %v3965_v47 }
0x111e   :  { %v2574_v8 = vsel %vm1423_vm13, %v2567_v56, %v2573_v48 }
0x111f   :  { %v2575_v31 = vsel %vm1425_vm14, %v2568_v2, %v2574_v8 }
0x1128   :  { %v4928_v4 = vpop.permute.xlu0 %2924 }
0x1153   :  { %v4942_v1 = vpop.xlane.xlu0 %2410 }
0x1154   :  { %v2569_v43 = vperm.slane %v4942_v1, %v3965_v47 }
0x1156   :  { %v2576_v41 = vsel %vm1427_vm15, %v2569_v43, %v2575_v31 }
0x1157   :  { %v4950_v44 = vsel %vm2553_vm2, %v2576_v41, %v4842_v35  ;;  %vm3122_vm2 = vcmp.gt.s32.totalorder %v4792_v29, 7 }
0x1158   :  { %v2587_v11 = vperm.slane %v4950_v44, 0  ;;  %v2581_v27 = vrot.slane %v4950_v44, 2  ;;  %v2580_v56 = vrot.slane %v4950_v44, 1  ;;  %v2582_v48 = vrot.slane %v4950_v44, 3 }
0x1159   :  { %v2584_v60 = vrot.slane %v4950_v44, 5  ;;  %v2583_v37 = vrot.slane %v4950_v44, 4  ;;  %v2585_v12 = vrot.slane %v4950_v44, 6 }
0x115a   :  { %v2603_v2 = vadd.f32 %v2587_v11, %v4354_v54  ;;  %v2589_v33 = vperm.slane %v2581_v27, 0  ;;  %v2588_v8 = vperm.slane %v2580_v56, 0  ;;  %v2590_v43 = vperm.slane %v2582_v48, 0 }
0x115b   :  { %v2592_v31 = vperm.slane %v2584_v60, 0  ;;  %v2591_v42 = vperm.slane %v2583_v37, 0 }
0x115c   :  { %v4960_v35 = vadd.f32 %v4469_v39, %v2603_v2  ;;  %v2605_v41 = vadd.f32 %v2589_v33, %v4354_v54  ;;  %v2604_v14 = vadd.f32 %v2588_v8, %v4354_v54  ;;  %v2606_v60 = vadd.f32 %v2590_v43, %v4354_v54 }
0x115d   :  { %v2586_v39 = vrot.slane %v4950_v44, 7  ;;  %v2608_v56 = vadd.f32 %v2592_v31, %v4354_v54  ;;  %v2607_v48 = vadd.f32 %v2591_v42, %v4354_v54 }
0x115e   :  { %v2675_v13 = vsel %vm1232_vm6, %v4960_v35, -inf  ;;  %v4968_v24 = vadd.f32 %v4473_v40, %v2605_v41  ;;  %v4971_v11 = vadd.f32 %v4471_v20, %v2604_v14  ;;  %v4982_v20 = vadd.f32 %v4477_v36, %v2606_v60 }
0x115f   :  { %2676 = vmax.xlane.f32.xlu2 %v2675_v13  ;;  %v2593_v40 = vperm.slane %v2585_v12, 0  ;;  %v4985_v14 = vadd.f32 %v4580_v5, %v2608_v56  ;;  %v6332_v13 = vld [vmem:[#allocation12_spill] sm:$0xff]  ;;  %v2594_v33 = vperm.slane %v2586_v39, 0  ;;  %v2933_v39 = vperm.slane %v4778_v62, 5 }
0x1160   :  { %v2681_v27 = vsel %vm1232_vm6, %v4968_v24, -inf  ;;  %v2678_v37 = vsel %vm1232_vm6, %v4971_v11, -inf  ;;  %v4988_v2 = vadd.f32 %v6332_v13, %v2607_v48  ;;  %v2684_v8 = vsel %vm1232_vm6, %v4982_v20, -inf }
0x1161   :  { %2682 = vmax.xlane.f32.xlu1 %v2681_v27  ;;  %2679 = vmax.xlane.f32.xlu0 %v2678_v37  ;;  %v2609_v43 = vadd.f32 %v2593_v40, %v4354_v54  ;;  %v2690_v42 = vsel %vm1232_vm6, %v4985_v14, -inf  ;;  %v2610_v12 = vadd.f32 %v2594_v33, %v4354_v54  ;;  %v2940_v54 = vperm.slane %v4778_v62, 6  ;;  %v2918_v27 = vpop.permute.xlu1 %2917 }
0x1162   :  { %v2687_v36 = vsel %vm1232_vm6, %v4988_v2, -inf }
0x1163   :  { %v4999_v5 = vadd.f32 %v4582_v57, %v2609_v43  ;;  %v5002_v31 = vadd.f32 %v4683_v30, %v2610_v12  ;;  %v2947_v57 = vperm.slane %v4778_v62, 7  ;;  %v2932_v30 = vpop.permute.xlu2 %2931 }
0x1165   :  { %v2693_v41 = vsel %vm1232_vm6, %v4999_v5, -inf  ;;  %v2696_v60 = vsel %vm1232_vm6, %v5002_v31, -inf }
0x1167   :  { %2685 = vmax.xlane.f32.xlu2 %v2684_v8 }
0x1169   :  { %2691 = vmax.xlane.f32.xlu1 %v2690_v42  ;;  %2688 = vmax.xlane.f32.xlu0 %v2687_v36 }
0x116f   :  { %2694 = vmax.xlane.f32.xlu2 %v2693_v41 }
0x1171   :  { %2697 = vmax.xlane.f32.xlu0 %v2696_v60 }
0x1182   :  { %2938 = vperm.xlu1 %3666, %v2933_v39  }
0x1185   :  { %2945 = vperm.xlu0 %3662, %v2940_v54  }
0x1187   :  { %2952 = vperm.xlu2 %3664, %v2947_v57  }
0x118a   :  { %3669 = vset.pattern.permute.xlu1 %v6292_v50 }
0x118d   :  { %3668 = vset.pattern.permute.xlu0 %v6292_v50 }
0x118f   :  { %3667 = vset.pattern.permute.xlu2 %v6292_v50 }
0x11d2   :  { %v5014_v37 = vpop.xlane.xlu2 %2676 }
0x11d3   :  { %v2849_v62 = vperm.slane %v5014_v37, %v3965_v47 }
0x11d4   :  { %v5016_v56 = vpop.xlane.xlu1 %2682  ;;  %v5018_v48 = vpop.xlane.xlu0 %2679 }
0x11d5   :  { %v2850_v40 = vperm.slane %v5018_v48, %v3965_v47  ;;  %v2851_v13 = vperm.slane %v5016_v56, %v3965_v47 }
0x11d7   :  { %v2857_v33 = vsel %vm1415_vm4, %v2850_v40, %v2849_v62 }
0x11d8   :  { %v2858_v36 = vsel %vm1417_vm5, %v2851_v13, %v2857_v33 }
0x11da   :  { %v5027_v8 = vpop.xlane.xlu2 %2685 }
0x11db   :  { %v2852_v43 = vperm.slane %v5027_v8, %v3965_v47 }
0x11dc   :  { %v5031_v42 = vpop.xlane.xlu0 %2688  ;;  %v5034_v12 = vpop.xlane.xlu1 %2691 }
0x11dd   :  { %v2859_v41 = vsel %vm1419_vm11, %v2852_v43, %v2858_v36  ;;  %v2853_v60 = vperm.slane %v5031_v42, %v3965_v47  ;;  %v2854_v39 = vperm.slane %v5034_v12, %v3965_v47 }
0x11df   :  { %v2860_v54 = vsel %vm1421_vm12, %v2853_v60, %v2859_v41 }
0x11e0   :  { %v2861_v62 = vsel %vm1423_vm13, %v2854_v39, %v2860_v54 }
0x11e2   :  { %v5042_v57 = vpop.xlane.xlu2 %2694 }
0x11e3   :  { %v2855_v40 = vperm.slane %v5042_v57, %v3965_v47 }
0x11e4   :  { %v5047_v13 = vpop.xlane.xlu0 %2697 }
0x11e5   :  { %v2862_v33 = vsel %vm1425_vm14, %v2855_v40, %v2861_v62  ;;  %v2856_v43 = vperm.slane %v5047_v13, %v3965_v47 }
0x11e7   :  { %v2863_v36 = vsel %vm1427_vm15, %v2856_v43, %v2862_v33 }
0x11e8   :  { %v5055_v41 = vsel %vm2840_vm1, %v2863_v36, %v4950_v44 }
0x11e9   :  { %v2874_v60 = vperm.slane %v5055_v41, 0  ;;  %v2868_v21 = vrot.slane %v5055_v41, 2  ;;  %v2867_v39 = vrot.slane %v5055_v41, 1  ;;  %v2871_v54 = vrot.slane %v5055_v41, 5 }
0x11ea   :  { %v2869_v40 = vrot.slane %v5055_v41, 3  ;;  %v2870_v62 = vrot.slane %v5055_v41, 4 }
0x11eb   :  { %v2890_v33 = vadd.f32 %v3770_v45, %v2874_v60  ;;  %v2876_v43 = vperm.slane %v2868_v21, 0  ;;  %v2875_v44 = vperm.slane %v2867_v39, 0  ;;  %v2879_v51 = vperm.slane %v2871_v54, 0 }
0x11ec   :  { %v2877_v36 = vperm.slane %v2869_v40, 0  ;;  %v2878_v18 = vperm.slane %v2870_v62, 0  ;;  %v2873_v60 = vrot.slane %v5055_v41, 7  ;;  %v2872_v39 = vrot.slane %v5055_v41, 6 }
0x11ed   :  { %v5067_v10 = vadd.f32 %v4903_v16, %v2890_v33  ;;  %v2892_v26 = vadd.f32 %v3770_v45, %v2876_v43  ;;  %v2891_v53 = vadd.f32 %v3770_v45, %v2875_v44  ;;  %v2895_v54 = vadd.f32 %v3770_v45, %v2879_v51 }
0x11ee   :  { %v2893_v9 = vadd.f32 %v3770_v45, %v2877_v36  ;;  %v2894_v40 = vadd.f32 %v3770_v45, %v2878_v18  ;;  %v2880_v62 = vperm.slane %v2872_v39, 0 }
0x11ef   :  { %v2962_v23 = vsel %vm1232_vm6, %v5067_v10, -inf  ;;  %v5071_v15 = vadd.f32 %v2918_v27, %v2892_v26  ;;  %v2955_v7 = vadd.f32 %v4818_v38, %v2891_v53  ;;  %v2881_v53 = vperm.slane %v2873_v60, 0 }
0x11f0   :  { %2963 = vmax.xlane.f32.xlu1 %v2962_v23  ;;  %v5080_v26 = vadd.f32 %v4928_v4, %v2893_v9  ;;  %v2958_v23 = vadd.f32 %v2932_v30, %v2894_v40  ;;  %v2896_v36 = vadd.f32 %v3770_v45, %v2880_v62  ;;  %v2953_v4 = vpop.permute.xlu2 %2952 }
0x11f1   :  { %v2968_v21 = vsel %vm1232_vm6, %v5071_v15, -inf  ;;  %v2965_v16 = vsel %vm1232_vm6, %v2955_v7, -inf  ;;  %v2897_v44 = vadd.f32 %v3770_v45, %v2881_v53  ;;  %v3123_v45 = vsel %vm3122_vm2, 1, %v6292_v50 }
0x11f2   :  { %2969 = vmax.xlane.f32.xlu2 %v2968_v21  ;;  %2966 = vmax.xlane.f32.xlu0 %v2965_v16  ;;  %v2971_v33 = vsel %vm1232_vm6, %v5080_v26, -inf  ;;  %v2974_v51 = vsel %vm1232_vm6, %v2958_v23, -inf }
0x11f3   :  { %v5091_v60 = vadd.f32 %v2953_v4, %v2897_v44 }
0x11f4   :  { %v2939_v27 = vpop.permute.xlu1 %2938 }
0x11f5   :  { %v5082_v38 = vadd.f32 %v2939_v27, %v2895_v54  ;;  %v2983_v21 = vsel %vm1232_vm6, %v5091_v60, -inf }
0x11f7   :  { %v2946_v43 = vpop.permute.xlu0 %2945  ;;  %v2977_v18 = vsel %vm1232_vm6, %v5082_v38, -inf }
0x11f8   :  { %2972 = vmax.xlane.f32.xlu1 %v2971_v33  ;;  %v5089_v9 = vadd.f32 %v2946_v43, %v2896_v36 }
0x11fa   :  { %2978 = vmax.xlane.f32.xlu2 %v2977_v18  ;;  %2975 = vmax.xlane.f32.xlu0 %v2974_v51  ;;  %v2980_v30 = vsel %vm1232_vm6, %v5089_v9, -inf }
0x1200   :  { %2981 = vmax.xlane.f32.xlu1 %v2980_v30 }
0x1202   :  { %2984 = vmax.xlane.f32.xlu0 %v2983_v21 }
0x1212   :  { %3125 = vperm.xlu2 %3667, %v3123_v45  }
0x1263   :  { %v2964_v16 = vpop.xlane.xlu1 %2963 }
0x1264   :  { %v3136_v62 = vperm.slane %v2964_v16, %v3965_v47 }
0x1265   :  { %v2970_v39 = vpop.xlane.xlu2 %2969  ;;  %v2967_v40 = vpop.xlane.xlu0 %2966 }
0x1266   :  { %vm2987_vm1 = vcmp.ge.f32.partialorder %v2955_v7, %v2967_v40  ;;  %v3137_v27 = vperm.slane %v2967_v40, %v3965_v47  ;;  %v3138_v43 = vperm.slane %v2970_v39, %v3965_v47  ;;  %vm2988_vm8 = vcmp.ge.f32.partialorder %v5071_v15, %v2970_v39 }
0x1267   :  { %v2995_v54 = vsel %vm2987_vm1, %v3965_v47, 8 }
0x1268   :  { %v5104_v53 = vsel %vm1232_vm6, %v2995_v54, 2147483647  ;;  %v3144_v50 = vsel %vm1415_vm4, %v3137_v27, %v3136_v62 }
0x1269   :  { %v3019_v33 = vshra.s32 %v5104_v53, 16  ;;  %v3145_v4 = vsel %vm1417_vm5, %v3138_v43, %v3144_v50 }
0x126b   :  { %v2973_v44 = vpop.xlane.xlu1 %2972  ;;  %v5110_v36 = vcvt.s32.f32 %v3019_v33 }
0x126c   :  { %v3139_v7 = vperm.slane %v2973_v44, %v3965_v47 }
0x126d   :  { %v2979_v18 = vpop.xlane.xlu2 %2978  ;;  %3022 = vmin.xlane.f32.xlu0 %v5110_v36  ;;  %v2976_v51 = vpop.xlane.xlu0 %2975 }
0x126e   :  { %vm2990_vm1 = vcmp.ge.f32.partialorder %v2958_v23, %v2976_v51  ;;  %v3146_v30 = vsel %vm1419_vm11, %v3139_v7, %v3145_v4  ;;  %v3140_v45 = vperm.slane %v2976_v51, %v3965_v47  ;;  %v3141_v54 = vperm.slane %v2979_v18, %v3965_v47 }
0x126f   :  { %v2998_v21 = vsel %vm2990_vm1, %v3965_v47, 8  ;;  %vm2986_vm1 = vcmp.ge.f32.partialorder %v5067_v10, %v2964_v16  ;;  %vm2991_vm7 = vcmp.ge.f32.partialorder %v5082_v38, %v2979_v18 }
0x1270   :  { %v5119_v40 = vsel %vm1232_vm6, %v2998_v21, 2147483647  ;;  %v3147_v62 = vsel %vm1421_vm12, %v3140_v45, %v3146_v30  ;;  %v3672_v30 = vld [vmem:[%s6194_s9] ss:$0 sm:$0xff]  ;;  %v2994_v45 = vsel %vm2986_vm1, %v3965_v47, 8 }
0x1271   :  { %v3064_v27 = vshra.s32 %v5119_v40, 16  ;;  %v3148_v7 = vsel %vm1423_vm13, %v3141_v54, %v3147_v62  ;;  %v3002_v10 = vsel %vm1232_vm6, %v2994_v45, 2147483647  ;;  %v2996_v62 = vsel %vm2988_vm8, %v3965_v47, 8 }
0x1272   :  { %v3004_v16 = vshra.s32 %v3002_v10, 16  ;;  %vm2989_vm8 = vcmp.ge.f32.partialorder %v5080_v26, %v2973_v44 }
0x1273   :  { %v2982_v33 = vpop.xlane.xlu1 %2981  ;;  %v5124_v6 = vcvt.s32.f32 %v3064_v27 }
0x1274   :  { %v3142_v23 = vperm.slane %v2982_v33, %v3965_v47  ;;  %vm2992_vm1 = vcmp.ge.f32.partialorder %v5089_v9, %v2982_v33 }
0x1275   :  { %3067 = vmin.xlane.f32.xlu2 %v5124_v6  ;;  %v2985_v43 = vpop.xlane.xlu0 %2984  ;;  %v3126_v50 = vpop.permute.xlu2 %3125 }
0x1276   :  { %v3143_v51 = vperm.slane %v2985_v43, %v3965_v47  ;;  %vm3127_vm3 = vcmp.eq.s32.totalorder %v3126_v50, 1  ;;  %v3149_v4 = vsel %vm1425_vm14, %v3142_v23, %v3148_v7  ;;  %v3006_v23 = vcvt.s32.f32 %v3004_v16 }
0x1277   :  { %v3032_v50 = vsel %vm1232_vm6, %v2996_v62, 2147483647  ;;  %v3003_v16 = vand.u32 65535, %v3002_v10  ;;  %v3000_v10 = vsel %vm2992_vm1, %v3965_v47, 8 }
0x1278   :  { %v3150_v21 = vsel %vm1427_vm15, %v3143_v51, %v3149_v4  ;;  %v3034_v7 = vshra.s32 %v3032_v50, 16 }
0x1279   :  { %v3152_v27 = vsel %vm3127_vm3, %v3150_v21, %v5055_v41  ;;  %v2999_v41 = vsel %vm2991_vm7, %v3965_v47, 8  ;;  %vm2993_vm3 = vcmp.ge.f32.partialorder %v5091_v60, %v2985_v43  ;;  %v2997_v60 = vsel %vm2989_vm8, %v3965_v47, 8 }
0x127a   :  { %v3157_v55 = vadd.f32 %v3672_v30, %v3152_v27  ;;  %v3036_v51 = vcvt.s32.f32 %v3034_v7  ;;  %v3077_v4 = vsel %vm1232_vm6, %v2999_v41, 2147483647  ;;  %v3001_v15 = vsel %vm2993_vm3, %v3965_v47, 8 }
0x127b   :  { %v3079_v30 = vshra.s32 %v3077_v4, 16  ;;  %v3107_v21 = vsel %vm1232_vm6, %v3001_v15, 2147483647  ;;  %v5159_v7 = vsel %vm1232_vm6, %v2997_v60, 2147483647  ;;  %v3078_v60 = vand.u32 65535, %v3077_v4 }
0x127c   :  { %v3158_v54 = vsel %vm1232_vm6, %v3157_v55, -inf  ;;  %v3109_v45 = vshra.s32 %v3107_v21, 16  ;;  %v3049_v44 = vshra.s32 %v5159_v7, 16 }
0x127d   :  { %3159 = vmax.xlane.f32.xlu1 %v3158_v54  ;;  %v3081_v39 = vcvt.s32.f32 %v3079_v30  ;;  %v3033_v30 = vand.u32 65535, %v3032_v50  ;;  %v3063_v50 = vand.u32 65535, %v5119_v40 }
0x127e   :  { %v3111_v27 = vcvt.s32.f32 %v3109_v45  ;;  %v5168_v15 = vcvt.s32.f32 %v3049_v44  ;;  %v5171_v45 = vsel %vm1232_vm6, %v3000_v10, 2147483647  ;;  %v3018_v44 = vand.u32 65535, %v5104_v53 }
0x127f   :  { %v3094_v33 = vshra.s32 %v5171_v45, 16 }
0x1280   :  { %v3020_v4 = vcvt.s32.f32 %v3018_v44 }
0x1285   :  { %3007 = vmin.xlane.f32.xlu1 %v3006_v23 }
0x128d   :  { %3037 = vmin.xlane.f32.xlu1 %v3036_v51 }
0x1295   :  { %3082 = vmin.xlane.f32.xlu1 %v3081_v39 }
0x129d   :  { %3112 = vmin.xlane.f32.xlu1 %v3111_v27 }
0x12f0   :  { %v3160_v38 = vpop.xlane.xlu1 %3159 }
0x12f1   :  { %vm3161_vm7 = vcmp.ge.f32.partialorder %v3157_v55, %v3160_v38  ;;  %v3005_v55 = vcvt.s32.f32 %v3003_v16 }
0x12f2   :  { %v3162_v18 = vsel %vm3161_vm7, %v3965_v47, 8 }
0x12f3   :  { %v5152_v54 = vsel %vm1232_vm6, %v3162_v18, 2147483647  ;;  %v3035_v18 = vcvt.s32.f32 %v3033_v30 }
0x12f4   :  { %v3165_v43 = vshra.s32 %v5152_v54, 16 }
0x12f6   :  { %v5156_v62 = vcvt.s32.f32 %v3165_v43  ;;  %v5181_v43 = vcvt.s32.f32 %v3094_v33 }
0x12f8   :  { %3168 = vmin.xlane.f32.xlu0 %v5156_v62  ;;  %v5162_v41 = vpop.xlane.xlu1 %3007 }
0x12f9   :  { %vm3009_vm3 = vcmp.eq.f32.partialorder %v3006_v23, %v5162_v41  ;;  %v5178_v23 = vpop.xlane.xlu2 %3067 }
0x12fa   :  { %v3010_v26 = vsel %vm3009_vm3, %v3005_v55, inf  ;;  %vm3069_vm7 = vcmp.eq.f32.partialorder %v5124_v6, %v5178_v23  ;;  %v3065_v55 = vcvt.s32.f32 %v3063_v50  ;;  %vm2700_vm3 = vcmp.ge.f32.partialorder %v4971_v11, %v5018_v48 }
0x12fb   :  { %3011 = vmin.xlane.f32.xlu1 %v3010_v26  ;;  %v5188_v26 = vpop.xlane.xlu0 %3022  ;;  %v3108_v6 = vand.u32 65535, %v3107_v21  ;;  %v2708_v30 = vsel %vm2700_vm3, %v3965_v47, 8  ;;  %vm2704_vm3 = vcmp.ge.f32.partialorder %v4985_v14, %v5034_v12 }
0x12fc   :  { %v3070_v10 = vsel %vm3069_vm7, %v3065_v55, inf  ;;  %v5203_v33 = vsel %vm1232_vm6, %v2708_v30, 2147483647  ;;  %v2712_v50 = vsel %vm2704_vm3, %v3965_v47, 8 }
0x12fd   :  { %v2732_v11 = vshra.s32 %v5203_v33, 16 }
0x1300   :  { %3052 = vmin.xlane.f32.xlu0 %v5168_v15  ;;  %v5174_v38 = vpop.xlane.xlu1 %3037 }
0x1301   :  { %vm3039_vm8 = vcmp.eq.f32.partialorder %v3036_v51, %v5174_v38  ;;  %v3080_v51 = vcvt.s32.f32 %v3078_v60 }
0x1302   :  { %v3040_v9 = vsel %vm3039_vm8, %v3035_v18, inf  ;;  %vm3024_vm8 = vcmp.eq.f32.partialorder %v5110_v36, %v5188_v26  ;;  %v5209_v36 = vcvt.s32.f32 %v2732_v11 }
0x1303   :  { %3041 = vmin.xlane.f32.xlu1 %v3040_v9  ;;  %v3025_v18 = vsel %vm3024_vm8, %v3020_v4, inf  ;;  %vm2706_vm8 = vcmp.ge.f32.partialorder %v5002_v31, %v5047_v13  ;;  %v3048_v31 = vand.u32 65535, %v5159_v7 }
0x1304   :  { %v2714_v55 = vsel %vm2706_vm8, %v3965_v47, 8 }
0x1305   :  { %v5232_v14 = vsel %vm1232_vm6, %v2714_v55, 2147483647 }
0x1306   :  { %v2822_v12 = vshra.s32 %v5232_v14, 16 }
0x1308   :  { %3097 = vmin.xlane.f32.xlu0 %v5181_v43  ;;  %v5186_v16 = vpop.xlane.xlu1 %3082  ;;  %v5236_v44 = vcvt.s32.f32 %v2822_v12 }
0x1309   :  { %vm3084_vm1 = vcmp.eq.f32.partialorder %v3081_v39, %v5186_v16  ;;  %v3110_v39 = vcvt.s32.f32 %v3108_v6  ;;  %v3050_v6 = vcvt.s32.f32 %v3048_v31 }
0x130a   :  { %v5192_v40 = vsel %vm3084_vm1, %v3080_v51, inf  ;;  %vm2702_vm1 = vcmp.ge.f32.partialorder %v4982_v20, %v5027_v8  ;;  %v5222_v20 = vsel %vm1232_vm6, %v2712_v50, 2147483647 }
0x130b   :  { %3071 = vmin.xlane.f32.xlu1 %v3070_v10  ;;  %v2710_v48 = vsel %vm2702_vm1, %v3965_v47, 8  ;;  %v2792_v8 = vshra.s32 %v5222_v20, 16  ;;  %vm2699_vm1 = vcmp.ge.f32.partialorder %v4960_v35, %v5014_v37 }
0x130c   :  { %v5212_v21 = vsel %vm1232_vm6, %v2710_v48, 2147483647 }
0x130d   :  { %v5229_v51 = vcvt.s32.f32 %v2792_v8 }
0x1310   :  { %v5199_v9 = vpop.xlane.xlu1 %3112  ;;  %3026 = vmin.xlane.f32.xlu0 %v3025_v18  ;;  %v3164_v18 = vand.u32 65535, %v5152_v54  ;;  %v3014_v54 = vcvt.f32.s32 %v5162_v41 }
0x1311   :  { %vm3114_vm7 = vcmp.eq.f32.partialorder %v3111_v27, %v5199_v9  ;;  %v2762_v27 = vshra.s32 %v5212_v21, 16 }
0x1312   :  { %v3115_v53 = vsel %vm3114_vm7, %v3110_v39, inf  ;;  %v3093_v39 = vand.u32 65535, %v5171_v45  ;;  %v3166_v11 = vcvt.s32.f32 %v3164_v18  ;;  %v3015_v12 = vshll.u32 %v3014_v54, 16 }
0x1313   :  { %3116 = vmin.xlane.f32.xlu1 %v3115_v53  ;;  %v5219_v60 = vcvt.s32.f32 %v2762_v27  ;;  %v2707_v53 = vsel %vm2699_vm1, %v3965_v47, 8  ;;  %v3029_v27 = vcvt.f32.s32 %v5188_v26  ;;  %vm2703_vm1 = vcmp.ge.f32.partialorder %v4988_v2, %v5031_v42 }
0x1314   :  { %v3095_v48 = vcvt.s32.f32 %v3093_v39 }
0x1315   :  { %v3030_v41 = vshll.u32 %v3029_v27, 16 }
0x131b   :  { %2735 = vmin.xlane.f32.xlu1 %v5209_v36 }
0x1323   :  { %2765 = vmin.xlane.f32.xlu1 %v5219_v60 }
0x132b   :  { %2795 = vmin.xlane.f32.xlu1 %v5229_v51 }
0x1333   :  { %2825 = vmin.xlane.f32.xlu1 %v5236_v44 }
0x136b   :  { %v5239_v10 = vpop.xlane.xlu0 %3168 }
0x136c   :  { %vm3170_vm3 = vcmp.eq.f32.partialorder %v5156_v62, %v5239_v10  ;;  %v3044_v62 = vcvt.f32.s32 %v5174_v38 }
0x136d   :  { %v3171_v35 = vsel %vm3170_vm3, %v3166_v11, inf  ;;  %vm2705_vm3 = vcmp.ge.f32.partialorder %v4999_v5, %v5042_v57 }
0x136e   :  { %v3012_v4 = vpop.xlane.xlu1 %3011  ;;  %v3045_v31 = vshll.u32 %v3044_v62, 16  ;;  %v2713_v42 = vsel %vm2705_vm3, %v3965_v47, 8 }
0x136f   :  { %v3013_v50 = vcvt.f32.s32 %v3012_v4  ;;  %v5288_v62 = vsel %vm1232_vm6, %v2713_v42, 2147483647 }
0x1370   :  { %v2807_v27 = vshra.s32 %v5288_v62, 16 }
0x1373   :  { %v5242_v13 = vpop.xlane.xlu0 %3052 }
0x1374   :  { %vm3054_vm7 = vcmp.eq.f32.partialorder %v5168_v15, %v5242_v13  ;;  %v5258_v15 = vsel %vm1232_vm6, %v2707_v53, 2147483647 }
0x1375   :  { %v3055_v30 = vsel %vm3054_vm7, %v3050_v6, inf  ;;  %vm2701_vm7 = vcmp.ge.f32.partialorder %v4968_v24, %v5016_v56 }
0x1376   :  { %3056 = vmin.xlane.f32.xlu0 %v3055_v30  ;;  %v3042_v45 = vpop.xlane.xlu1 %3041  ;;  %v2709_v55 = vsel %vm2701_vm7, %v3965_v47, 8  ;;  %v3016_v30 = vadd.s32 %v3015_v12, %v3013_v50  ;;  %v5291_v50 = vcvt.s32.f32 %v2807_v27 }
0x1377   :  { %v3043_v8 = vcvt.f32.s32 %v3042_v45  ;;  %v5270_v24 = vsel %vm1232_vm6, %v2709_v55, 2147483647  ;;  %v3059_v55 = vcvt.f32.s32 %v5242_v13 }
0x1378   :  { %v3185_v38 = vperm.slane %v3016_v30, %v3965_v47  ;;  %v2747_v4 = vshra.s32 %v5270_v24, 16 }
0x1379   :  { %v3046_v53 = vadd.s32 %v3045_v31, %v3043_v8  ;;  %v3175_v8 = vcvt.f32.s32 %v5239_v10  ;;  %v3089_v10 = vcvt.f32.s32 %v5186_v16 }
0x137b   :  { %v5253_v7 = vpop.xlane.xlu0 %3097  ;;  %v3187_v11 = vperm.slane %v3046_v53, %v3965_v47  ;;  %v3176_v31 = vshll.u32 %v3175_v8, 16  ;;  %v3090_v27 = vshll.u32 %v3089_v10, 16 }
0x137c   :  { %vm3099_vm8 = vcmp.eq.f32.partialorder %v5181_v43, %v5253_v7  ;;  %v2717_v43 = vshra.s32 %v5258_v15, 16 }
0x137d   :  { %v3100_v37 = vsel %vm3099_vm8, %v3095_v48, inf  ;;  %v2711_v48 = vsel %vm2703_vm1, %v3965_v47, 8  ;;  %vm3178_vm8 = vcmp.eq.s32.totalorder %v4792_v29, 8  ;;  %vm2413_vm1 = vcmp.ge.f32.partialorder %v4863_v59, %v4907_v0 }
0x137e   :  { %3172 = vmin.xlane.f32.xlu0 %v3171_v35  ;;  %3101 = vmin.xlane.f32.xlu2 %v3100_v37  ;;  %v5267_v39 = vcvt.s32.f32 %v2717_v43  ;;  %v2775_v54 = vsel %vm1232_vm6, %v2711_v48, 2147483647 }
0x137f   :  { %v2777_v2 = vshra.s32 %v2775_v54, 16 }
0x1381   :  { %v2779_v45 = vcvt.s32.f32 %v2777_v2 }
0x1383   :  { %v3027_v6 = vpop.xlane.xlu0 %3026 }
0x1384   :  { %v3028_v18 = vcvt.f32.s32 %v3027_v6  ;;  %v3060_v6 = vshll.u32 %v3059_v55, 16 }
0x1386   :  { %v3031_v56 = vadd.s32 %v3030_v41, %v3028_v18  ;;  %3086 = vmin.xlane.f32.xlu0 %v5192_v40  ;;  %2720 = vmin.xlane.f32.xlu2 %v5267_v39  ;;  %v2749_v40 = vcvt.s32.f32 %v2747_v4  ;;  %v3072_v41 = vpop.xlane.xlu1 %3071  ;;  %v3074_v18 = vcvt.f32.s32 %v5178_v23 }
0x1388   :  { %v3186_v26 = vperm.slane %v3031_v56, %v3965_v47  ;;  %v3075_v4 = vshll.u32 %v3074_v18, 16 }
0x138a   :  { %v3193_v35 = vsel %vm1415_vm4, %v3186_v26, %v3185_v38  ;;  %v3104_v38 = vcvt.f32.s32 %v5253_v7  ;;  %v3073_v26 = vcvt.f32.s32 %v3072_v41 }
0x138b   :  { %v3194_v37 = vsel %vm1417_vm5, %v3187_v11, %v3193_v35 }
0x138c   :  { %v3105_v35 = vshll.u32 %v3104_v38, 16  ;;  %v3076_v2 = vadd.s32 %v3075_v4, %v3073_v26  ;;  %v2776_v38 = vand.u32 65535, %v2775_v54  ;;  %v2421_v4 = vsel %vm2413_vm1, %v3965_v47, 8 }
0x138d   :  { %v5332_v54 = vsel %vm1232_vm6, %v2421_v4, 2147483647 }
0x138e   :  { %2750 = vmin.xlane.f32.xlu2 %v2749_v40 }
0x1396   :  { %2780 = vmin.xlane.f32.xlu2 %v2779_v45 }
0x139e   :  { %2810 = vmin.xlane.f32.xlu2 %v5291_v50 }
0x13e9   :  { %v3057_v43 = vpop.xlane.xlu0 %3056 }
0x13ea   :  { %v3058_v5 = vcvt.f32.s32 %v3057_v43 }
0x13ec   :  { %v3061_v53 = vadd.s32 %v3060_v6, %v3058_v5  ;;  %v3189_v5 = vperm.slane %v3076_v2, %v3965_v47 }
0x13ee   :  { %v3188_v23 = vperm.slane %v3061_v53, %v3965_v47 }
0x13f0   :  { %v3195_v8 = vsel %vm1419_vm11, %v3188_v23, %v3194_v37 }
0x13f1   :  { %v3102_v57 = vpop.xlane.xlu2 %3101  ;;  %v3173_v12 = vpop.xlane.xlu0 %3172  ;;  %v3196_v6 = vsel %vm1421_vm12, %v3189_v5, %v3195_v8 }
0x13f2   :  { %v3174_v30 = vcvt.f32.s32 %v3173_v12  ;;  %v3103_v11 = vcvt.f32.s32 %v3102_v57  ;;  %v2746_v57 = vand.u32 65535, %v5270_v24  ;;  %v2778_v24 = vcvt.s32.f32 %v2776_v38 }
0x13f4   :  { %v5298_v56 = vadd.s32 %v3176_v31, %v3174_v30  ;;  %v3106_v16 = vadd.s32 %v3105_v35, %v3103_v11  ;;  %v2748_v18 = vcvt.s32.f32 %v2746_v57 }
0x13f6   :  { %v3179_v13 = vsel %vm3178_vm8, %v5298_v56, 0  ;;  %v3191_v31 = vperm.slane %v3106_v16, %v3965_v47  ;;  %vm2415_vm8 = vcmp.ge.f32.partialorder %v4873_v3, %v4911_v17 }
0x13f7   :  { %v5305_v48 = vsel %vm3122_vm2, %v3179_v13, 0  ;;  %v2716_v13 = vand.u32 65535, %v5258_v15  ;;  %v2423_v59 = vsel %vm2415_vm8, %v3965_v47, 8 }
0x13f8   :  { %3182 = vperm.xlu0 %3668, %v5305_v48   ;;  %v5341_v15 = vsel %vm1232_vm6, %v2423_v59, 2147483647 }
0x13f9   :  { %v5309_v42 = vpop.xlane.xlu2 %2720  ;;  %v3087_v7 = vpop.xlane.xlu0 %3086 }
0x13fa   :  { %v3088_v43 = vcvt.f32.s32 %v3087_v7  ;;  %vm2722_vm3 = vcmp.eq.f32.partialorder %v5267_v39, %v5309_v42  ;;  %v2475_v39 = vshra.s32 %v5341_v15, 16  ;;  %v3117_v7 = vpop.xlane.xlu1 %3116 }
0x13fc   :  { %v3091_v55 = vadd.s32 %v3090_v27, %v3088_v43  ;;  %v5348_v35 = vcvt.s32.f32 %v2475_v39  ;;  %v3118_v43 = vcvt.f32.s32 %v3117_v7 }
0x13fe   :  { %v3190_v12 = vperm.slane %v3091_v55, %v3965_v47 }
0x1400   :  { %v3197_v41 = vsel %vm1423_vm13, %v3190_v12, %v3196_v6 }
0x1401   :  { %v5318_v30 = vpop.xlane.xlu2 %2750  ;;  %v3198_v53 = vsel %vm1425_vm14, %v3191_v31, %v3197_v41 }
0x1402   :  { %vm2752_vm2 = vcmp.eq.f32.partialorder %v2749_v40, %v5318_v30  ;;  %v2718_v40 = vcvt.s32.f32 %v2716_v13  ;;  %v5358_v27 = vpop.xlane.xlu1 %2735  ;;  %v2806_v13 = vand.u32 65535, %v5288_v62 }
0x1403   :  { %v2753_v37 = vsel %vm2752_vm2, %v2748_v18, inf  ;;  %vm2418_vm2 = vcmp.ge.f32.partialorder %v4876_v46, %v4936_v63  ;;  %v3119_v46 = vcvt.f32.s32 %v5199_v9  ;;  %vm2737_vm1 = vcmp.eq.f32.partialorder %v5209_v36, %v5358_v27 }
0x1404   :  { %2754 = vmin.xlane.f32.xlu1 %v2753_v37  ;;  %v2723_v11 = vsel %vm2722_vm3, %v2718_v40, inf  ;;  %v2426_v23 = vsel %vm2418_vm2, %v3965_v47, 8 }
0x1405   :  { %v5351_v3 = vsel %vm1232_vm6, %v2426_v23, 2147483647  ;;  %v3120_v16 = vshll.u32 %v3119_v46, 16  ;;  %v2821_v46 = vand.u32 65535, %v5232_v14 }
0x1406   :  { %v2520_v17 = vshra.s32 %v5351_v3, 16 }
0x1407   :  { %v3121_v8 = vadd.s32 %v3120_v16, %v3118_v43 }
0x1408   :  { %v5355_v2 = vcvt.s32.f32 %v2520_v17 }
0x1409   :  { %v5322_v26 = vpop.xlane.xlu2 %2780  ;;  %v3192_v5 = vperm.slane %v3121_v8, %v3965_v47 }
0x140a   :  { %vm2782_vm7 = vcmp.eq.f32.partialorder %v2779_v45, %v5322_v26  ;;  %v2445_v45 = vshra.s32 %v5332_v54, 16  ;;  %v5360_v63 = vpop.xlane.xlu1 %2765 }
0x140b   :  { %v2783_v10 = vsel %vm2782_vm7, %v2778_v24, inf  ;;  %v3199_v12 = vsel %vm1427_vm15, %v3192_v5, %v3198_v53  ;;  %v2757_v53 = vcvt.f32.s32 %v5318_v30  ;;  %vm2767_vm8 = vcmp.eq.f32.partialorder %v5219_v60, %v5360_v63 }
0x140c   :  { %2784 = vmin.xlane.f32.xlu1 %v2783_v10  ;;  %v5338_v0 = vcvt.s32.f32 %v2445_v45  ;;  %v2731_v10 = vand.u32 65535, %v5203_v33  ;;  %v2761_v33 = vand.u32 65535, %v5212_v21  ;;  %v2823_v60 = vcvt.s32.f32 %v2821_v46 }
0x140d   :  { %v2758_v45 = vshll.u32 %v2757_v53, 16  ;;  %v2772_v46 = vcvt.f32.s32 %v5360_v63 }
0x140e   :  { %v2733_v40 = vcvt.s32.f32 %v2731_v10  ;;  %v2763_v36 = vcvt.s32.f32 %v2761_v33 }
0x1410   :  { %v2738_v39 = vsel %vm2737_vm1, %v2733_v40, inf  ;;  %v2768_v62 = vsel %vm2767_vm8, %v2763_v36, inf  ;;  %vm2416_vm8 = vcmp.ge.f32.partialorder %v4879_v49, %v4913_v58 }
0x1411   :  { %v5371_v24 = vpop.xlane.xlu2 %2810 }
0x1412   :  { %v5363_v55 = vpop.xlane.xlu1 %2795  ;;  %vm2812_vm3 = vcmp.eq.f32.partialorder %v5291_v50, %v5371_v24  ;;  %v2791_v50 = vand.u32 65535, %v5222_v20 }
0x1413   :  { %vm2797_vm2 = vcmp.eq.f32.partialorder %v5229_v51, %v5363_v55  ;;  %v2727_v51 = vcvt.f32.s32 %v5309_v42  ;;  %v2802_v63 = vcvt.f32.s32 %v5363_v55 }
0x1414   :  { %v2793_v30 = vcvt.s32.f32 %v2791_v50 }
0x1415   :  { %v2728_v16 = vshll.u32 %v2727_v51, 16 }
0x1416   :  { %v2798_v7 = vsel %vm2797_vm2, %v2793_v30, inf  ;;  %vm2419_vm2 = vcmp.ge.f32.partialorder %v4899_v25, %v4942_v1  ;;  %v2444_v1 = vand.u32 65535, %v5332_v54 }
0x1418   :  { %v2446_v25 = vcvt.s32.f32 %v2444_v1 }
0x141a   :  { %v5369_v37 = vpop.xlane.xlu1 %2825 }
0x141b   :  { %vm2827_vm1 = vcmp.eq.f32.partialorder %v5236_v44, %v5369_v37 }
0x141c   :  { %v2828_v20 = vsel %vm2827_vm1, %v2823_v60, inf }
0x1422   :  { %2724 = vmin.xlane.f32.xlu0 %v2723_v11  ;;  %v2808_v11 = vcvt.s32.f32 %v2806_v13  ;;  %v2474_v13 = vand.u32 65535, %v5341_v15  ;;  %v2742_v15 = vcvt.f32.s32 %v5358_v27 }
0x1424   :  { %v2813_v23 = vsel %vm2812_vm3, %v2808_v11, inf  ;;  %vm2414_vm3 = vcmp.ge.f32.partialorder %v4860_v52, %v4915_v32  ;;  %v2424_v32 = vsel %vm2416_vm8, %v3965_v47, 8  ;;  %v2476_v53 = vcvt.s32.f32 %v2474_v13 }
0x1425   :  { %v2422_v14 = vsel %vm2414_vm3, %v3965_v47, 8 }
0x142a   :  { %2448 = vmin.xlane.f32.xlu0 %v5338_v0 }
0x1432   :  { %2478 = vmin.xlane.f32.xlu0 %v5348_v35 }
0x143a   :  { %2523 = vmin.xlane.f32.xlu0 %v5355_v2 }
0x146a   :  { %v3183_v57 = vpop.permute.xlu0 %3182 }
0x146b   :  { %vm3184_vm7 = vcmp.eq.s32.totalorder %v3965_v47, %v3183_v57  ;;  %v5405_v57 = vsel %vm1232_vm6, %v2422_v14, 2147483647  ;;  %v2773_v14 = vshll.u32 %v2772_v46, 16  ;;  %v6337_v46 = vld [vmem:[#allocation58_spill] sm:$0xff] }
0x146c   :  { %v3200_v31 = vsel %vm3184_vm7, %v3199_v12, 0  ;;  %vm2412_vm7 = vcmp.ge.f32.partialorder %v4852_v28, %v4905_v61  ;;  %v2460_v52 = vshra.s32 %v5405_v57, 16  ;;  %v5415_v12 = vsel %vm1232_vm6, %v2424_v32, 2147483647 }
0x146d   :  { %v3201_v6 = vsel %vm1232_vm6, %v3200_v31, 0  ;;  %v2420_v21 = vsel %vm2412_vm7, %v3965_v47, 8  ;;  %v2490_v31 = vshra.s32 %v5415_v12, 16 }
0x146e   :  { %v3202_v41 = vand.u32 65535, %v3201_v6  ;;  %v3203_v18 = vshrl.u32 %v3201_v6, 16  ;;  %v5395_v43 = vsel %vm1232_vm6, %v2420_v21, 2147483647  ;;  %v5412_v42 = vcvt.s32.f32 %v2460_v52 }
0x146f   :  { %v2430_v28 = vshra.s32 %v5395_v43, 16  ;;  %v2427_v6 = vsel %vm2419_vm2, %v3965_v47, 8 }
0x1470   :  { %v3205_v9 = vcvt.s32.f32 %v3203_v18  ;;  %v3204_v38 = vcvt.s32.f32 %v3202_v41  ;;  %v5422_v41 = vcvt.s32.f32 %v2490_v31  ;;  %v5425_v49 = vsel %vm1232_vm6, %v2427_v6, 2147483647 }
0x1471   :  { %v5402_v44 = vcvt.s32.f32 %v2430_v28  ;;  %v2535_v58 = vshra.s32 %v5425_v49, 16  ;;  %v2803_v6 = vshll.u32 %v2802_v63, 16 }
0x1472   :  { %3208 = vadd.xlane.f32.xlu2 %v3205_v9  ;;  %3206 = vadd.xlane.f32.xlu1 %v3204_v38 }
0x1473   :  { %v5429_v18 = vcvt.s32.f32 %v2535_v58 }
0x1477   :  { %v2755_v4 = vpop.xlane.xlu1 %2754 }
0x1478   :  { %v2756_v59 = vcvt.f32.s32 %v2755_v4 }
0x147a   :  { %v5380_v17 = vadd.s32 %v2758_v45, %v2756_v59  ;;  %2739 = vmin.xlane.f32.xlu2 %v2738_v39  ;;  %2814 = vmin.xlane.f32.xlu1 %v2813_v23 }
0x147c   :  { %v3223_v60 = vperm.slane %v5380_v17, %v3965_v47 }
0x147f   :  { %v2785_v40 = vpop.xlane.xlu1 %2784 }
0x1482   :  { %2769 = vmin.xlane.f32.xlu2 %v2768_v62  ;;  %v2743_v62 = vshll.u32 %v2742_v15, 16 }
0x148a   :  { %2799 = vmin.xlane.f32.xlu2 %v2798_v7  ;;  %v2787_v7 = vcvt.f32.s32 %v5322_v26 }
0x148c   :  { %v2788_v51 = vshll.u32 %v2787_v7, 16  ;;  %v6336_v7 = vld [vmem:[#allocation63_spill] sm:$0xff] }
0x1492   :  { %2829 = vmin.xlane.f32.xlu2 %v2828_v20  ;;  %v2786_v20 = vcvt.f32.s32 %v2785_v40 }
0x1495   :  { %v2725_v61 = vpop.xlane.xlu0 %2724 }
0x1496   :  { %v2726_v8 = vcvt.f32.s32 %v2725_v61 }
0x1498   :  { %v2729_v5 = vadd.s32 %v2728_v16, %v2726_v8  ;;  %v2789_v8 = vadd.s32 %v2788_v51, %v2786_v20 }
0x149a   :  { %2433 = vmin.xlane.f32.xlu2 %v5402_v44  ;;  %v3221_v21 = vperm.slane %v2729_v5, %v3965_v47  ;;  %v3225_v52 = vperm.slane %v2789_v8, %v3965_v47  ;;  %v6339_v8 = vld [vmem:[#allocation60_spill] sm:$0xff] }
0x149d   :  { %v5431_v9 = vpop.xlane.xlu0 %2448 }
0x149e   :  { %vm2450_vm7 = vcmp.eq.f32.partialorder %v5338_v0, %v5431_v9  ;;  %v5445_v0 = vld [vmem:[%s6189_s2] sm:$0xff] }
0x149f   :  { %v2451_v38 = vsel %vm2450_vm7, %v2446_v25, inf  ;;  %vm3214_vm3 = vcmp.eq.s32.totalorder %v5445_v0, 7 }
0x14a2   :  { %2463 = vmin.xlane.f32.xlu2 %v5412_v42 }
0x14a5   :  { %v5437_v10 = vpop.xlane.xlu0 %2478 }
0x14a6   :  { %vm2480_vm1 = vcmp.eq.f32.partialorder %v5348_v35, %v5437_v10 }
0x14a7   :  { %v2481_v4 = vsel %vm2480_vm1, %v2476_v53, inf  ;;  %vm2129_vm1 = vcmp.ge.f32.partialorder %v6337_v46, %v6336_v7  ;;  %v2429_v7 = vand.u32 65535, %v5395_v43 }
0x14a9   :  { %v2431_v46 = vcvt.s32.f32 %v2429_v7 }
0x14aa   :  { %2493 = vmin.xlane.f32.xlu2 %v5422_v41 }
0x14b2   :  { %2538 = vmin.xlane.f32.xlu2 %v5429_v18 }
0x14ba   :  { %2452 = vmin.xlane.f32.xlu2 %v2451_v38 }
0x14c2   :  { %2482 = vmin.xlane.f32.xlu2 %v2481_v4 }
0x14e5   :  { %v3209_v11 = vpop.xlane.xlu2 %3208  ;;  %v3207_v45 = vpop.xlane.xlu1 %3206 }
0x14e6   :  { %v3211_v54 = vcvt.f32.s32 %v3209_v11  ;;  %v3210_v39 = vcvt.f32.s32 %v3207_v45 }
0x14e8   :  { %v3212_v59 = vshll.u32 %v3211_v54, 16  ;;  %v6333_v54 = vld [vmem:[#allocation53_spill] sm:$0xff] }
0x14e9   :  { %vm2125_vm8 = vcmp.ge.f32.partialorder %v6333_v54, %v4801_v34 }
0x14ea   :  { %v3213_v23 = vadd.s32 %v3212_v59, %v3210_v39  ;;  %v5486_v59 = vpop.xlane.xlu0 %2523 }
0x14eb   :  { %vm2525_vm2 = vcmp.eq.f32.partialorder %v5355_v2, %v5486_v59 }
0x14ec   :  { %v3215_v35 = vsel %vm3214_vm3, %v5298_v56, %v3213_v23 }
0x14ed   :  { %v2740_v33 = vpop.xlane.xlu2 %2739  ;;  %v5452_v36 = vsel %vm2835_vm0, %v3215_v35, 0  ;;  %vm2417_vm0 = vcmp.ge.f32.partialorder %v4889_v19, %v4926_v22  ;;  %v2519_v19 = vand.u32 65535, %v5351_v3  ;;  %v2133_v22 = vsel %vm2125_vm8, %v3965_v47, 8 }
0x14ee   :  { %v2741_v50 = vcvt.f32.s32 %v2740_v33  ;;  %3218 = vperm.xlu1 %3669, %v5452_v36   ;;  %v2425_v55 = vsel %vm2417_vm0, %v3965_v47, 8  ;;  %v5495_v35 = vsel %vm1232_vm6, %v2133_v22, 2147483647  ;;  %v6334_v33 = vld [vmem:[#allocation62_spill] sm:$0xff] }
0x14ef   :  { %v5476_v4 = vsel %vm1232_vm6, %v2425_v55, 2147483647  ;;  %v2521_v15 = vcvt.s32.f32 %v2519_v19  ;;  %v2143_v34 = vshra.s32 %v5495_v35, 16 }
0x14f0   :  { %v2744_v30 = vadd.s32 %v2743_v62, %v2741_v50  ;;  %v2505_v40 = vshra.s32 %v5476_v4, 16  ;;  %v6335_v62 = vld [vmem:[#allocation54_spill] sm:$0xff] }
0x14f1   :  { %v2526_v23 = vsel %vm2525_vm2, %v2521_v15, inf  ;;  %vm2127_vm7 = vcmp.ge.f32.partialorder %v6335_v62, %v6334_v33 }
0x14f2   :  { %v3222_v27 = vperm.slane %v2744_v30, %v3965_v47  ;;  %v5481_v45 = vcvt.s32.f32 %v2505_v40  ;;  %v2135_v3 = vsel %vm2127_vm7, %v3965_v47, 8  ;;  %v5503_v30 = vcvt.s32.f32 %v2143_v34 }
0x14f3   :  { %v5506_v2 = vsel %vm1232_vm6, %v2135_v3, 2147483647 }
0x14f4   :  { %v3229_v29 = vsel %vm1415_vm4, %v3222_v27, %v3221_v21  ;;  %v2455_v21 = vcvt.f32.s32 %v5431_v9  ;;  %v2173_v27 = vshra.s32 %v5506_v2, 16 }
0x14f5   :  { %v2770_v28 = vpop.xlane.xlu2 %2769  ;;  %v3230_v61 = vsel %vm1417_vm5, %v3223_v60, %v3229_v29  ;;  %v2137_v60 = vsel %vm2129_vm1, %v3965_v47, 8 }
0x14f6   :  { %v2771_v16 = vcvt.f32.s32 %v2770_v28  ;;  %v2456_v29 = vshll.u32 %v2455_v21, 16  ;;  %v5514_v28 = vcvt.s32.f32 %v2173_v27  ;;  %v2459_v21 = vand.u32 65535, %v5405_v57 }
0x14f8   :  { %v2774_v26 = vadd.s32 %v2773_v14, %v2771_v16  ;;  %v6338_v16 = vld [vmem:[#allocation67_spill] sm:$0xff]  ;;  %v2461_v27 = vcvt.s32.f32 %v2459_v21 }
0x14f9   :  { %vm2132_vm3 = vcmp.ge.f32.partialorder %v6339_v8, %v6338_v16  ;;  %v2534_v16 = vand.u32 65535, %v5425_v49 }
0x14fa   :  { %v3224_v5 = vperm.slane %v2774_v26, %v3965_v47  ;;  %v2140_v26 = vsel %vm2132_vm3, %v3965_v47, 8 }
0x14fc   :  { %v3231_v32 = vsel %vm1419_vm11, %v3224_v5, %v3230_v61  ;;  %v5517_v61 = vsel %vm1232_vm6, %v2137_v60, 2147483647  ;;  %v5529_v5 = vsel %vm1232_vm6, %v2140_v26, 2147483647  ;;  %v6343_v26 = vld [vmem:[#allocation56_spill] sm:$0xff] }
0x14fd   :  { %v2800_v17 = vpop.xlane.xlu2 %2799  ;;  %v3232_v31 = vsel %vm1421_vm12, %v3225_v52, %v3231_v32  ;;  %v2203_v9 = vshra.s32 %v5517_v61, 16  ;;  %v2248_v52 = vshra.s32 %v5529_v5, 16 }
0x14fe   :  { %v2801_v58 = vcvt.f32.s32 %v2800_v17  ;;  %v2832_v17 = vcvt.f32.s32 %v5369_v37 }
0x14ff   :  { %v5526_v63 = vcvt.s32.f32 %v2203_v9  ;;  %v5533_v32 = vcvt.s32.f32 %v2248_v52 }
0x1500   :  { %v2804_v1 = vadd.s32 %v2803_v6, %v2801_v58  ;;  %v2817_v6 = vcvt.f32.s32 %v5371_v24 }
0x1502   :  { %v3226_v25 = vperm.slane %v2804_v1, %v3965_v47  ;;  %v2818_v55 = vshll.u32 %v2817_v6, 16 }
0x1504   :  { %v3233_v38 = vsel %vm1423_vm13, %v3226_v25, %v3232_v31  ;;  %v2815_v31 = vpop.xlane.xlu1 %2814  ;;  %v2833_v25 = vshll.u32 %v2832_v17, 16 }
0x1505   :  { %v2830_v13 = vpop.xlane.xlu2 %2829  ;;  %v2816_v1 = vcvt.f32.s32 %v2815_v31 }
0x1506   :  { %v2831_v58 = vcvt.f32.s32 %v2830_v13 }
0x1507   :  { %v2819_v54 = vadd.s32 %v2818_v55, %v2816_v1  ;;  %v6345_v1 = vld [vmem:[#allocation57_spill] sm:$0xff] }
0x1508   :  { %v2834_v40 = vadd.s32 %v2833_v25, %v2831_v58  ;;  %v6344_v58 = vld [vmem:[#allocation65_spill] sm:$0xff] }
0x1509   :  { %v3227_v22 = vperm.slane %v2819_v54, %v3965_v47 }
0x150a   :  { %v3228_v19 = vperm.slane %v2834_v40, %v3965_v47 }
0x150d   :  { %v5473_v53 = vpop.xlane.xlu2 %2433 }
0x150e   :  { %vm2435_vm8 = vcmp.eq.f32.partialorder %v5402_v44, %v5473_v53  ;;  %v6340_v44 = vld [vmem:[#allocation61_spill] sm:$0xff] }
0x1515   :  { %v5479_v11 = vpop.xlane.xlu2 %2463 }
0x1516   :  { %vm2465_vm2 = vcmp.eq.f32.partialorder %v5412_v42, %v5479_v11  ;;  %v2536_v42 = vcvt.s32.f32 %v2534_v16 }
0x1517   :  { %v2466_v60 = vsel %vm2465_vm2, %v2461_v27, inf  ;;  %vm2130_vm2 = vcmp.ge.f32.partialorder %v6345_v1, %v6344_v58 }
0x1518   :  { %2508 = vmin.xlane.f32.xlu1 %v5481_v45  ;;  %v2138_v40 = vsel %vm2130_vm2, %v3965_v47, 8 }
0x151d   :  { %v5492_v39 = vpop.xlane.xlu2 %2493 }
0x151e   :  { %vm2495_vm7 = vcmp.eq.f32.partialorder %v5422_v41, %v5492_v39  ;;  %v6342_v41 = vld [vmem:[#allocation64_spill] sm:$0xff]  ;;  %v2500_v1 = vcvt.f32.s32 %v5492_v39  ;;  %v6347_v39 = vld [vmem:[#allocation66_spill] sm:$0xff] }
0x1520   :  { %2527 = vmin.xlane.f32.xlu1 %v2526_v23  ;;  %v3234_v23 = vsel %vm1425_vm14, %v3227_v22, %v3233_v38  ;;  %v2436_v38 = vsel %vm2435_vm8, %v2431_v46, inf }
0x1521   :  { %v3235_v37 = vsel %vm1427_vm15, %v3228_v19, %v3234_v23  ;;  %v2142_v19 = vand.u32 65535, %v5495_v35 }
0x1523   :  { %v2144_v23 = vcvt.s32.f32 %v2142_v19  ;;  %v2501_v19 = vshll.u32 %v2500_v1, 16  ;;  %v6350_v1 = vld [vmem:[#allocation39_spill] sm:$0xff] }
0x1525   :  { %v5501_v50 = vpop.xlane.xlu2 %2538 }
0x1526   :  { %vm2540_vm3 = vcmp.eq.f32.partialorder %v5429_v18, %v5501_v50 }
0x1527   :  { %v2541_v8 = vsel %vm2540_vm3, %v2536_v42, inf  ;;  %v2470_v42 = vcvt.f32.s32 %v5479_v11 }
0x1528   :  { %2146 = vmin.xlane.f32.xlu1 %v5503_v30 }
0x152d   :  { %v2453_v20 = vpop.xlane.xlu2 %2452 }
0x152e   :  { %v2454_v51 = vcvt.f32.s32 %v2453_v20  ;;  %v2489_v20 = vand.u32 65535, %v5415_v12  ;;  %v2504_v12 = vand.u32 65535, %v5476_v4 }
0x1530   :  { %v5519_v14 = vadd.s32 %v2456_v29, %v2454_v51  ;;  %2176 = vmin.xlane.f32.xlu1 %v5514_v28  ;;  %v2491_v43 = vcvt.s32.f32 %v2489_v20  ;;  %v6341_v51 = vld [vmem:[#allocation55_spill] sm:$0xff]  ;;  %v2506_v49 = vcvt.s32.f32 %v2504_v12 }
0x1531   :  { %vm2126_vm1 = vcmp.ge.f32.partialorder %v6341_v51, %v6340_v44 }
0x1532   :  { %v2496_v29 = vsel %vm2495_vm7, %v2491_v43, inf  ;;  %v2134_v57 = vsel %vm2126_vm1, %v3965_v47, 8 }
0x1533   :  { %v5561_v9 = vsel %vm1232_vm6, %v2134_v57, 2147483647  ;;  %v2485_v57 = vcvt.f32.s32 %v5437_v10 }
0x1534   :  { %v2158_v52 = vshra.s32 %v5561_v9, 16 }
0x1536   :  { %v5571_v4 = vcvt.s32.f32 %v2158_v52 }
0x1538   :  { %2206 = vmin.xlane.f32.xlu1 %v5526_v63 }
0x1540   :  { %2251 = vmin.xlane.f32.xlu1 %v5533_v32 }
0x1560   :  { %v3219_v15 = vpop.permute.xlu1 %3218 }
0x1561   :  { %vm3220_vm0 = vcmp.eq.s32.totalorder %v3965_v47, %v3219_v15 }
0x1562   :  { %v3236_v33 = vsel %vm3220_vm0, %v3235_v37, 0  ;;  %vm2128_vm0 = vcmp.ge.f32.partialorder %v6343_v26, %v6342_v41  ;;  %v2486_v26 = vshll.u32 %v2485_v57, 16 }
0x1563   :  { %v3237_v24 = vsel %vm1232_vm6, %v3236_v33, 0  ;;  %v2136_v31 = vsel %vm2128_vm0, %v3965_v47, 8  ;;  %vm3250_vm0 = vcmp.eq.s32.totalorder %v5445_v0, 6 }
0x1564   :  { %v3238_v13 = vand.u32 65535, %v3237_v24  ;;  %v3239_v62 = vshrl.u32 %v3237_v24, 16  ;;  %v5574_v6 = vsel %vm1232_vm6, %v2136_v31, 2147483647  ;;  %v2172_v24 = vand.u32 65535, %v5506_v2  ;;  %v2483_v2 = vpop.xlane.xlu2 %2482 }
0x1565   :  { %v2188_v25 = vshra.s32 %v5574_v6, 16  ;;  %v2484_v12 = vcvt.f32.s32 %v2483_v2  ;;  %v6348_v2 = vld [vmem:[#allocation59_spill] sm:$0xff] }
0x1566   :  { %v3241_v34 = vcvt.s32.f32 %v3239_v62  ;;  %v3240_v3 = vcvt.s32.f32 %v3238_v13  ;;  %v2174_v35 = vcvt.s32.f32 %v2172_v24 }
0x1567   :  { %v5583_v54 = vcvt.s32.f32 %v2188_v25 }
0x1568   :  { %3244 = vadd.xlane.f32.xlu0 %v3241_v34  ;;  %3242 = vadd.xlane.f32.xlu2 %v3240_v3  ;;  %v2202_v34 = vand.u32 65535, %v5517_v61 }
0x1570   :  { %2437 = vmin.xlane.f32.xlu0 %v2436_v38 }
0x1578   :  { %2467 = vmin.xlane.f32.xlu0 %v2466_v60 }
0x1580   :  { %2497 = vmin.xlane.f32.xlu0 %v2496_v29  ;;  %v6346_v29 = vld [vmem:[#allocation3_spill] sm:$0xff] }
0x1588   :  { %2542 = vmin.xlane.f32.xlu0 %v2541_v8 }
0x158b   :  { %v5566_v17 = vpop.xlane.xlu1 %2508 }
0x158c   :  { %vm2510_vm8 = vcmp.eq.f32.partialorder %v5481_v45, %v5566_v17  ;;  %v5586_v45 = vsel %vm1232_vm6, %v2138_v40, 2147483647 }
0x158d   :  { %v2511_v18 = vsel %vm2510_vm8, %v2506_v49, inf  ;;  %v2218_v22 = vshra.s32 %v5586_v45, 16  ;;  %v2471_v49 = vshll.u32 %v2470_v42, 16 }
0x158e   :  { %2512 = vmin.xlane.f32.xlu2 %v2511_v18  ;;  %v2487_v18 = vadd.s32 %v2486_v26, %v2484_v12  ;;  %v2187_v12 = vand.u32 65535, %v5574_v6  ;;  %v6349_v6 = vld [vmem:[#allocation47_spill] sm:$0xff] }
0x158f   :  { %v5597_v33 = vcvt.s32.f32 %v2218_v22 }
0x1590   :  { %2161 = vmin.xlane.f32.xlu0 %v5571_v4  ;;  %v3260_v11 = vperm.slane %v2487_v18, %v3965_v47  ;;  %v2189_v18 = vcvt.s32.f32 %v2187_v12  ;;  %v6356_v12 = vld [vmem:[#allocation37_spill] sm:$0xff] }
0x1593   :  { %v5580_v55 = vpop.xlane.xlu1 %2527 }
0x1598   :  { %2191 = vmin.xlane.f32.xlu0 %v5583_v54 }
0x159b   :  { %v5591_v15 = vpop.xlane.xlu1 %2146 }
0x159c   :  { %vm2148_vm7 = vcmp.eq.f32.partialorder %v5503_v30, %v5591_v15  ;;  %v2204_v30 = vcvt.s32.f32 %v2202_v34 }
0x159d   :  { %v5595_v37 = vsel %vm2148_vm7, %v2144_v23, inf  ;;  %vm1839_vm7 = vcmp.ge.f32.partialorder %v6350_v1, %v6349_v6 }
0x15a0   :  { %2221 = vmin.xlane.f32.xlu0 %v5597_v33 }
0x15a3   :  { %v5601_v13 = vpop.xlane.xlu1 %2176 }
0x15a4   :  { %vm2178_vm1 = vcmp.eq.f32.partialorder %v5514_v28, %v5601_v13  ;;  %v2440_v28 = vcvt.f32.s32 %v5473_v53  ;;  %v3258_v53 = vperm.slane %v5519_v14, %v3965_v47 }
0x15a5   :  { %v5605_v62 = vsel %vm2178_vm1, %v2174_v35, inf }
0x15ab   :  { %v5608_v3 = vpop.xlane.xlu1 %2206 }
0x15ac   :  { %vm2208_vm3 = vcmp.eq.f32.partialorder %v5526_v63, %v5608_v3  ;;  %v2441_v63 = vshll.u32 %v2440_v28, 16 }
0x15ad   :  { %v5612_v7 = vsel %vm2208_vm3, %v2204_v30, inf  ;;  %v2530_v30 = vcvt.f32.s32 %v5486_v59 }
0x15db   :  { %v3245_v46 = vpop.xlane.xlu0 %3244  ;;  %v3243_v38 = vpop.xlane.xlu2 %3242 }
0x15dc   :  { %v3247_v21 = vcvt.f32.s32 %v3245_v46  ;;  %v3246_v60 = vcvt.f32.s32 %v3243_v38  ;;  %v2545_v46 = vcvt.f32.s32 %v5501_v50  ;;  %v2515_v38 = vcvt.f32.s32 %v5566_v17 }
0x15de   :  { %v3248_v27 = vshll.u32 %v3247_v21, 16  ;;  %v2529_v21 = vcvt.f32.s32 %v5580_v55 }
0x15e0   :  { %v3249_v20 = vadd.s32 %v3248_v27, %v3246_v60  ;;  %v2157_v27 = vand.u32 65535, %v5561_v9 }
0x15e2   :  { %v3251_v61 = vsel %vm3250_vm0, %v5298_v56, %v3249_v20  ;;  %v2531_v20 = vshll.u32 %v2530_v30, 16  ;;  %v2159_v57 = vcvt.s32.f32 %v2157_v27 }
0x15e3   :  { %v2438_v43 = vpop.xlane.xlu0 %2437  ;;  %v5619_v44 = vsel %vm2548_vm10, %v3251_v61, 0  ;;  %vm2131_vm10 = vcmp.ge.f32.partialorder %v6348_v2, %v6347_v39 }
0x15e4   :  { %v2439_v51 = vcvt.f32.s32 %v2438_v43  ;;  %3254 = vperm.xlu2 %3667, %v5619_v44   ;;  %v2139_v28 = vsel %vm2131_vm10, %v3965_v47, 8  ;;  %v2546_v43 = vshll.u32 %v2545_v46, 16  ;;  %v2532_v59 = vadd.s32 %v2531_v20, %v2529_v21 }
0x15e5   :  { %v5648_v17 = vsel %vm1232_vm6, %v2139_v28, 2147483647 }
0x15e6   :  { %v2442_v16 = vadd.s32 %v2441_v63, %v2439_v51  ;;  %v2516_v63 = vshll.u32 %v2515_v38, 16 }
0x15e8   :  { %v3257_v8 = vperm.slane %v2442_v16, %v3965_v47 }
0x15ea   :  { %v3265_v41 = vsel %vm1415_vm4, %v3258_v53, %v3257_v8  ;;  %v3263_v53 = vperm.slane %v2532_v59, %v3965_v47  ;;  %v2233_v8 = vshra.s32 %v5648_v17, 16  ;;  %v2217_v59 = vand.u32 65535, %v5586_v45 }
0x15eb   :  { %v2468_v52 = vpop.xlane.xlu0 %2467 }
0x15ec   :  { %v2469_v31 = vcvt.f32.s32 %v2468_v52 }
0x15ee   :  { %v2472_v58 = vadd.s32 %v2471_v49, %v2469_v31  ;;  %v5660_v31 = vcvt.s32.f32 %v2233_v8  ;;  %v6355_v8 = vld [vmem:[#allocation45_spill] sm:$0xff] }
0x15f0   :  { %v3259_v10 = vperm.slane %v2472_v58, %v3965_v47 }
0x15f2   :  { %v3266_v25 = vsel %vm1417_vm5, %v3259_v10, %v3265_v41  ;;  %v5667_v10 = vpop.xlane.xlu1 %2251 }
0x15f3   :  { %v2498_v14 = vpop.xlane.xlu0 %2497  ;;  %v3267_v40 = vsel %vm1419_vm11, %v3260_v11, %v3266_v25  ;;  %v2247_v11 = vand.u32 65535, %v5529_v5  ;;  %v1847_v25 = vsel %vm1839_vm7, %v3965_v47, 8  ;;  %vm2253_vm1 = vcmp.eq.f32.partialorder %v5533_v32, %v5667_v10  ;;  %v6353_v32 = vld [vmem:[#allocation50_spill] sm:$0xff] }
0x15f4   :  { %v2499_v22 = vcvt.f32.s32 %v2498_v14 }
0x15f5   :  { %v2249_v14 = vcvt.s32.f32 %v2247_v11 }
0x15f6   :  { %v2502_v23 = vadd.s32 %v2501_v19, %v2499_v22  ;;  %v6351_v19 = vld [vmem:[#allocation48_spill] sm:$0xff] }
0x15f7   :  { %v6352_v22 = vld [vmem:[#allocation40_spill] sm:$0xff] }
0x15f8   :  { %v3261_v24 = vperm.slane %v2502_v23, %v3965_v47  ;;  %vm1841_vm3 = vcmp.ge.f32.partialorder %v6352_v22, %v6351_v19 }
0x15fa   :  { %v3268_v35 = vsel %vm1421_vm12, %v3261_v24, %v3267_v40  ;;  %v2254_v40 = vsel %vm2253_vm1, %v2249_v14, inf  ;;  %v1849_v24 = vsel %vm1841_vm3, %v3965_v47, 8  ;;  %v6360_v14 = vld [vmem:[#allocation42_spill] sm:$0xff] }
0x15fb   :  { %v2543_v34 = vpop.xlane.xlu0 %2542  ;;  %v5683_v5 = vsel %vm1232_vm6, %v1849_v24, 2147483647  ;;  %v6361_v24 = vld [vmem:[#allocation51_spill] sm:$0xff] }
0x15fc   :  { %v2544_v60 = vcvt.f32.s32 %v2543_v34  ;;  %v6354_v34 = vld [vmem:[#allocation41_spill] sm:$0xff]  ;;  %v1901_v30 = vshra.s32 %v5683_v5, 16 }
0x15fd   :  { %vm1843_vm0 = vcmp.ge.f32.partialorder %v6354_v34, %v6353_v32  ;;  %v6362_v32 = vld [vmem:[#allocation43_spill] sm:$0xff] }
0x15fe   :  { %v2547_v42 = vadd.s32 %v2546_v43, %v2544_v60  ;;  %v1851_v39 = vsel %vm1843_vm0, %v3965_v47, 8  ;;  %v5690_v2 = vcvt.s32.f32 %v1901_v30  ;;  %vm1844_vm0 = vcmp.ge.f32.partialorder %v6362_v32, %v6361_v24  ;;  %v6364_v24 = vld [vmem:[#allocation44_spill] sm:$0xff] }
0x15ff   :  { %v5693_v46 = vsel %vm1232_vm6, %v1851_v39, 2147483647  ;;  %v1852_v30 = vsel %vm1844_vm0, %v3965_v47, 8 }
0x1600   :  { %v3264_v41 = vperm.slane %v2547_v42, %v3965_v47  ;;  %v1931_v38 = vshra.s32 %v5693_v46, 16 }
0x1601   :  { %v2513_v61 = vpop.xlane.xlu2 %2512 }
0x1602   :  { %v2514_v51 = vcvt.f32.s32 %v2513_v61  ;;  %v5697_v21 = vcvt.s32.f32 %v1931_v38  ;;  %v5750_v38 = vsel %vm1232_vm6, %v1852_v30, 2147483647 }
0x1603   :  { %v5643_v16 = vpop.xlane.xlu0 %2161 }
0x1604   :  { %v2517_v50 = vadd.s32 %v2516_v63, %v2514_v51  ;;  %vm2163_vm8 = vcmp.eq.f32.partialorder %v5571_v4, %v5643_v16 }
0x1605   :  { %v2164_v9 = vsel %vm2163_vm8, %v2159_v57, inf  ;;  %v2219_v57 = vcvt.s32.f32 %v2217_v59  ;;  %v2153_v59 = vcvt.f32.s32 %v5591_v15 }
0x1606   :  { %v3262_v55 = vperm.slane %v2517_v50, %v3965_v47  ;;  %2165 = vmin.xlane.f32.xlu1 %v2164_v9  ;;  %v2168_v50 = vcvt.f32.s32 %v5643_v16 }
0x1608   :  { %v3269_v26 = vsel %vm1423_vm13, %v3262_v55, %v3268_v35  ;;  %v2169_v55 = vshll.u32 %v2168_v50, 16 }
0x1609   :  { %v3270_v52 = vsel %vm1425_vm14, %v3263_v53, %v3269_v26 }
0x160a   :  { %v3271_v4 = vsel %vm1427_vm15, %v3264_v41, %v3270_v52 }
0x160b   :  { %v5658_v49 = vpop.xlane.xlu0 %2191 }
0x160c   :  { %vm2193_vm2 = vcmp.eq.f32.partialorder %v5583_v54, %v5658_v49  ;;  %v5674_v54 = vsel %vm1232_vm6, %v1847_v25, 2147483647  ;;  %v2198_v41 = vcvt.f32.s32 %v5658_v49  ;;  %v6359_v25 = vld [vmem:[#allocation49_spill] sm:$0xff] }
0x160d   :  { %2236 = vmin.xlane.f32.xlu2 %v5660_v31  ;;  %v2194_v58 = vsel %vm2193_vm2, %v2189_v18, inf  ;;  %v1871_v23 = vshra.s32 %v5674_v54, 16  ;;  %vm1838_vm2 = vcmp.ge.f32.partialorder %v6356_v12, %v6355_v8  ;;  %vm1842_vm3 = vcmp.ge.f32.partialorder %v6360_v14, %v6359_v25 }
0x160e   :  { %2195 = vmin.xlane.f32.xlu1 %v2194_v58  ;;  %v2199_v16 = vshll.u32 %v2198_v41, 16  ;;  %v6357_v58 = vld [vmem:[#allocation46_spill] sm:$0xff]  ;;  %v1850_v19 = vsel %vm1842_vm3, %v3965_v47, 8  ;;  %v2183_v12 = vcvt.f32.s32 %v5601_v13 }
0x160f   :  { %v5680_v35 = vcvt.s32.f32 %v1871_v23  ;;  %v5740_v23 = vsel %vm1232_vm6, %v1850_v19, 2147483647  ;;  %v6363_v19 = vld [vmem:[#allocation52_spill] sm:$0xff] }
0x1610   :  { %v1916_v34 = vshra.s32 %v5740_v23, 16 }
0x1612   :  { %v5747_v39 = vcvt.s32.f32 %v1916_v34  ;;  %v6366_v34 = vld [vmem:[#allocation21_spill] sm:$0xff] }
0x1613   :  { %v5702_v51 = vpop.xlane.xlu0 %2221 }
0x1614   :  { %vm2223_vm8 = vcmp.eq.f32.partialorder %v5597_v33, %v5702_v51  ;;  %v2232_v33 = vand.u32 65535, %v5648_v17  ;;  %v6358_v17 = vld [vmem:[#allocation38_spill] sm:$0xff] }
0x1615   :  { %2255 = vmin.xlane.f32.xlu2 %v2254_v40  ;;  %v2224_v42 = vsel %vm2223_vm8, %v2219_v57, inf  ;;  %vm1840_vm1 = vcmp.ge.f32.partialorder %v6358_v17, %v6357_v58 }
0x1616   :  { %v1848_v1 = vsel %vm1840_vm1, %v3965_v47, 8 }
0x161d   :  { %1874 = vmin.xlane.f32.xlu2 %v5680_v35 }
0x1625   :  { %1904 = vmin.xlane.f32.xlu2 %v5690_v2 }
0x162d   :  { %1934 = vmin.xlane.f32.xlu2 %v5697_v21 }
0x163e   :  { %v3255_v27 = vpop.permute.xlu2 %3254 }
0x163f   :  { %vm3256_vm10 = vcmp.eq.s32.totalorder %v3965_v47, %v3255_v27  ;;  %v1946_v27 = vshra.s32 %v5750_v38, 16 }
0x1640   :  { %v3272_v60 = vsel %vm3256_vm10, %v3271_v4, 0  ;;  %vm3286_vm10 = vcmp.eq.s32.totalorder %v5445_v0, 5 }
0x1641   :  { %v3273_v28 = vsel %vm1232_vm6, %v3272_v60, 0  ;;  %v5754_v60 = vcvt.s32.f32 %v1946_v27 }
0x1642   :  { %v3274_v20 = vand.u32 65535, %v3273_v28  ;;  %v3275_v61 = vshrl.u32 %v3273_v28, 16 }
0x1644   :  { %v3277_v43 = vcvt.s32.f32 %v3275_v61  ;;  %v3276_v63 = vcvt.s32.f32 %v3274_v20 }
0x1646   :  { %3280 = vadd.xlane.f32.xlu0 %v3277_v43  ;;  %3278 = vadd.xlane.f32.xlu1 %v3276_v63 }
0x164e   :  { %2150 = vmin.xlane.f32.xlu0 %v5595_v37  ;;  %2225 = vmin.xlane.f32.xlu1 %v2224_v42  ;;  %v1846_v37 = vsel %vm1838_vm2, %v3965_v47, 8 }
0x164f   :  { %v5721_v18 = vsel %vm1232_vm6, %v1846_v37, 2147483647 }
0x1650   :  { %v1856_v6 = vshra.s32 %v5721_v18, 16 }
0x1652   :  { %v5727_v11 = vcvt.s32.f32 %v1856_v6 }
0x1656   :  { %2180 = vmin.xlane.f32.xlu0 %v5605_v62  ;;  %v2234_v62 = vcvt.s32.f32 %v2232_v33 }
0x165e   :  { %2210 = vmin.xlane.f32.xlu0 %v5612_v7 }
0x1679   :  { %v2166_v9 = vpop.xlane.xlu1 %2165 }
0x167a   :  { %v2167_v53 = vcvt.f32.s32 %v2166_v9 }
0x167c   :  { %v2170_v45 = vadd.s32 %v2169_v55, %v2167_v53  ;;  %v2154_v55 = vshll.u32 %v2153_v59, 16 }
0x167e   :  { %v3294_v33 = vperm.slane %v2170_v45, %v3965_v47 }
0x1680   :  { %v5716_v26 = vpop.xlane.xlu2 %2236 }
0x1681   :  { %vm2238_vm7 = vcmp.eq.f32.partialorder %v5660_v31, %v5716_v26  ;;  %v2196_v7 = vpop.xlane.xlu1 %2195  ;;  %v5730_v31 = vsel %vm1232_vm6, %v1848_v1, 2147483647 }
0x1682   :  { %v2197_v52 = vcvt.f32.s32 %v2196_v7  ;;  %v2239_v4 = vsel %vm2238_vm7, %v2234_v62, inf  ;;  %v1886_v40 = vshra.s32 %v5730_v31, 16  ;;  %v2184_v62 = vshll.u32 %v2183_v12, 16 }
0x1683   :  { %2240 = vmin.xlane.f32.xlu0 %v2239_v4 }
0x1684   :  { %v2200_v49 = vadd.s32 %v2199_v16, %v2197_v52  ;;  %v5737_v22 = vcvt.s32.f32 %v1886_v40  ;;  %v2213_v52 = vcvt.f32.s32 %v5608_v3 }
0x1686   :  { %v3296_v58 = vperm.slane %v2200_v49, %v3965_v47  ;;  %v2214_v45 = vshll.u32 %v2213_v52, 16  ;;  %v6365_v49 = vld [vmem:[#allocation29_spill] sm:$0xff] }
0x1687   :  { %vm1551_vm8 = vcmp.ge.f32.partialorder %v6366_v34, %v6365_v49  ;;  %v2258_v34 = vcvt.f32.s32 %v5667_v10 }
0x1688   :  { %v1559_v27 = vsel %vm1551_vm8, %v3965_v47, 8 }
0x168b   :  { %1859 = vmin.xlane.f32.xlu0 %v5727_v11 }
0x1693   :  { %1889 = vmin.xlane.f32.xlu0 %v5737_v22 }
0x169b   :  { %1919 = vmin.xlane.f32.xlu0 %v5747_v39 }
0x16a3   :  { %1949 = vmin.xlane.f32.xlu0 %v5754_v60 }
0x16b9   :  { %v3281_v28 = vpop.xlane.xlu0 %3280  ;;  %v3279_v20 = vpop.xlane.xlu1 %3278 }
0x16ba   :  { %v3283_v61 = vcvt.f32.s32 %v3281_v28  ;;  %v3282_v63 = vcvt.f32.s32 %v3279_v20  ;;  %v5789_v20 = vsel %vm1232_vm6, %v1559_v27, 2147483647  ;;  %v2259_v27 = vshll.u32 %v2258_v34, 16 }
0x16bc   :  { %v3284_v43 = vshll.u32 %v3283_v61, 16  ;;  %v6367_v61 = vld [vmem:[#allocation31_spill] sm:$0xff] }
0x16be   :  { %v3285_v57 = vadd.s32 %v3284_v43, %v3282_v63  ;;  %v6368_v43 = vld [vmem:[#allocation22_spill] sm:$0xff]  ;;  %v1569_v63 = vshra.s32 %v5789_v20, 16 }
0x16bf   :  { %vm1553_vm2 = vcmp.ge.f32.partialorder %v6368_v43, %v6367_v61 }
0x16c0   :  { %v3287_v42 = vsel %vm3286_vm10, %v5298_v56, %v3285_v57  ;;  %v1561_v57 = vsel %vm1553_vm2, %v3965_v47, 8 }
0x16c1   :  { %v2151_v50 = vpop.xlane.xlu0 %2150  ;;  %v5762_v9 = vsel %vm2261_vm9, %v3287_v42, 0  ;;  %vm1845_vm9 = vcmp.ge.f32.partialorder %v6364_v24, %v6363_v19  ;;  %v2226_v59 = vpop.xlane.xlu1 %2225  ;;  %v2228_v42 = vcvt.f32.s32 %v5702_v51 }
0x16c2   :  { %v2152_v53 = vcvt.f32.s32 %v2151_v50  ;;  %3290 = vperm.xlu1 %3669, %v5762_v9   ;;  %v1853_v3 = vsel %vm1845_vm9, %v3965_v47, 8  ;;  %v2227_v50 = vcvt.f32.s32 %v2226_v59 }
0x16c3   :  { %v5780_v32 = vsel %vm1232_vm6, %v1853_v3, 2147483647  ;;  %v2229_v12 = vshll.u32 %v2228_v42, 16 }
0x16c4   :  { %v2155_v8 = vadd.s32 %v2154_v55, %v2152_v53  ;;  %v1961_v30 = vshra.s32 %v5780_v32, 16  ;;  %v5797_v55 = vcvt.s32.f32 %v1569_v63  ;;  %v2243_v53 = vcvt.f32.s32 %v5716_v26 }
0x16c6   :  { %v3293_v41 = vperm.slane %v2155_v8, %v3965_v47  ;;  %v5786_v28 = vcvt.s32.f32 %v1961_v30  ;;  %v5801_v8 = vsel %vm1232_vm6, %v1561_v57, 2147483647 }
0x16c8   :  { %v3301_v15 = vsel %vm1415_vm4, %v3294_v33, %v3293_v41  ;;  %v6369_v33 = vld [vmem:[#allocation33_spill] sm:$0xff]  ;;  %v6370_v41 = vld [vmem:[#allocation26_spill] sm:$0xff] }
0x16c9   :  { %v2181_v37 = vpop.xlane.xlu0 %2180  ;;  %vm1555_vm7 = vcmp.ge.f32.partialorder %v6370_v41, %v6369_v33 }
0x16ca   :  { %v2182_v7 = vcvt.f32.s32 %v2181_v37 }
0x16cc   :  { %v2185_v16 = vadd.s32 %v2184_v62, %v2182_v7  ;;  %v1599_v62 = vshra.s32 %v5801_v8, 16  ;;  %v2244_v7 = vshll.u32 %v2243_v53, 16 }
0x16ce   :  { %v3295_v4 = vperm.slane %v2185_v16, %v3965_v47  ;;  %v1563_v16 = vsel %vm1555_vm7, %v3965_v47, 8 }
0x16d0   :  { %v3302_v17 = vsel %vm1417_vm5, %v3295_v4, %v3301_v15  ;;  %v2230_v15 = vadd.s32 %v2229_v12, %v2227_v50  ;;  %v5809_v4 = vcvt.s32.f32 %v1599_v62 }
0x16d1   :  { %v2211_v6 = vpop.xlane.xlu0 %2210  ;;  %v3303_v13 = vsel %vm1419_vm11, %v3296_v58, %v3302_v17  ;;  %v5813_v17 = vsel %vm1232_vm6, %v1563_v16, 2147483647 }
0x16d2   :  { %v2212_v1 = vcvt.f32.s32 %v2211_v6  ;;  %v3298_v26 = vperm.slane %v2230_v15, %v3965_v47  ;;  %v1855_v15 = vand.u32 65535, %v5721_v18  ;;  %v1885_v18 = vand.u32 65535, %v5730_v31 }
0x16d3   :  { %v1915_v31 = vand.u32 65535, %v5740_v23  ;;  %v6373_v23 = vld [vmem:[#allocation30_spill] sm:$0xff] }
0x16d4   :  { %v2215_v25 = vadd.s32 %v2214_v45, %v2212_v1  ;;  %v6372_v45 = vld [vmem:[#allocation28_spill] sm:$0xff] }
0x16d6   :  { %v3297_v14 = vperm.slane %v2215_v25, %v3965_v47  ;;  %v1629_v25 = vshra.s32 %v5813_v17, 16 }
0x16d8   :  { %v3304_v40 = vsel %vm1421_vm12, %v3297_v14, %v3303_v13  ;;  %v6371_v13 = vld [vmem:[#allocation36_spill] sm:$0xff]  ;;  %v5822_v19 = vcvt.s32.f32 %v1629_v25 }
0x16d9   :  { %v3305_v6 = vsel %vm1423_vm13, %v3298_v26, %v3304_v40  ;;  %vm1558_vm1 = vcmp.ge.f32.partialorder %v6372_v45, %v6371_v13  ;;  %v2256_v40 = vpop.xlane.xlu2 %2255 }
0x16da   :  { %v1566_v14 = vsel %vm1558_vm1, %v3965_v47, 8  ;;  %v2257_v30 = vcvt.f32.s32 %v2256_v40  ;;  %v6374_v40 = vld [vmem:[#allocation23_spill] sm:$0xff] }
0x16db   :  { %v5825_v24 = vsel %vm1232_vm6, %v1566_v14, 2147483647 }
0x16dc   :  { %v1674_v3 = vshra.s32 %v5825_v24, 16  ;;  %v2260_v61 = vadd.s32 %v2259_v27, %v2257_v30 }
0x16de   :  { %v5829_v49 = vcvt.s32.f32 %v1674_v3  ;;  %v3300_v43 = vperm.slane %v2260_v61, %v3965_v47  ;;  %v1945_v3 = vand.u32 65535, %v5750_v38 }
0x16e1   :  { %v5839_v33 = vpop.xlane.xlu2 %1874 }
0x16e2   :  { %vm1876_vm0 = vcmp.eq.f32.partialorder %v5680_v35, %v5839_v33  ;;  %v1887_v35 = vcvt.s32.f32 %v1885_v18 }
0x16e9   :  { %v5849_v16 = vpop.xlane.xlu2 %1904 }
0x16ea   :  { %vm1906_vm9 = vcmp.eq.f32.partialorder %v5690_v2, %v5849_v16  ;;  %v1917_v2 = vcvt.s32.f32 %v1915_v31 }
0x16ec   :  { %1964 = vmin.xlane.f32.xlu1 %v5786_v28 }
0x16f1   :  { %v5859_v45 = vpop.xlane.xlu2 %1934 }
0x16f2   :  { %vm1936_vm2 = vcmp.eq.f32.partialorder %v5697_v21, %v5859_v45 }
0x16f4   :  { %1572 = vmin.xlane.f32.xlu1 %v5797_v55 }
0x16f6   :  { %v2241_v37 = vpop.xlane.xlu0 %2240 }
0x16f7   :  { %v2242_v51 = vcvt.f32.s32 %v2241_v37  ;;  %v1870_v37 = vand.u32 65535, %v5674_v54  ;;  %v1900_v54 = vand.u32 65535, %v5683_v5  ;;  %v1930_v5 = vand.u32 65535, %v5693_v46 }
0x16f8   :  { %v1947_v46 = vcvt.s32.f32 %v1945_v3 }
0x16f9   :  { %v2245_v52 = vadd.s32 %v2244_v7, %v2242_v51  ;;  %v1857_v7 = vcvt.s32.f32 %v1855_v15  ;;  %v1872_v51 = vcvt.s32.f32 %v1870_v37 }
0x16fb   :  { %v3299_v58 = vperm.slane %v2245_v52, %v3965_v47  ;;  %v1877_v26 = vsel %vm1876_vm0, %v1872_v51, inf }
0x16fc   :  { %1602 = vmin.xlane.f32.xlu1 %v5809_v4 }
0x16fd   :  { %v3306_v1 = vsel %vm1425_vm14, %v3299_v58, %v3305_v6 }
0x16fe   :  { %v3307_v59 = vsel %vm1427_vm15, %v3300_v43, %v3306_v1  ;;  %v5836_v42 = vpop.xlane.xlu0 %1859  ;;  %v6376_v43 = vld [vmem:[#allocation24_spill] sm:$0xff] }
0x16ff   :  { %vm1861_vm10 = vcmp.eq.f32.partialorder %v5727_v11, %v5836_v42  ;;  %v1902_v11 = vcvt.s32.f32 %v1900_v54  ;;  %v1881_v54 = vcvt.f32.s32 %v5839_v33  ;;  %v1911_v33 = vcvt.f32.s32 %v5849_v16 }
0x1700   :  { %v1862_v52 = vsel %vm1861_vm10, %v1857_v7, inf }
0x1701   :  { %v1907_v13 = vsel %vm1906_vm9, %v1902_v11, inf }
0x1704   :  { %1632 = vmin.xlane.f32.xlu1 %v5822_v19 }
0x1706   :  { %v5847_v62 = vpop.xlane.xlu0 %1889 }
0x1707   :  { %vm1891_vm8 = vcmp.eq.f32.partialorder %v5737_v22, %v5847_v62  ;;  %v1932_v22 = vcvt.s32.f32 %v1930_v5 }
0x1708   :  { %v1892_v6 = vsel %vm1891_vm8, %v1887_v35, inf  ;;  %vm3322_vm8 = vcmp.eq.s32.totalorder %v5445_v0, 4  ;;  %v1866_v35 = vcvt.f32.s32 %v5836_v42  ;;  %v1896_v42 = vcvt.f32.s32 %v5847_v62 }
0x1709   :  { %v1937_v25 = vsel %vm1936_vm2, %v1932_v22, inf  ;;  %vm6379_vm2 = vcmp.gt.s32.totalorder %v6346_v29, 3 }
0x170a   :  { %v1867_v22 = vshll.u32 %v1866_v35, 16 }
0x170c   :  { %1677 = vmin.xlane.f32.xlu1 %v5829_v49 }
0x170e   :  { %v5857_v58 = vpop.xlane.xlu0 %1919 }
0x170f   :  { %vm1921_vm7 = vcmp.eq.f32.partialorder %v5747_v39, %v5857_v58  ;;  %v1960_v39 = vand.u32 65535, %v5780_v32 }
0x1710   :  { %v1922_v1 = vsel %vm1921_vm7, %v1917_v2, inf  ;;  %v1882_v2 = vshll.u32 %v1881_v54, 16 }
0x1711   :  { %v1962_v27 = vcvt.s32.f32 %v1960_v39 }
0x1716   :  { %v5867_v14 = vpop.xlane.xlu0 %1949 }
0x1717   :  { %vm1951_vm1 = vcmp.eq.f32.partialorder %v5754_v60, %v5867_v14  ;;  %v6375_v60 = vld [vmem:[#allocation32_spill] sm:$0xff] }
0x1718   :  { %v1952_v21 = vsel %vm1951_vm1, %v1947_v46, inf  ;;  %vm1554_vm10 = vcmp.ge.f32.partialorder %v6376_v43, %v6375_v60 }
0x1719   :  { %v1562_v32 = vsel %vm1554_vm10, %v3965_v47, 8 }
0x1734   :  { %v3291_v63 = vpop.permute.xlu1 %3290 }
0x1735   :  { %vm3292_vm3 = vcmp.eq.s32.totalorder %v3965_v47, %v3291_v63 }
0x1736   :  { %v3308_v57 = vsel %vm3292_vm3, %v3307_v59, 0  ;;  %vm1552_vm3 = vcmp.ge.f32.partialorder %v6374_v40, %v6373_v23 }
0x1737   :  { %v3309_v50 = vsel %vm1232_vm6, %v3308_v57, 0  ;;  %v1560_v34 = vsel %vm1552_vm3, %v3965_v47, 8  ;;  %v5890_v57 = vsel %vm1232_vm6, %v1562_v32, 2147483647  ;;  %v1926_v32 = vcvt.f32.s32 %v5857_v58 }
0x1738   :  { %v3310_v53 = vand.u32 65535, %v3309_v50  ;;  %v3311_v12 = vshrl.u32 %v3309_v50, 16  ;;  %v5881_v61 = vsel %vm1232_vm6, %v1560_v34, 2147483647  ;;  %v6378_v50 = vld [vmem:[#allocation25_spill] sm:$0xff]  ;;  %v1912_v34 = vshll.u32 %v1911_v33, 16 }
0x1739   :  { %v1584_v63 = vshra.s32 %v5881_v61, 16 }
0x173a   :  { %v3313_v10 = vcvt.s32.f32 %v3311_v12  ;;  %v3312_v41 = vcvt.s32.f32 %v3310_v53  ;;  %v1614_v53 = vshra.s32 %v5890_v57, 16 }
0x173b   :  { %v5887_v59 = vcvt.s32.f32 %v1584_v63 }
0x173c   :  { %3316 = vadd.xlane.f32.xlu2 %v3313_v10  ;;  %3314 = vadd.xlane.f32.xlu0 %v3312_v41  ;;  %v5897_v10 = vcvt.s32.f32 %v1614_v53 }
0x1744   :  { %1863 = vmin.xlane.f32.xlu2 %v1862_v52  ;;  %1878 = vmin.xlane.f32.xlu0 %v1877_v26 }
0x174c   :  { %1893 = vmin.xlane.f32.xlu2 %v1892_v6  ;;  %1908 = vmin.xlane.f32.xlu0 %v1907_v13 }
0x1754   :  { %1923 = vmin.xlane.f32.xlu2 %v1922_v1  ;;  %1938 = vmin.xlane.f32.xlu0 %v1937_v25 }
0x175c   :  { %1953 = vmin.xlane.f32.xlu2 %v1952_v21 }
0x175f   :  { %v5876_v30 = vpop.xlane.xlu1 %1964 }
0x1760   :  { %vm1966_vm0 = vcmp.eq.f32.partialorder %v5786_v28, %v5876_v30  ;;  %v6377_v28 = vld [vmem:[#allocation34_spill] sm:$0xff] }
0x1761   :  { %v1967_v38 = vsel %vm1966_vm0, %v1962_v27, inf  ;;  %vm1556_vm9 = vcmp.ge.f32.partialorder %v6378_v50, %v6377_v28  ;;  %v1897_v27 = vshll.u32 %v1896_v42, 16 }
0x1762   :  { %1968 = vmin.xlane.f32.xlu0 %v1967_v38  ;;  %v1564_v12 = vsel %vm1556_vm9, %v3965_v47, 8 }
0x1763   :  { %v5900_v41 = vsel %vm1232_vm6, %v1564_v12, 2147483647  ;;  %v1927_v12 = vshll.u32 %v1926_v32, 16 }
0x1764   :  { %v1644_v15 = vshra.s32 %v5900_v41, 16 }
0x1766   :  { %v5904_v37 = vcvt.s32.f32 %v1644_v15 }
0x176a   :  { %1587 = vmin.xlane.f32.xlu0 %v5887_v59 }
0x1772   :  { %1617 = vmin.xlane.f32.xlu0 %v5897_v10 }
0x177a   :  { %1647 = vmin.xlane.f32.xlu0 %v5904_v37 }
0x17af   :  { %v3315_v7 = vpop.xlane.xlu0 %3314  ;;  %v3317_v51 = vpop.xlane.xlu2 %3316 }
0x17b0   :  { %v3319_v52 = vcvt.f32.s32 %v3317_v51  ;;  %v3318_v26 = vcvt.f32.s32 %v3315_v7 }
0x17b2   :  { %v3320_v18 = vshll.u32 %v3319_v52, 16  ;;  %v1941_v52 = vcvt.f32.s32 %v5859_v45 }
0x17b4   :  { %v3321_v11 = vadd.s32 %v3320_v18, %v3318_v26  ;;  %v1956_v18 = vcvt.f32.s32 %v5867_v14 }
0x17b6   :  { %v3323_v6 = vsel %vm3322_vm8, %v5298_v56, %v3321_v11  ;;  %v1942_v11 = vshll.u32 %v1941_v52, 16 }
0x17b7   :  { %v1879_v13 = vpop.xlane.xlu0 %1878  ;;  %v1864_v31 = vpop.xlane.xlu2 %1863  ;;  %v5913_v5 = vsel %vm6379_vm2, %v3323_v6, 0 }
0x17b8   :  { %v1880_v1 = vcvt.f32.s32 %v1879_v13  ;;  %v1865_v25 = vcvt.f32.s32 %v1864_v31  ;;  %3326 = vperm.xlu2 %3667, %v5913_v5   ;;  %v1957_v13 = vshll.u32 %v1956_v18, 16  ;;  %v6380_v31 = vld [vmem:[#allocation35_spill] sm:$0xff] }
0x17ba   :  { %v1883_v0 = vadd.s32 %v1882_v2, %v1880_v1  ;;  %v1868_v3 = vadd.s32 %v1867_v22, %v1865_v25  ;;  %v6381_v2 = vld [vmem:[#allocation27_spill] sm:$0xff]  ;;  %v1971_v22 = vcvt.f32.s32 %v5876_v30 }
0x17bb   :  { %vm1557_vm7 = vcmp.ge.f32.partialorder %v6381_v2, %v6380_v31  ;;  %v6382_v31 = vld [vmem:[#allocation14_spill] sm:$0xff] }
0x17bc   :  { %v3330_v46 = vperm.slane %v1883_v0, %v3965_v47  ;;  %v3329_v23 = vperm.slane %v1868_v3, %v3965_v47  ;;  %v1565_v45 = vsel %vm1557_vm7, %v3965_v47, 8  ;;  %v1972_v3 = vshll.u32 %v1971_v22, 16  ;;  %v6383_v2 = vld [vmem:[#allocation6_spill] sm:$0xff] }
0x17bd   :  { %vm1258_vm7 = vcmp.ge.f32.partialorder %v6383_v2, %v6382_v31 }
0x17be   :  { %v3337_v40 = vsel %vm1415_vm4, %v3330_v46, %v3329_v23  ;;  %v5937_v23 = vsel %vm1232_vm6, %v1565_v45, 2147483647  ;;  %v6385_v45 = vld [vmem:[#allocation5_spill] sm:$0xff] }
0x17bf   :  { %v1909_v21 = vpop.xlane.xlu0 %1908  ;;  %v1894_v39 = vpop.xlane.xlu2 %1893  ;;  %v1659_v30 = vshra.s32 %v5937_v23, 16 }
0x17c0   :  { %v1910_v38 = vcvt.f32.s32 %v1909_v21  ;;  %v1895_v60 = vcvt.f32.s32 %v1894_v39 }
0x17c2   :  { %v1913_v43 = vadd.s32 %v1912_v34, %v1910_v38  ;;  %v1898_v63 = vadd.s32 %v1897_v27, %v1895_v60  ;;  %v5944_v27 = vcvt.s32.f32 %v1659_v30 }
0x17c4   :  { %v3332_v16 = vperm.slane %v1913_v43, %v3965_v47  ;;  %v3331_v62 = vperm.slane %v1898_v63, %v3965_v47  ;;  %v5948_v43 = vpop.xlane.xlu1 %1572 }
0x17c5   :  { %vm1574_vm3 = vcmp.eq.f32.partialorder %v5797_v55, %v5948_v43 }
0x17c6   :  { %v3338_v28 = vsel %vm1417_vm5, %v3331_v62, %v3337_v40 }
0x17c7   :  { %v3339_v50 = vsel %vm1419_vm11, %v3332_v16, %v3338_v28  ;;  %v1924_v53 = vpop.xlane.xlu2 %1923  ;;  %v1939_v51 = vpop.xlane.xlu0 %1938 }
0x17c8   :  { %v1925_v15 = vcvt.f32.s32 %v1924_v53  ;;  %v1940_v58 = vcvt.f32.s32 %v1939_v51  ;;  %v1583_v53 = vand.u32 65535, %v5881_v61  ;;  %v1613_v61 = vand.u32 65535, %v5890_v57 }
0x17c9   :  { %v1628_v57 = vand.u32 65535, %v5813_v17  ;;  %v1673_v17 = vand.u32 65535, %v5825_v24 }
0x17ca   :  { %v1928_v7 = vadd.s32 %v1927_v12, %v1925_v15  ;;  %v1943_v1 = vadd.s32 %v1942_v11, %v1940_v58  ;;  %v1568_v12 = vand.u32 65535, %v5789_v20  ;;  %v1598_v20 = vand.u32 65535, %v5801_v8 }
0x17cb   :  { %v1615_v55 = vcvt.s32.f32 %v1613_v61  ;;  %v1643_v8 = vand.u32 65535, %v5900_v41  ;;  %v1266_v41 = vsel %vm1258_vm7, %v3965_v47, 8 }
0x17cc   :  { %v3333_v26 = vperm.slane %v1928_v7, %v3965_v47  ;;  %v3334_v14 = vperm.slane %v1943_v1, %v3965_v47  ;;  %v5959_v15 = vpop.xlane.xlu1 %1602  ;;  %v1585_v7 = vcvt.s32.f32 %v1583_v53  ;;  %v1570_v51 = vcvt.s32.f32 %v1568_v12  ;;  %v6390_v53 = vld [vmem:[#allocation13_spill] sm:$0xff]  ;;  %v6391_v12 = vld [vmem:[#allocation4_spill] sm:$0xff] }
0x17cd   :  { %vm1604_vm10 = vcmp.eq.f32.partialorder %v5809_v4, %v5959_v15  ;;  %v1630_v4 = vcvt.s32.f32 %v1628_v57  ;;  %v5988_v1 = vsel %vm1232_vm6, %v1266_v41, 2147483647 }
0x17ce   :  { %v3340_v54 = vsel %vm1421_vm12, %v3333_v26, %v3339_v50  ;;  %v1575_v18 = vsel %vm1574_vm3, %v1570_v51, inf }
0x17cf   :  { %v1954_v35 = vpop.xlane.xlu2 %1953  ;;  %v3341_v21 = vsel %vm1423_vm13, %v3334_v14, %v3340_v54 }
0x17d0   :  { %v1955_v6 = vcvt.f32.s32 %v1954_v35 }
0x17d2   :  { %v1958_v25 = vadd.s32 %v1957_v13, %v1955_v6 }
0x17d4   :  { %v3335_v42 = vperm.slane %v1958_v25, %v3965_v47  ;;  %v5969_v58 = vpop.xlane.xlu1 %1632  ;;  %v6384_v25 = vld [vmem:[#allocation16_spill] sm:$0xff] }
0x17d5   :  { %v1969_v0 = vpop.xlane.xlu0 %1968  ;;  %vm1634_vm8 = vcmp.eq.f32.partialorder %v5822_v19, %v5969_v58  ;;  %v1675_v19 = vcvt.s32.f32 %v1673_v17  ;;  %vm1260_vm3 = vcmp.ge.f32.partialorder %v6385_v45, %v6384_v25  ;;  %v1579_v25 = vcvt.f32.s32 %v5948_v43 }
0x17d6   :  { %v1970_v33 = vcvt.f32.s32 %v1969_v0  ;;  %v3342_v39 = vsel %vm1425_vm14, %v3335_v42, %v3341_v21  ;;  %v1635_v6 = vsel %vm1634_vm8, %v1630_v4, inf  ;;  %v1290_v0 = vshra.s32 %v5988_v1, 16 }
0x17d7   :  { %vm1259_vm8 = vcmp.ge.f32.partialorder %v6391_v12, %v6390_v53  ;;  %v1609_v43 = vcvt.f32.s32 %v5959_v15 }
0x17d8   :  { %v1973_v46 = vadd.s32 %v1972_v3, %v1970_v33  ;;  %v1268_v3 = vsel %vm1260_vm3, %v3965_v47, 8  ;;  %v5994_v14 = vcvt.s32.f32 %v1290_v0  ;;  %v6387_v33 = vld [vmem:[#allocation8_spill] sm:$0xff]  ;;  %vm6396_vm3 = vcmp.gt.s32.totalorder %v6346_v29, 2 }
0x17d9   :  { %v5997_v24 = vsel %vm1232_vm6, %v1268_v3, 2147483647 }
0x17da   :  { %v3336_v40 = vperm.slane %v1973_v46, %v3965_v47  ;;  %v1320_v42 = vshra.s32 %v5997_v24, 16 }
0x17dc   :  { %v3343_v34 = vsel %vm1427_vm15, %v3336_v40, %v3342_v39  ;;  %v5981_v22 = vpop.xlane.xlu1 %1677  ;;  %v6004_v40 = vcvt.s32.f32 %v1320_v42  ;;  %v6388_v39 = vld [vmem:[#allocation15_spill] sm:$0xff] }
0x17dd   :  { %v5951_v62 = vpop.xlane.xlu0 %1587 }
0x17de   :  { %vm1589_vm0 = vcmp.eq.f32.partialorder %v5887_v59, %v5951_v62  ;;  %v1600_v59 = vcvt.s32.f32 %v1598_v20  ;;  %v1594_v45 = vcvt.f32.s32 %v5951_v62 }
0x17df   :  { %v1590_v26 = vsel %vm1589_vm0, %v1585_v7, inf  ;;  %v1267_v7 = vsel %vm1259_vm8, %v3965_v47, 8 }
0x17e0   :  { %v1605_v35 = vsel %vm1604_vm10, %v1600_v59, inf }
0x17e1   :  { %1662 = vmin.xlane.f32.xlu2 %v5944_v27 }
0x17e5   :  { %v5961_v52 = vpop.xlane.xlu0 %1617 }
0x17e6   :  { %vm1619_vm9 = vcmp.eq.f32.partialorder %v5897_v10, %v5961_v52  ;;  %v1645_v10 = vcvt.s32.f32 %v1643_v8  ;;  %v1624_v62 = vcvt.f32.s32 %v5961_v52 }
0x17e7   :  { %v1620_v54 = vsel %vm1619_vm9, %v1615_v55, inf }
0x17ed   :  { %v5971_v11 = vpop.xlane.xlu0 %1647 }
0x17ee   :  { %vm1649_vm2 = vcmp.eq.f32.partialorder %v5904_v37, %v5971_v11  ;;  %v1654_v15 = vcvt.f32.s32 %v5971_v11 }
0x17ef   :  { %v1650_v13 = vsel %vm1649_vm2, %v1645_v10, inf }
0x1812   :  { %v3327_v38 = vpop.permute.xlu2 %3326 }
0x1813   :  { %vm3328_vm1 = vcmp.eq.s32.totalorder %v3965_v47, %v3327_v38 }
0x1814   :  { %v3344_v60 = vsel %vm3328_vm1, %v3343_v34, 0  ;;  %vm1679_vm1 = vcmp.eq.f32.partialorder %v5829_v49, %v5981_v22  ;;  %v6386_v49 = vld [vmem:[#allocation18_spill] sm:$0xff]  ;;  %v6389_v34 = vld [vmem:[#allocation9_spill] sm:$0xff] }
0x1815   :  { %v3345_v63 = vsel %vm1232_vm6, %v3344_v60, 0  ;;  %v1680_v37 = vsel %vm1679_vm1, %v1675_v19, inf  ;;  %vm1262_vm0 = vcmp.ge.f32.partialorder %v6387_v33, %v6386_v49  ;;  %vm1257_vm10 = vcmp.ge.f32.partialorder %v6389_v34, %v6388_v39 }
0x1816   :  { %v3346_v32 = vand.u32 65535, %v3345_v63  ;;  %v3347_v16 = vshrl.u32 %v3345_v63, 16  ;;  %v1270_v46 = vsel %vm1262_vm0, %v3965_v47, 8  ;;  %v1658_v60 = vand.u32 65535, %v5937_v23 }
0x1817   :  { %v6007_v21 = vsel %vm1232_vm6, %v1270_v46, 2147483647  ;;  %v1265_v63 = vsel %vm1257_vm10, %v3965_v47, 8  ;;  %v1580_v46 = vshll.u32 %v1579_v25, 16 }
0x1818   :  { %v3348_v28 = vcvt.s32.f32 %v3346_v32  ;;  %v3349_v50 = vcvt.s32.f32 %v3347_v16  ;;  %v1350_v30 = vshra.s32 %v6007_v21, 16  ;;  %v1660_v16 = vcvt.s32.f32 %v1658_v60 }
0x181a   :  { %3350 = vadd.xlane.f32.xlu1 %v3348_v28  ;;  %3352 = vadd.xlane.f32.xlu0 %v3349_v50  ;;  %v6013_v38 = vcvt.s32.f32 %v1350_v30  ;;  %v6023_v50 = vsel %vm1232_vm6, %v1265_v63, 2147483647  ;;  %v1595_v30 = vshll.u32 %v1594_v45, 16 }
0x181b   :  { %v1275_v23 = vshra.s32 %v6023_v50, 16 }
0x181d   :  { %v6029_v51 = vcvt.s32.f32 %v1275_v23 }
0x1822   :  { %1591 = vmin.xlane.f32.xlu1 %v1590_v26  ;;  %1576 = vmin.xlane.f32.xlu0 %v1575_v18  ;;  %v6032_v26 = vsel %vm1232_vm6, %v1267_v7, 2147483647  ;;  %v6393_v18 = vld [vmem:[#allocation10_spill] sm:$0xff]  ;;  %v1610_v7 = vshll.u32 %v1609_v43, 16 }
0x1823   :  { %v1305_v61 = vshra.s32 %v6032_v26, 16 }
0x1825   :  { %v6039_v55 = vcvt.s32.f32 %v1305_v61 }
0x182a   :  { %1621 = vmin.xlane.f32.xlu1 %v1620_v54  ;;  %1606 = vmin.xlane.f32.xlu0 %v1605_v35  ;;  %v6394_v54 = vld [vmem:[#allocation20_spill] sm:$0xff]  ;;  %v6395_v35 = vld [vmem:[#allocation11_spill] sm:$0xff] }
0x182b   :  { %vm1264_vm7 = vcmp.ge.f32.partialorder %v6395_v35, %v6394_v54  ;;  %v1639_v35 = vcvt.f32.s32 %v5969_v58 }
0x182c   :  { %v1272_v8 = vsel %vm1264_vm7, %v3965_v47, 8 }
0x182d   :  { %v6052_v10 = vsel %vm1232_vm6, %v1272_v8, 2147483647 }
0x1832   :  { %1636 = vmin.xlane.f32.xlu0 %v1635_v6  ;;  %1651 = vmin.xlane.f32.xlu1 %v1650_v13  ;;  %v1380_v6 = vshra.s32 %v6052_v10, 16 }
0x1834   :  { %v6056_v13 = vcvt.s32.f32 %v1380_v6 }
0x183a   :  { %1681 = vmin.xlane.f32.xlu1 %v1680_v37  ;;  %v6062_v37 = vld [vmem:[%s6189_s2] sm:$0xff]  ;;  %s3776_s2 = smov 2  }
0x183b   :  { %vm3358_vm1 = vcmp.eq.s32.totalorder %v6062_v37, 3 }
0x1842   :  { %1293 = vmin.xlane.f32.xlu1 %v5994_v14 }
0x184a   :  { %1323 = vmin.xlane.f32.xlu1 %v6004_v40 }
0x1852   :  { %1353 = vmin.xlane.f32.xlu1 %v6013_v38 }
0x1854   :  { %v6018_v32 = vpop.xlane.xlu2 %1662 }
0x1855   :  { %vm1664_vm9 = vcmp.eq.f32.partialorder %v5944_v27, %v6018_v32  ;;  %v6392_v27 = vld [vmem:[#allocation17_spill] sm:$0xff] }
0x1856   :  { %v1665_v28 = vsel %vm1664_vm9, %v1660_v16, inf  ;;  %vm1261_vm2 = vcmp.ge.f32.partialorder %v6393_v18, %v6392_v27  ;;  %v1625_v27 = vshll.u32 %v1624_v62, 16 }
0x1857   :  { %1666 = vmin.xlane.f32.xlu0 %v1665_v28  ;;  %v1269_v20 = vsel %vm1261_vm2, %v3965_v47, 8 }
0x1858   :  { %v6042_v59 = vsel %vm1232_vm6, %v1269_v20, 2147483647 }
0x1859   :  { %v1335_v57 = vshra.s32 %v6042_v59, 16 }
0x185b   :  { %v6049_v4 = vcvt.s32.f32 %v1335_v57 }
0x185f   :  { %1278 = vmin.xlane.f32.xlu0 %v6029_v51 }
0x1867   :  { %1308 = vmin.xlane.f32.xlu0 %v6039_v55 }
0x186f   :  { %1338 = vmin.xlane.f32.xlu0 %v6049_v4 }
0x1877   :  { %1383 = vmin.xlane.f32.xlu0 %v6056_v13 }
0x188d   :  { %v3351_v31 = vpop.xlane.xlu1 %3350  ;;  %v3353_v2 = vpop.xlane.xlu0 %3352 }
0x188e   :  { %v3355_v17 = vcvt.f32.s32 %v3353_v2  ;;  %v3354_v41 = vcvt.f32.s32 %v3351_v31 }
0x1890   :  { %v3356_v19 = vshll.u32 %v3355_v17, 16  ;;  %v1640_v17 = vshll.u32 %v1639_v35, 16  ;;  %v1669_v35 = vcvt.f32.s32 %v6018_v32 }
0x1892   :  { %v3357_v0 = vadd.s32 %v3356_v19, %v3354_v41  ;;  %v1655_v41 = vshll.u32 %v1654_v15, 16 }
0x1894   :  { %v3359_v3 = vsel %vm3358_vm1, %v5298_v56, %v3357_v0 }
0x1895   :  { %v1592_v49 = vpop.xlane.xlu1 %1591  ;;  %v1577_v33 = vpop.xlane.xlu0 %1576  ;;  %v6070_v42 = vsel %vm6396_vm3, %v3359_v3, 0 }
0x1896   :  { %v1593_v39 = vcvt.f32.s32 %v1592_v49  ;;  %v1578_v34 = vcvt.f32.s32 %v1577_v33  ;;  %3362 = vperm.xlu2 %3667, %v6070_v42  }
0x1898   :  { %v1596_v60 = vadd.s32 %v1595_v30, %v1593_v39  ;;  %v1581_v63 = vadd.s32 %v1580_v46, %v1578_v34  ;;  %v6397_v46 = vld [vmem:[#allocation19_spill] sm:$0xff]  ;;  %v1289_v39 = vand.u32 65535, %v5988_v1 }
0x1899   :  { %v6398_v30 = vld [vmem:[#allocation7_spill] sm:$0xff] }
0x189a   :  { %v3366_v16 = vperm.slane %v1596_v60, %v3965_v47  ;;  %v3365_v28 = vperm.slane %v1581_v63, %v3965_v47  ;;  %vm1263_vm0 = vcmp.ge.f32.partialorder %v6398_v30, %v6397_v46  ;;  %v1291_v63 = vcvt.s32.f32 %v1289_v39 }
0x189b   :  { %v1271_v34 = vsel %vm1263_vm0, %v3965_v47, 8 }
0x189c   :  { %v3373_v53 = vsel %vm1415_vm4, %v3366_v16, %v3365_v28  ;;  %v6097_v43 = vsel %vm1232_vm6, %v1271_v34, 2147483647  ;;  %v1319_v28 = vand.u32 65535, %v5997_v24 }
0x189d   :  { %v1622_v12 = vpop.xlane.xlu1 %1621  ;;  %v1607_v23 = vpop.xlane.xlu0 %1606  ;;  %v1365_v16 = vshra.s32 %v6097_v43, 16 }
0x189e   :  { %v1623_v18 = vcvt.f32.s32 %v1622_v12  ;;  %v1608_v61 = vcvt.f32.s32 %v1607_v23  ;;  %v1321_v12 = vcvt.s32.f32 %v1319_v28  ;;  %v1364_v28 = vand.u32 65535, %v6097_v43 }
0x189f   :  { %v6103_v1 = vcvt.s32.f32 %v1365_v16 }
0x18a0   :  { %v1626_v20 = vadd.s32 %v1625_v27, %v1623_v18  ;;  %v1611_v54 = vadd.s32 %v1610_v7, %v1608_v61  ;;  %v1274_v7 = vand.u32 65535, %v6023_v50  ;;  %v1304_v61 = vand.u32 65535, %v6032_v26 }
0x18a1   :  { %v1334_v50 = vand.u32 65535, %v6042_v59  ;;  %v1670_v26 = vshll.u32 %v1669_v35, 16 }
0x18a2   :  { %v3368_v52 = vperm.slane %v1626_v20, %v3965_v47  ;;  %v3367_v57 = vperm.slane %v1611_v54, %v3965_v47  ;;  %v1276_v18 = vcvt.s32.f32 %v1274_v7 }
0x18a4   :  { %v3374_v8 = vsel %vm1417_vm5, %v3367_v57, %v3373_v53 }
0x18a5   :  { %v3375_v6 = vsel %vm1419_vm11, %v3368_v52, %v3374_v8  ;;  %v1637_v31 = vpop.xlane.xlu0 %1636  ;;  %v1652_v2 = vpop.xlane.xlu1 %1651  ;;  %v1684_v8 = vcvt.f32.s32 %v5981_v22 }
0x18a6   :  { %v1638_v19 = vcvt.f32.s32 %v1637_v31  ;;  %v1653_v25 = vcvt.f32.s32 %v1652_v2 }
0x18a7   :  { %v1685_v2 = vshll.u32 %v1684_v8, 16 }
0x18a8   :  { %v1641_v45 = vadd.s32 %v1640_v17, %v1638_v19  ;;  %v1656_v0 = vadd.s32 %v1655_v41, %v1653_v25 }
0x18aa   :  { %v3369_v58 = vperm.slane %v1641_v45, %v3965_v47  ;;  %v3370_v11 = vperm.slane %v1656_v0, %v3965_v47 }
0x18ac   :  { %v3376_v3 = vsel %vm1421_vm12, %v3369_v58, %v3375_v6 }
0x18ad   :  { %v1682_v49 = vpop.xlane.xlu1 %1681  ;;  %v3377_v33 = vsel %vm1423_vm13, %v3370_v11, %v3376_v3 }
0x18ae   :  { %v1683_v31 = vcvt.f32.s32 %v1682_v49 }
0x18b0   :  { %v1686_v41 = vadd.s32 %v1685_v2, %v1683_v31 }
0x18b2   :  { %v3372_v22 = vperm.slane %v1686_v41, %v3965_v47 }
0x18b5   :  { %v6092_v60 = vpop.xlane.xlu1 %1293 }
0x18b6   :  { %vm1295_vm10 = vcmp.eq.f32.partialorder %v5994_v14, %v6092_v60  ;;  %v1300_v39 = vcvt.f32.s32 %v6092_v60 }
0x18b7   :  { %v1296_v62 = vsel %vm1295_vm10, %v1291_v63, inf }
0x18b8   :  { %1297 = vmin.xlane.f32.xlu0 %v1296_v62  ;;  %v1301_v63 = vshll.u32 %v1300_v39, 16 }
0x18bd   :  { %v6101_v53 = vpop.xlane.xlu1 %1323 }
0x18be   :  { %vm1325_vm9 = vcmp.eq.f32.partialorder %v6004_v40, %v6101_v53  ;;  %v1306_v40 = vcvt.s32.f32 %v1304_v61 }
0x18bf   :  { %1368 = vmin.xlane.f32.xlu2 %v6103_v1  ;;  %v1326_v14 = vsel %vm1325_vm9, %v1321_v12, inf  ;;  %v1330_v12 = vcvt.f32.s32 %v6101_v53  ;;  %vm3452_vm9 = vcmask 23552  }
0x18c0   :  { %1327 = vmin.xlane.f32.xlu0 %v1326_v14  ;;  %v1366_v14 = vcvt.s32.f32 %v1364_v28 }
0x18ca   :  { %v1667_v23 = vpop.xlane.xlu0 %1666 }
0x18cb   :  { %v1668_v15 = vcvt.f32.s32 %v1667_v23  ;;  %v1331_v23 = vshll.u32 %v1330_v12, 16 }
0x18cd   :  { %v1671_v6 = vadd.s32 %v1670_v26, %v1668_v15 }
0x18cf   :  { %v3371_v59 = vperm.slane %v1671_v6, %v3965_v47 }
0x18d1   :  { %v3378_v19 = vsel %vm1425_vm14, %v3371_v59, %v3377_v33  ;;  %v1349_v33 = vand.u32 65535, %v6007_v21 }
0x18d2   :  { %v6109_v27 = vpop.xlane.xlu0 %1278 }
0x18d3   :  { %vm1280_vm8 = vcmp.eq.f32.partialorder %v6029_v51, %v6109_v27  ;;  %v1336_v51 = vcvt.s32.f32 %v1334_v50  ;;  %v1351_v46 = vcvt.s32.f32 %v1349_v33  ;;  %v1285_v60 = vcvt.f32.s32 %v6109_v27 }
0x18d4   :  { %v1281_v24 = vsel %vm1280_vm8, %v1276_v18, inf  ;;  %vm3454_vm8 = vcmask 31744  }
0x18d5   :  { %1282 = vmin.xlane.f32.xlu1 %v1281_v24  ;;  %v1286_v61 = vshll.u32 %v1285_v60, 16 }
0x18da   :  { %v6114_v20 = vpop.xlane.xlu0 %1308 }
0x18db   :  { %vm1310_vm2 = vcmp.eq.f32.partialorder %v6039_v55, %v6114_v20  ;;  %v1379_v55 = vand.u32 65535, %v6052_v10  ;;  %v3379_v10 = vsel %vm1427_vm15, %v3372_v22, %v3378_v19  ;;  %v1315_v43 = vcvt.f32.s32 %v6114_v20 }
0x18dc   :  { %v1311_v54 = vsel %vm1310_vm2, %v1306_v40, inf  ;;  %vm3456_vm2 = vcmask 39936  }
0x18dd   :  { %1312 = vmin.xlane.f32.xlu1 %v1311_v54  ;;  %v1381_v17 = vcvt.s32.f32 %v1379_v55  ;;  %v1316_v15 = vshll.u32 %v1315_v43, 16 }
0x18e2   :  { %v6120_v52 = vpop.xlane.xlu0 %1338 }
0x18e3   :  { %vm1340_vm7 = vcmp.eq.f32.partialorder %v6049_v4, %v6120_v52 }
0x18e4   :  { %v1341_v57 = vsel %vm1340_vm7, %v1336_v51, inf  ;;  %vm3458_vm7 = vcmask 48128  }
0x18e5   :  { %1342 = vmin.xlane.f32.xlu1 %v1341_v57  ;;  %v1345_v57 = vcvt.f32.s32 %v6120_v52 }
0x18e7   :  { %v1346_v31 = vshll.u32 %v1345_v57, 16 }
0x18ea   :  { %v6127_v32 = vpop.xlane.xlu0 %1383 }
0x18eb   :  { %vm1385_vm1 = vcmp.eq.f32.partialorder %v6056_v13, %v6127_v32  ;;  %v6136_v13 = vpop.xlane.xlu1 %1353 }
0x18ec   :  { %v1386_v4 = vsel %vm1385_vm1, %v1381_v17, inf  ;;  %vm1355_vm0 = vcmp.eq.f32.partialorder %v6013_v38, %v6136_v13  ;;  %vm3460_vm1 = vcmask 56320  }
0x18ed   :  { %1387 = vmin.xlane.f32.xlu2 %v1386_v4  ;;  %v1356_v30 = vsel %vm1355_vm0, %v1351_v46, inf }
0x18f0   :  { %v3363_v25 = vpop.permute.xlu2 %3362 }
0x18f1   :  { %vm3364_vm3 = vcmp.eq.s32.totalorder %v3965_v47, %v3363_v25 }
0x18f2   :  { %v3380_v45 = vsel %vm3364_vm3, %v3379_v10, 0 }
0x18f3   :  { %v3381_v0 = vsel %vm1232_vm6, %v3380_v45, 0 }
0x18f4   :  { %v3382_v58 = vand.u32 65535, %v3381_v0  ;;  %v3383_v11 = vshrl.u32 %v3381_v0, 16 }
0x18f6   :  { %v3385_v3 = vcvt.s32.f32 %v3383_v11  ;;  %v3384_v49 = vcvt.s32.f32 %v3382_v58  ;;  %v1360_v11 = vcvt.f32.s32 %v6136_v13 }
0x18f8   :  { %3388 = vadd.xlane.f32.xlu1 %v3385_v3  ;;  %3386 = vadd.xlane.f32.xlu0 %v3384_v49  ;;  %v1361_v33 = vshll.u32 %v1360_v11, 16 }
0x1900   :  { %1357 = vmin.xlane.f32.xlu0 %v1356_v30 }
0x1905   :  { %3436 = vrot.lane.b32.xlu2 %v6070_v42, %s3776_s2 }
0x192b   :  { %v1298_v34 = vpop.xlane.xlu0 %1297 }
0x192c   :  { %v1299_v62 = vcvt.f32.s32 %v1298_v34 }
0x192e   :  { %v1302_v16 = vadd.s32 %v1301_v63, %v1299_v62 }
0x1930   :  { %v3402_v53 = vperm.slane %v1302_v16, %v3965_v47 }
0x1932   :  { %v1369_v21 = vpop.xlane.xlu2 %1368 }
0x1933   :  { %vm1370_vm10 = vcmp.eq.f32.partialorder %v6103_v1, %v1369_v21  ;;  %v1328_v38 = vpop.xlane.xlu0 %1327  ;;  %v1375_v46 = vcvt.f32.s32 %v1369_v21 }
0x1934   :  { %v1329_v7 = vcvt.f32.s32 %v1328_v38  ;;  %v1371_v18 = vsel %vm1370_vm10, %v1366_v14, inf }
0x1935   :  { %1372 = vmin.xlane.f32.xlu1 %v1371_v18 }
0x1936   :  { %v1332_v42 = vadd.s32 %v1331_v23, %v1329_v7 }
0x1938   :  { %v3404_v8 = vperm.slane %v1332_v42, %v3965_v47 }
0x1948   :  { %v1283_v24 = vpop.xlane.xlu1 %1282 }
0x1949   :  { %v1284_v40 = vcvt.f32.s32 %v1283_v24 }
0x194b   :  { %v1287_v54 = vadd.s32 %v1286_v61, %v1284_v40 }
0x194d   :  { %v3401_v50 = vperm.slane %v1287_v54, %v3965_v47 }
0x194f   :  { %v3409_v1 = vsel %vm1415_vm4, %v3402_v53, %v3401_v50  ;;  %vm3394_vm4 = vcmp.eq.s32.totalorder %v6062_v37, 2 }
0x1950   :  { %v1313_v35 = vpop.xlane.xlu1 %1312 }
0x1951   :  { %v1314_v51 = vcvt.f32.s32 %v1313_v35 }
0x1953   :  { %v1317_v26 = vadd.s32 %v1316_v15, %v1314_v51 }
0x1955   :  { %v3403_v27 = vperm.slane %v1317_v26, %v3965_v47 }
0x1957   :  { %v3410_v6 = vsel %vm1417_vm5, %v3403_v27, %v3409_v1  ;;  %vm6399_vm5 = vcmp.gt.s32.totalorder %v6346_v29, 1  ;;  %v1390_v29 = vcvt.f32.s32 %v6127_v32 }
0x1958   :  { %v3411_v20 = vsel %vm1419_vm11, %v3404_v8, %v3410_v6  ;;  %v1343_v55 = vpop.xlane.xlu1 %1342 }
0x1959   :  { %v1344_v2 = vcvt.f32.s32 %v1343_v55  ;;  %v1391_v34 = vshll.u32 %v1390_v29, 16 }
0x195b   :  { %v1347_v59 = vadd.s32 %v1346_v31, %v1344_v2 }
0x195d   :  { %v3405_v17 = vperm.slane %v1347_v59, %v3965_v47 }
0x195f   :  { %v3412_v41 = vsel %vm1421_vm12, %v3405_v17, %v3411_v20  ;;  %vm3430_vm12 = vcmp.eq.s32.totalorder %v6062_v37, 1 }
0x1960   :  { %v1388_v49 = vpop.xlane.xlu2 %1387 }
0x1961   :  { %v1389_v30 = vcvt.f32.s32 %v1388_v49 }
0x1963   :  { %v1392_v16 = vadd.s32 %v1391_v34, %v1389_v30 }
0x1965   :  { %v3408_v13 = vperm.slane %v1392_v16, %v3965_v47 }
0x1968   :  { %v3437_v24 = vpop.permute.xlu2 %3436 }
0x196b   :  { %v3387_v4 = vpop.xlane.xlu0 %3386  ;;  %v3389_v19 = vpop.xlane.xlu1 %3388 }
0x196c   :  { %v3391_v22 = vcvt.f32.s32 %v3389_v19  ;;  %v3390_v52 = vcvt.f32.s32 %v3387_v4 }
0x196e   :  { %v3392_v25 = vshll.u32 %v3391_v22, 16 }
0x1970   :  { %v3393_v10 = vadd.s32 %v3392_v25, %v3390_v52 }
0x1972   :  { %v3395_v45 = vsel %vm3394_vm4, %v5298_v56, %v3393_v10 }
0x1973   :  { %v3396_v0 = vsel %vm6399_vm5, %v3395_v45, 0  ;;  %v1358_v58 = vpop.xlane.xlu0 %1357 }
0x1974   :  { %3434 = vrot.lane.b32.xlu1 %v3396_v0, %s3777_s3  ;;  %3398 = vperm.xlu0 %3668, %v3396_v0   ;;  %v1359_v3 = vcvt.f32.s32 %v1358_v58 }
0x1976   :  { %v1362_v39 = vadd.s32 %v1361_v33, %v1359_v3 }
0x197c   :  { %3438 = vrot.lane.b32.xlu0 %v5913_v5, %s3778_s30  ;;  %v1376_v5 = vshll.u32 %v1375_v46, 16 }
0x1984   :  { %3440 = vrot.lane.b32.xlu0 %v5762_v9, %s3779_s4  ;;  %v3406_v9 = vperm.slane %v1362_v39, %v3965_v47 }
0x1986   :  { %v3413_v12 = vsel %vm1423_vm13, %v3406_v9, %v3412_v41  ;;  %vm3432_vm13 = vcmp.gt.s32.totalorder %v6062_v37, 0 }
0x198c   :  { %3446 = vrot.lane.b32.xlu0 %v5305_v48, %s3780_s12 }
0x19a8   :  { %v1373_v63 = vpop.xlane.xlu1 %1372 }
0x19a9   :  { %v1374_v62 = vcvt.f32.s32 %v1373_v63 }
0x19ab   :  { %v1377_v28 = vadd.s32 %v1376_v5, %v1374_v62 }
0x19ad   :  { %v3407_v48 = vperm.slane %v1377_v28, %v3965_v47 }
0x19af   :  { %v3414_v14 = vsel %vm1425_vm14, %v3407_v48, %v3413_v12  ;;  %vm3448_vm14 = vcmask 7168  }
0x19b0   :  { %v3415_v32 = vsel %vm1427_vm15, %v3408_v13, %v3414_v14  ;;  %vm3450_vm15 = vcmask 15360  }
0x19e6   :  { %v3399_v21 = vpop.permute.xlu0 %3398  ;;  %v3435_v61 = vpop.permute.xlu1 %3434 }
0x19e7   :  { %vm3400_vm11 = vcmp.eq.s32.totalorder %v3965_v47, %v3399_v21 }
0x19e8   :  { %v3416_v38 = vsel %vm3400_vm11, %v3415_v32, 0 }
0x19e9   :  { %v3417_v23 = vsel %vm1232_vm6, %v3416_v38, 0 }
0x19ea   :  { %v3418_v7 = vand.u32 65535, %v3417_v23  ;;  %v3419_v18 = vshrl.u32 %v3417_v23, 16 }
0x19ec   :  { %v3421_v42 = vcvt.s32.f32 %v3419_v18  ;;  %v3420_v60 = vcvt.s32.f32 %v3418_v7 }
0x19ee   :  { %3424 = vadd.xlane.f32.xlu1 %v3421_v42  ;;  %3422 = vadd.xlane.f32.xlu2 %v3420_v60  ;;  %v3439_v1 = vpop.permute.xlu0 %3438 }
0x1a06   :  { %3444 = vrot.lane.b32.xlu2 %v5452_v36, %s3781_s13 }
0x1a07   :  { %3442 = vrot.lane.b32.xlu1 %v5619_v44, %s3782_s14  ;;  %v3441_v44 = vpop.permute.xlu0 %3440 }
0x1a0f   :  { %v3447_v20 = vpop.permute.xlu0 %3446 }
0x1a61   :  { %v3423_v40 = vpop.xlane.xlu2 %3422  ;;  %v3425_v54 = vpop.xlane.xlu1 %3424 }
0x1a62   :  { %v3427_v47 = vcvt.f32.s32 %v3425_v54  ;;  %v3426_v43 = vcvt.f32.s32 %v3423_v40 }
0x1a64   :  { %v3428_v53 = vshll.u32 %v3427_v47, 16 }
0x1a66   :  { %v3429_v50 = vadd.s32 %v3428_v53, %v3426_v43 }
0x1a68   :  { %v3431_v35 = vsel %vm3430_vm12, %v5298_v56, %v3429_v50 }
0x1a69   :  { %v3433_v15 = vsel %vm3432_vm13, %v3431_v35, 0  ;;  %v3445_v8 = vpop.permute.xlu2 %3444 }
0x1a6a   :  { %v3449_v36 = vsel %vm3448_vm14, %v3433_v15, %v3435_v61 }
0x1a6b   :  { %v3451_v51 = vsel %vm3450_vm15, %v3449_v36, %v3437_v24 }
0x1a6c   :  { %v3453_v26 = vsel %vm3452_vm9, %v3451_v51, %v3439_v1 }
0x1a6d   :  { %v3455_v57 = vsel %vm3454_vm8, %v3453_v26, %v3441_v44 }
0x1a79   :  { %v3443_v27 = vpop.permute.xlu1 %3442 }
0x1a7a   :  { %v3457_v6 = vsel %vm3456_vm2, %v3455_v57, %v3443_v27 }
0x1a7b   :  { %v3459_v37 = vsel %vm3458_vm7, %v3457_v6, %v3445_v8 }
0x1a7c   :  { %v3461_v55 = vsel %vm3460_vm1, %v3459_v37, %v3447_v20 }
0x1a7d   :  { %3462 = vst.msk [vmem:[%s6195_s11] sm:$0xff] %vm1232_vm6, %v3461_v55 }

</bundles_post_ra>
